<compile_context>
chip_gen: v6e
topology: v6e:2x2x1
jax: 0.10.0
libtpu: 0.0.40
codegen_flags: <defaults>
</compile_context>

<pallas_src>
import functools

import jax
import jax.numpy as jnp
import numpy as np
from jax.experimental import pallas as pl
from jax.experimental.pallas import tpu as pltpu


# ---------------------------------------------------------------------------
# Fused Pallas kernel: conv1+BN1+ReLU -> conv2+BN2 -> +residual -> ReLU
# ---------------------------------------------------------------------------
def _basic_block_kernel(x_ref, w1_ref, b1_ref, w2_ref, b2_ref, o_ref,
                        pad_ref):
    """One image per grid step.  Each 3x3 conv is 9 shifted-window MXU
    matmuls over a zero-padded VMEM scratch; BN scales are pre-folded into
    the weights, so only bias adds, the residual add and the ReLUs remain as
    VPU work."""
    _, H, W, C = x_ref.shape

    def conv3x3(w_ref):
        acc = None
        for kh in range(3):
            for kw in range(3):
                patch = pad_ref[kh:kh + H, kw:kw + W, :].reshape(H * W, C)
                t = jnp.dot(patch, w_ref[kh * 3 + kw],
                            preferred_element_type=jnp.float32)
                acc = t if acc is None else acc + t
        return acc                                       # (H*W, C) f32

    x = x_ref[0]                                         # (H, W, C) f32

    # Zero the halo buffer once per step; both conv stages fully overwrite
    # the interior, the 1-pixel border stays zero for the whole step.
    pad_ref[...] = jnp.zeros_like(pad_ref)
    pad_ref[1:H + 1, 1:W + 1, :] = x

    # ---- conv1 (scale-folded) + bias + ReLU --------------------------------
    y1 = jnp.maximum(conv3x3(w1_ref) + b1_ref[...], 0.0)
    # dropout(p=0) == identity

    # conv1 result stays resident in VMEM; reuse the same padded scratch.
    pad_ref[1:H + 1, 1:W + 1, :] = y1.reshape(H, W, C)

    # ---- conv2 (scale-folded) + bias + residual + ReLU ---------------------
    y2 = conv3x3(w2_ref) + b2_ref[...] + x.reshape(H * W, C).astype(jnp.float32)
    o_ref[0] = jnp.maximum(y2, 0.0).reshape(H, W, C).astype(o_ref.dtype)


# ---------------------------------------------------------------------------
# Wrapper: single pallas_call, grid over batch, weights resident across steps
# ---------------------------------------------------------------------------
def basic_block_forward(x_nchw, params):
    """BasicBlock forward. x_nchw: (B, C, H, W) float32 (PyTorch layout)."""
    x = jnp.transpose(x_nchw, (0, 2, 3, 1))             # NCHW -> NHWC
    B, H, W, Cin = x.shape
    Cout = params["w1s"].shape[-1]
    # stride=1 / downsample=None in the original module implies Cin == Cout;
    # required here because the padded scratch buffer is reused by both convs.
    assert Cin == Cout, "BasicBlock with downsample=None requires Cin == Cout"

    grid_spec = pltpu.PrefetchScalarGridSpec(
        num_scalar_prefetch=0,
        grid=(B,),
        in_specs=[
            pl.BlockSpec((1, H, W, Cin), lambda b: (b, 0, 0, 0)),   # x
            pl.BlockSpec((9, Cin, Cout), lambda b: (0, 0, 0)),      # w1 * s1
            pl.BlockSpec((1, Cout), lambda b: (0, 0)),              # b1
            pl.BlockSpec((9, Cout, Cout), lambda b: (0, 0, 0)),     # w2 * s2
            pl.BlockSpec((1, Cout), lambda b: (0, 0)),              # b2
        ],
        out_specs=pl.BlockSpec((1, H, W, Cout), lambda b: (b, 0, 0, 0)),
        scratch_shapes=[
            pltpu.VMEM((H + 2, W + 2, Cin), jnp.float32),   # shared padded buf
        ],
    )

    out = pl.pallas_call(
        _basic_block_kernel,
        out_shape=jax.ShapeDtypeStruct((B, H, W, Cout), jnp.float32),
        grid_spec=grid_spec,
        compiler_params=pltpu.CompilerParams(
            dimension_semantics=("parallel",),   # shards batch across TCs (v7x)
        ),
    )(x, params["w1s"], params["b1"], params["w2s"], params["b2"])

    return jnp.transpose(out, (0, 3, 1, 2))              # NHWC -> NCHW


# ---------------------------------------------------------------------------
# Deterministic parameter construction (shapes from BasicBlock.__init__)
# ---------------------------------------------------------------------------
def make_params(key, inplanes, planes, eps=1e-5):
    ks = jax.random.split(key, 10)
    w1_oihw = jax.random.normal(ks[0], (planes, inplanes, 3, 3), jnp.float32) * 0.1
    w2_oihw = jax.random.normal(ks[1], (planes, planes, 3, 3), jnp.float32) * 0.1

    def bn_stats(kg, kb, km, kv, c):
        gamma = 1.0 + 0.1 * jax.random.normal(kg, (c,), jnp.float32)
        beta = 0.1 * jax.random.normal(kb, (c,), jnp.float32)
        mean = 0.1 * jax.random.normal(km, (c,), jnp.float32)
        var = 1.0 + 0.1 * jnp.abs(jax.random.normal(kv, (c,), jnp.float32))
        return gamma, beta, mean, var

    bn1 = bn_stats(ks[2], ks[3], ks[4], ks[5], planes)
    bn2 = bn_stats(ks[6], ks[7], ks[8], ks[9], planes)

    def fold(stats):
        gamma, beta, mean, var = stats
        scale = gamma / jnp.sqrt(var + eps)
        bias = beta - mean * scale
        return scale, bias

    s1, b1 = fold(bn1)
    s2, b2 = fold(bn2)

    # OIHW -> (kh*3+kw, Cin, Cout), then fold the BN scale into the weights
    # (conv is linear) so the kernel only adds the per-channel bias.
    def to_taps(w_oihw):
        w = jnp.transpose(w_oihw, (2, 3, 1, 0))           # (3,3,Cin,Cout)
        return w.reshape(9, w.shape[2], w.shape[3])

    params = {
        "w1s": to_taps(w1_oihw) * s1[None, None, :],
        "b1": b1.reshape(1, -1),
        "w2s": to_taps(w2_oihw) * s2[None, None, :],
        "b2": b2.reshape(1, -1),
    }
    raw = {"w1": w1_oihw, "w2": w2_oihw, "bn1": bn1, "bn2": bn2}
    return params, raw


# ---------------------------------------------------------------------------
# Pure-JAX reference (matches PyTorch eval-mode forward) for validation
# ---------------------------------------------------------------------------
def reference_forward(x_nchw, raw, eps=1e-5):
    def conv(x, w):
        return jax.lax.conv_general_dilated(
            x, w, window_strides=(1, 1), padding=((1, 1), (1, 1)),
            dimension_numbers=("NCHW", "OIHW", "NCHW"))

    def bn(x, stats):
        gamma, beta, mean, var = stats
        s = gamma / jnp.sqrt(var + eps)
        b = beta - mean * s
        return x * s[None, :, None, None] + b[None, :, None, None]

    out = jax.nn.relu(bn(conv(x_nchw, raw["w1"]), raw["bn1"]))
    out = bn(conv(out, raw["w2"]), raw["bn2"])
    return jax.nn.relu(out + x_nchw)


if __name__ == "__main__":
    B, C, H, W = 2, 4, 16, 16        # inplanes = planes = 4, stride = 1
    key = jax.random.PRNGKey(0)
    kx, kp = jax.random.split(key)
    x = jax.random.normal(kx, (B, C, H, W), jnp.float32)
    params, raw = make_params(kp, inplanes=C, planes=C)

    out = jax.jit(functools.partial(basic_block_forward, params=params))(x)
    out = jax.block_until_ready(out)

    ref = jax.block_until_ready(reference_forward(x, raw))
    np.testing.assert_allclose(np.asarray(out), np.asarray(ref), rtol=1e-4, atol=1e-4)

    print("KERNEL_OK")
</pallas_src>

<mosaic_0001>
module attributes {stable_mosaic.version = 11 : i64} {
  func.func @_basic_block_kernel(%arg0: i32, %arg1: memref<1x16x16x4xf32, #tpu.memory_space<vmem>>, %arg2: memref<9x4x4xf32, #tpu.memory_space<vmem>>, %arg3: memref<1x4xf32, #tpu.memory_space<vmem>>, %arg4: memref<9x4x4xf32, #tpu.memory_space<vmem>>, %arg5: memref<1x4xf32, #tpu.memory_space<vmem>>, %arg6: memref<1x16x16x4xf32, #tpu.memory_space<vmem>>, %arg7: memref<18x18x4xf32, #tpu.memory_space<vmem>>) attributes {dimension_semantics = [#tpu.dimension_semantics<parallel>], iteration_bounds = array<i64: 2>, scalar_prefetch = 0 : i64, scratch_operands = 1 : i64, tpu.core_type = #tpu.core_type<tc>, window_params = [{transform_indices = @transform_0, window_bounds = array<i64: 1, 16, 16, 4>}, {pipeline_mode = #tpu.pipeline_mode<synchronous>, transform_indices = @transform_1, window_bounds = array<i64: 9, 4, 4>}, {pipeline_mode = #tpu.pipeline_mode<synchronous>, transform_indices = @transform_2, window_bounds = array<i64: 1, 4>}, {pipeline_mode = #tpu.pipeline_mode<synchronous>, transform_indices = @transform_3, window_bounds = array<i64: 9, 4, 4>}, {pipeline_mode = #tpu.pipeline_mode<synchronous>, transform_indices = @transform_4, window_bounds = array<i64: 1, 4>}, {transform_indices = @transform_5, window_bounds = array<i64: 1, 16, 16, 4>}]} {
    %c0 = arith.constant 0 : index
    %c0_0 = arith.constant 0 : index
    %c0_1 = arith.constant 0 : index
    %c0_2 = arith.constant 0 : index
    %0 = vector.load %arg1[%c0, %c0_0, %c0_1, %c0_2] : memref<1x16x16x4xf32, #tpu.memory_space<vmem>>, vector<1x16x16x4xf32>
    %1 = vector.shape_cast %0 : vector<1x16x16x4xf32> to vector<16x16x4xf32>
    %cst = arith.constant 0.000000e+00 : f32
    %2 = vector.broadcast %cst : f32 to vector<18x18x4xf32>
    %c0_3 = arith.constant 0 : index
    %c0_4 = arith.constant 0 : index
    %c0_5 = arith.constant 0 : index
    %3 = vector.load %arg7[%c0_3, %c0_4, %c0_5] : memref<18x18x4xf32, #tpu.memory_space<vmem>>, vector<18x18x4xf32>
    tpu.vector_store %arg7[%c0_3, %c0_4, %c0_5], %2 {strides = array<i32>} : memref<18x18x4xf32, #tpu.memory_space<vmem>>, vector<18x18x4xf32>,
    %c1 = arith.constant 1 : index
    %c1_6 = arith.constant 1 : index
    %c0_7 = arith.constant 0 : index
    %4 = vector.load %arg7[%c1, %c1_6, %c0_7] : memref<18x18x4xf32, #tpu.memory_space<vmem>>, vector<16x16x4xf32>
    tpu.vector_store %arg7[%c1, %c1_6, %c0_7], %1 {strides = array<i32>} : memref<18x18x4xf32, #tpu.memory_space<vmem>>, vector<16x16x4xf32>,
    %c0_8 = arith.constant 0 : index
    %c0_9 = arith.constant 0 : index
    %c0_10 = arith.constant 0 : index
    %5 = vector.load %arg7[%c0_8, %c0_9, %c0_10] : memref<18x18x4xf32, #tpu.memory_space<vmem>>, vector<16x16x4xf32>
    %6 = vector.shape_cast %5 : vector<16x16x4xf32> to vector<256x4xf32>
    %c0_11 = arith.constant 0 : index
    %c0_12 = arith.constant 0 : index
    %c0_13 = arith.constant 0 : index
    %7 = vector.load %arg2[%c0_11, %c0_12, %c0_13] : memref<9x4x4xf32, #tpu.memory_space<vmem>>, vector<1x4x4xf32>
    %8 = vector.shape_cast %7 : vector<1x4x4xf32> to vector<4x4xf32>
    %cst_14 = arith.constant dense<0.000000e+00> : vector<256x4xf32>
    %9 = tpu.matmul %6, %8, %cst_14 {dimension_numbers = #tpu.dot_dimension_numbers<[1], [0], [0], [1], [0, 0, 1, 1], [], []>} : vector<256x4xf32>, vector<4x4xf32>, vector<256x4xf32> -> vector<256x4xf32>
    %c0_15 = arith.constant 0 : index
    %c1_16 = arith.constant 1 : index
    %c0_17 = arith.constant 0 : index
    %10 = vector.load %arg7[%c0_15, %c1_16, %c0_17] : memref<18x18x4xf32, #tpu.memory_space<vmem>>, vector<16x16x4xf32>
    %11 = vector.shape_cast %10 : vector<16x16x4xf32> to vector<256x4xf32>
    %c1_18 = arith.constant 1 : index
    %c0_19 = arith.constant 0 : index
    %c0_20 = arith.constant 0 : index
    %12 = vector.load %arg2[%c1_18, %c0_19, %c0_20] : memref<9x4x4xf32, #tpu.memory_space<vmem>>, vector<1x4x4xf32>
    %13 = vector.shape_cast %12 : vector<1x4x4xf32> to vector<4x4xf32>
    %cst_21 = arith.constant dense<0.000000e+00> : vector<256x4xf32>
    %14 = tpu.matmul %11, %13, %cst_21 {dimension_numbers = #tpu.dot_dimension_numbers<[1], [0], [0], [1], [0, 0, 1, 1], [], []>} : vector<256x4xf32>, vector<4x4xf32>, vector<256x4xf32> -> vector<256x4xf32>
    %15 = arith.addf %9, %14 : vector<256x4xf32>
    %c0_22 = arith.constant 0 : index
    %c2 = arith.constant 2 : index
    %c0_23 = arith.constant 0 : index
    %16 = vector.load %arg7[%c0_22, %c2, %c0_23] : memref<18x18x4xf32, #tpu.memory_space<vmem>>, vector<16x16x4xf32>
    %17 = vector.shape_cast %16 : vector<16x16x4xf32> to vector<256x4xf32>
    %c2_24 = arith.constant 2 : index
    %c0_25 = arith.constant 0 : index
    %c0_26 = arith.constant 0 : index
    %18 = vector.load %arg2[%c2_24, %c0_25, %c0_26] : memref<9x4x4xf32, #tpu.memory_space<vmem>>, vector<1x4x4xf32>
    %19 = vector.shape_cast %18 : vector<1x4x4xf32> to vector<4x4xf32>
    %cst_27 = arith.constant dense<0.000000e+00> : vector<256x4xf32>
    %20 = tpu.matmul %17, %19, %cst_27 {dimension_numbers = #tpu.dot_dimension_numbers<[1], [0], [0], [1], [0, 0, 1, 1], [], []>} : vector<256x4xf32>, vector<4x4xf32>, vector<256x4xf32> -> vector<256x4xf32>
    %21 = arith.addf %15, %20 : vector<256x4xf32>
    %c1_28 = arith.constant 1 : index
    %c0_29 = arith.constant 0 : index
    %c0_30 = arith.constant 0 : index
    %22 = vector.load %arg7[%c1_28, %c0_29, %c0_30] : memref<18x18x4xf32, #tpu.memory_space<vmem>>, vector<16x16x4xf32>
    %23 = vector.shape_cast %22 : vector<16x16x4xf32> to vector<256x4xf32>
    %c3 = arith.constant 3 : index
    %c0_31 = arith.constant 0 : index
    %c0_32 = arith.constant 0 : index
    %24 = vector.load %arg2[%c3, %c0_31, %c0_32] : memref<9x4x4xf32, #tpu.memory_space<vmem>>, vector<1x4x4xf32>
    %25 = vector.shape_cast %24 : vector<1x4x4xf32> to vector<4x4xf32>
    %cst_33 = arith.constant dense<0.000000e+00> : vector<256x4xf32>
    %26 = tpu.matmul %23, %25, %cst_33 {dimension_numbers = #tpu.dot_dimension_numbers<[1], [0], [0], [1], [0, 0, 1, 1], [], []>} : vector<256x4xf32>, vector<4x4xf32>, vector<256x4xf32> -> vector<256x4xf32>
    %27 = arith.addf %21, %26 : vector<256x4xf32>
    %c1_34 = arith.constant 1 : index
    %c1_35 = arith.constant 1 : index
    %c0_36 = arith.constant 0 : index
    %28 = vector.load %arg7[%c1_34, %c1_35, %c0_36] : memref<18x18x4xf32, #tpu.memory_space<vmem>>, vector<16x16x4xf32>
    %29 = vector.shape_cast %28 : vector<16x16x4xf32> to vector<256x4xf32>
    %c4 = arith.constant 4 : index
    %c0_37 = arith.constant 0 : index
    %c0_38 = arith.constant 0 : index
    %30 = vector.load %arg2[%c4, %c0_37, %c0_38] : memref<9x4x4xf32, #tpu.memory_space<vmem>>, vector<1x4x4xf32>
    %31 = vector.shape_cast %30 : vector<1x4x4xf32> to vector<4x4xf32>
    %cst_39 = arith.constant dense<0.000000e+00> : vector<256x4xf32>
    %32 = tpu.matmul %29, %31, %cst_39 {dimension_numbers = #tpu.dot_dimension_numbers<[1], [0], [0], [1], [0, 0, 1, 1], [], []>} : vector<256x4xf32>, vector<4x4xf32>, vector<256x4xf32> -> vector<256x4xf32>
    %33 = arith.addf %27, %32 : vector<256x4xf32>
    %c1_40 = arith.constant 1 : index
    %c2_41 = arith.constant 2 : index
    %c0_42 = arith.constant 0 : index
    %34 = vector.load %arg7[%c1_40, %c2_41, %c0_42] : memref<18x18x4xf32, #tpu.memory_space<vmem>>, vector<16x16x4xf32>
    %35 = vector.shape_cast %34 : vector<16x16x4xf32> to vector<256x4xf32>
    %c5 = arith.constant 5 : index
    %c0_43 = arith.constant 0 : index
    %c0_44 = arith.constant 0 : index
    %36 = vector.load %arg2[%c5, %c0_43, %c0_44] : memref<9x4x4xf32, #tpu.memory_space<vmem>>, vector<1x4x4xf32>
    %37 = vector.shape_cast %36 : vector<1x4x4xf32> to vector<4x4xf32>
    %cst_45 = arith.constant dense<0.000000e+00> : vector<256x4xf32>
    %38 = tpu.matmul %35, %37, %cst_45 {dimension_numbers = #tpu.dot_dimension_numbers<[1], [0], [0], [1], [0, 0, 1, 1], [], []>} : vector<256x4xf32>, vector<4x4xf32>, vector<256x4xf32> -> vector<256x4xf32>
    %39 = arith.addf %33, %38 : vector<256x4xf32>
    %c2_46 = arith.constant 2 : index
    %c0_47 = arith.constant 0 : index
    %c0_48 = arith.constant 0 : index
    %40 = vector.load %arg7[%c2_46, %c0_47, %c0_48] : memref<18x18x4xf32, #tpu.memory_space<vmem>>, vector<16x16x4xf32>
    %41 = vector.shape_cast %40 : vector<16x16x4xf32> to vector<256x4xf32>
    %c6 = arith.constant 6 : index
    %c0_49 = arith.constant 0 : index
    %c0_50 = arith.constant 0 : index
    %42 = vector.load %arg2[%c6, %c0_49, %c0_50] : memref<9x4x4xf32, #tpu.memory_space<vmem>>, vector<1x4x4xf32>
    %43 = vector.shape_cast %42 : vector<1x4x4xf32> to vector<4x4xf32>
    %cst_51 = arith.constant dense<0.000000e+00> : vector<256x4xf32>
    %44 = tpu.matmul %41, %43, %cst_51 {dimension_numbers = #tpu.dot_dimension_numbers<[1], [0], [0], [1], [0, 0, 1, 1], [], []>} : vector<256x4xf32>, vector<4x4xf32>, vector<256x4xf32> -> vector<256x4xf32>
    %45 = arith.addf %39, %44 : vector<256x4xf32>
    %c2_52 = arith.constant 2 : index
    %c1_53 = arith.constant 1 : index
    %c0_54 = arith.constant 0 : index
    %46 = vector.load %arg7[%c2_52, %c1_53, %c0_54] : memref<18x18x4xf32, #tpu.memory_space<vmem>>, vector<16x16x4xf32>
    %47 = vector.shape_cast %46 : vector<16x16x4xf32> to vector<256x4xf32>
    %c7 = arith.constant 7 : index
    %c0_55 = arith.constant 0 : index
    %c0_56 = arith.constant 0 : index
    %48 = vector.load %arg2[%c7, %c0_55, %c0_56] : memref<9x4x4xf32, #tpu.memory_space<vmem>>, vector<1x4x4xf32>
    %49 = vector.shape_cast %48 : vector<1x4x4xf32> to vector<4x4xf32>
    %cst_57 = arith.constant dense<0.000000e+00> : vector<256x4xf32>
    %50 = tpu.matmul %47, %49, %cst_57 {dimension_numbers = #tpu.dot_dimension_numbers<[1], [0], [0], [1], [0, 0, 1, 1], [], []>} : vector<256x4xf32>, vector<4x4xf32>, vector<256x4xf32> -> vector<256x4xf32>
    %51 = arith.addf %45, %50 : vector<256x4xf32>
    %c2_58 = arith.constant 2 : index
    %c2_59 = arith.constant 2 : index
    %c0_60 = arith.constant 0 : index
    %52 = vector.load %arg7[%c2_58, %c2_59, %c0_60] : memref<18x18x4xf32, #tpu.memory_space<vmem>>, vector<16x16x4xf32>
    %53 = vector.shape_cast %52 : vector<16x16x4xf32> to vector<256x4xf32>
    %c8 = arith.constant 8 : index
    %c0_61 = arith.constant 0 : index
    %c0_62 = arith.constant 0 : index
    %54 = vector.load %arg2[%c8, %c0_61, %c0_62] : memref<9x4x4xf32, #tpu.memory_space<vmem>>, vector<1x4x4xf32>
    %55 = vector.shape_cast %54 : vector<1x4x4xf32> to vector<4x4xf32>
    %cst_63 = arith.constant dense<0.000000e+00> : vector<256x4xf32>
    %56 = tpu.matmul %53, %55, %cst_63 {dimension_numbers = #tpu.dot_dimension_numbers<[1], [0], [0], [1], [0, 0, 1, 1], [], []>} : vector<256x4xf32>, vector<4x4xf32>, vector<256x4xf32> -> vector<256x4xf32>
    %57 = arith.addf %51, %56 : vector<256x4xf32>
    %c0_64 = arith.constant 0 : index
    %c0_65 = arith.constant 0 : index
    %58 = vector.load %arg3[%c0_64, %c0_65] : memref<1x4xf32, #tpu.memory_space<vmem>>, vector<1x4xf32>
    %59 = vector.broadcast %58 : vector<1x4xf32> to vector<256x4xf32>
    %60 = arith.addf %57, %59 : vector<256x4xf32>
    %cst_66 = arith.constant 0.000000e+00 : f32
    %61 = vector.broadcast %cst_66 : f32 to vector<256x4xf32>
    %62 = arith.maximumf %60, %61 : vector<256x4xf32>
    %63 = vector.shape_cast %62 : vector<256x4xf32> to vector<16x16x4xf32>
    %c1_67 = arith.constant 1 : index
    %c1_68 = arith.constant 1 : index
    %c0_69 = arith.constant 0 : index
    %64 = vector.load %arg7[%c1_67, %c1_68, %c0_69] : memref<18x18x4xf32, #tpu.memory_space<vmem>>, vector<16x16x4xf32>
    tpu.vector_store %arg7[%c1_67, %c1_68, %c0_69], %63 {strides = array<i32>} : memref<18x18x4xf32, #tpu.memory_space<vmem>>, vector<16x16x4xf32>,
    %c0_70 = arith.constant 0 : index
    %c0_71 = arith.constant 0 : index
    %c0_72 = arith.constant 0 : index
    %65 = vector.load %arg7[%c0_70, %c0_71, %c0_72] : memref<18x18x4xf32, #tpu.memory_space<vmem>>, vector<16x16x4xf32>
    %66 = vector.shape_cast %65 : vector<16x16x4xf32> to vector<256x4xf32>
    %c0_73 = arith.constant 0 : index
    %c0_74 = arith.constant 0 : index
    %c0_75 = arith.constant 0 : index
    %67 = vector.load %arg4[%c0_73, %c0_74, %c0_75] : memref<9x4x4xf32, #tpu.memory_space<vmem>>, vector<1x4x4xf32>
    %68 = vector.shape_cast %67 : vector<1x4x4xf32> to vector<4x4xf32>
    %cst_76 = arith.constant dense<0.000000e+00> : vector<256x4xf32>
    %69 = tpu.matmul %66, %68, %cst_76 {dimension_numbers = #tpu.dot_dimension_numbers<[1], [0], [0], [1], [0, 0, 1, 1], [], []>} : vector<256x4xf32>, vector<4x4xf32>, vector<256x4xf32> -> vector<256x4xf32>
    %c0_77 = arith.constant 0 : index
    %c1_78 = arith.constant 1 : index
    %c0_79 = arith.constant 0 : index
    %70 = vector.load %arg7[%c0_77, %c1_78, %c0_79] : memref<18x18x4xf32, #tpu.memory_space<vmem>>, vector<16x16x4xf32>
    %71 = vector.shape_cast %70 : vector<16x16x4xf32> to vector<256x4xf32>
    %c1_80 = arith.constant 1 : index
    %c0_81 = arith.constant 0 : index
    %c0_82 = arith.constant 0 : index
    %72 = vector.load %arg4[%c1_80, %c0_81, %c0_82] : memref<9x4x4xf32, #tpu.memory_space<vmem>>, vector<1x4x4xf32>
    %73 = vector.shape_cast %72 : vector<1x4x4xf32> to vector<4x4xf32>
    %cst_83 = arith.constant dense<0.000000e+00> : vector<256x4xf32>
    %74 = tpu.matmul %71, %73, %cst_83 {dimension_numbers = #tpu.dot_dimension_numbers<[1], [0], [0], [1], [0, 0, 1, 1], [], []>} : vector<256x4xf32>, vector<4x4xf32>, vector<256x4xf32> -> vector<256x4xf32>
    %75 = arith.addf %69, %74 : vector<256x4xf32>
    %c0_84 = arith.constant 0 : index
    %c2_85 = arith.constant 2 : index
    %c0_86 = arith.constant 0 : index
    %76 = vector.load %arg7[%c0_84, %c2_85, %c0_86] : memref<18x18x4xf32, #tpu.memory_space<vmem>>, vector<16x16x4xf32>
    %77 = vector.shape_cast %76 : vector<16x16x4xf32> to vector<256x4xf32>
    %c2_87 = arith.constant 2 : index
    %c0_88 = arith.constant 0 : index
    %c0_89 = arith.constant 0 : index
    %78 = vector.load %arg4[%c2_87, %c0_88, %c0_89] : memref<9x4x4xf32, #tpu.memory_space<vmem>>, vector<1x4x4xf32>
    %79 = vector.shape_cast %78 : vector<1x4x4xf32> to vector<4x4xf32>
    %cst_90 = arith.constant dense<0.000000e+00> : vector<256x4xf32>
    %80 = tpu.matmul %77, %79, %cst_90 {dimension_numbers = #tpu.dot_dimension_numbers<[1], [0], [0], [1], [0, 0, 1, 1], [], []>} : vector<256x4xf32>, vector<4x4xf32>, vector<256x4xf32> -> vector<256x4xf32>
    %81 = arith.addf %75, %80 : vector<256x4xf32>
    %c1_91 = arith.constant 1 : index
    %c0_92 = arith.constant 0 : index
    %c0_93 = arith.constant 0 : index
    %82 = vector.load %arg7[%c1_91, %c0_92, %c0_93] : memref<18x18x4xf32, #tpu.memory_space<vmem>>, vector<16x16x4xf32>
    %83 = vector.shape_cast %82 : vector<16x16x4xf32> to vector<256x4xf32>
    %c3_94 = arith.constant 3 : index
    %c0_95 = arith.constant 0 : index
    %c0_96 = arith.constant 0 : index
    %84 = vector.load %arg4[%c3_94, %c0_95, %c0_96] : memref<9x4x4xf32, #tpu.memory_space<vmem>>, vector<1x4x4xf32>
    %85 = vector.shape_cast %84 : vector<1x4x4xf32> to vector<4x4xf32>
    %cst_97 = arith.constant dense<0.000000e+00> : vector<256x4xf32>
    %86 = tpu.matmul %83, %85, %cst_97 {dimension_numbers = #tpu.dot_dimension_numbers<[1], [0], [0], [1], [0, 0, 1, 1], [], []>} : vector<256x4xf32>, vector<4x4xf32>, vector<256x4xf32> -> vector<256x4xf32>
    %87 = arith.addf %81, %86 : vector<256x4xf32>
    %c1_98 = arith.constant 1 : index
    %c1_99 = arith.constant 1 : index
    %c0_100 = arith.constant 0 : index
    %88 = vector.load %arg7[%c1_98, %c1_99, %c0_100] : memref<18x18x4xf32, #tpu.memory_space<vmem>>, vector<16x16x4xf32>
    %89 = vector.shape_cast %88 : vector<16x16x4xf32> to vector<256x4xf32>
    %c4_101 = arith.constant 4 : index
    %c0_102 = arith.constant 0 : index
    %c0_103 = arith.constant 0 : index
    %90 = vector.load %arg4[%c4_101, %c0_102, %c0_103] : memref<9x4x4xf32, #tpu.memory_space<vmem>>, vector<1x4x4xf32>
    %91 = vector.shape_cast %90 : vector<1x4x4xf32> to vector<4x4xf32>
    %cst_104 = arith.constant dense<0.000000e+00> : vector<256x4xf32>
    %92 = tpu.matmul %89, %91, %cst_104 {dimension_numbers = #tpu.dot_dimension_numbers<[1], [0], [0], [1], [0, 0, 1, 1], [], []>} : vector<256x4xf32>, vector<4x4xf32>, vector<256x4xf32> -> vector<256x4xf32>
    %93 = arith.addf %87, %92 : vector<256x4xf32>
    %c1_105 = arith.constant 1 : index
    %c2_106 = arith.constant 2 : index
    %c0_107 = arith.constant 0 : index
    %94 = vector.load %arg7[%c1_105, %c2_106, %c0_107] : memref<18x18x4xf32, #tpu.memory_space<vmem>>, vector<16x16x4xf32>
    %95 = vector.shape_cast %94 : vector<16x16x4xf32> to vector<256x4xf32>
    %c5_108 = arith.constant 5 : index
    %c0_109 = arith.constant 0 : index
    %c0_110 = arith.constant 0 : index
    %96 = vector.load %arg4[%c5_108, %c0_109, %c0_110] : memref<9x4x4xf32, #tpu.memory_space<vmem>>, vector<1x4x4xf32>
    %97 = vector.shape_cast %96 : vector<1x4x4xf32> to vector<4x4xf32>
    %cst_111 = arith.constant dense<0.000000e+00> : vector<256x4xf32>
    %98 = tpu.matmul %95, %97, %cst_111 {dimension_numbers = #tpu.dot_dimension_numbers<[1], [0], [0], [1], [0, 0, 1, 1], [], []>} : vector<256x4xf32>, vector<4x4xf32>, vector<256x4xf32> -> vector<256x4xf32>
    %99 = arith.addf %93, %98 : vector<256x4xf32>
    %c2_112 = arith.constant 2 : index
    %c0_113 = arith.constant 0 : index
    %c0_114 = arith.constant 0 : index
    %100 = vector.load %arg7[%c2_112, %c0_113, %c0_114] : memref<18x18x4xf32, #tpu.memory_space<vmem>>, vector<16x16x4xf32>
    %101 = vector.shape_cast %100 : vector<16x16x4xf32> to vector<256x4xf32>
    %c6_115 = arith.constant 6 : index
    %c0_116 = arith.constant 0 : index
    %c0_117 = arith.constant 0 : index
    %102 = vector.load %arg4[%c6_115, %c0_116, %c0_117] : memref<9x4x4xf32, #tpu.memory_space<vmem>>, vector<1x4x4xf32>
    %103 = vector.shape_cast %102 : vector<1x4x4xf32> to vector<4x4xf32>
    %cst_118 = arith.constant dense<0.000000e+00> : vector<256x4xf32>
    %104 = tpu.matmul %101, %103, %cst_118 {dimension_numbers = #tpu.dot_dimension_numbers<[1], [0], [0], [1], [0, 0, 1, 1], [], []>} : vector<256x4xf32>, vector<4x4xf32>, vector<256x4xf32> -> vector<256x4xf32>
    %105 = arith.addf %99, %104 : vector<256x4xf32>
    %c2_119 = arith.constant 2 : index
    %c1_120 = arith.constant 1 : index
    %c0_121 = arith.constant 0 : index
    %106 = vector.load %arg7[%c2_119, %c1_120, %c0_121] : memref<18x18x4xf32, #tpu.memory_space<vmem>>, vector<16x16x4xf32>
    %107 = vector.shape_cast %106 : vector<16x16x4xf32> to vector<256x4xf32>
    %c7_122 = arith.constant 7 : index
    %c0_123 = arith.constant 0 : index
    %c0_124 = arith.constant 0 : index
    %108 = vector.load %arg4[%c7_122, %c0_123, %c0_124] : memref<9x4x4xf32, #tpu.memory_space<vmem>>, vector<1x4x4xf32>
    %109 = vector.shape_cast %108 : vector<1x4x4xf32> to vector<4x4xf32>
    %cst_125 = arith.constant dense<0.000000e+00> : vector<256x4xf32>
    %110 = tpu.matmul %107, %109, %cst_125 {dimension_numbers = #tpu.dot_dimension_numbers<[1], [0], [0], [1], [0, 0, 1, 1], [], []>} : vector<256x4xf32>, vector<4x4xf32>, vector<256x4xf32> -> vector<256x4xf32>
    %111 = arith.addf %105, %110 : vector<256x4xf32>
    %c2_126 = arith.constant 2 : index
    %c2_127 = arith.constant 2 : index
    %c0_128 = arith.constant 0 : index
    %112 = vector.load %arg7[%c2_126, %c2_127, %c0_128] : memref<18x18x4xf32, #tpu.memory_space<vmem>>, vector<16x16x4xf32>
    %113 = vector.shape_cast %112 : vector<16x16x4xf32> to vector<256x4xf32>
    %c8_129 = arith.constant 8 : index
    %c0_130 = arith.constant 0 : index
    %c0_131 = arith.constant 0 : index
    %114 = vector.load %arg4[%c8_129, %c0_130, %c0_131] : memref<9x4x4xf32, #tpu.memory_space<vmem>>, vector<1x4x4xf32>
    %115 = vector.shape_cast %114 : vector<1x4x4xf32> to vector<4x4xf32>
    %cst_132 = arith.constant dense<0.000000e+00> : vector<256x4xf32>
    %116 = tpu.matmul %113, %115, %cst_132 {dimension_numbers = #tpu.dot_dimension_numbers<[1], [0], [0], [1], [0, 0, 1, 1], [], []>} : vector<256x4xf32>, vector<4x4xf32>, vector<256x4xf32> -> vector<256x4xf32>
    %117 = arith.addf %111, %116 : vector<256x4xf32>
    %c0_133 = arith.constant 0 : index
    %c0_134 = arith.constant 0 : index
    %118 = vector.load %arg5[%c0_133, %c0_134] : memref<1x4xf32, #tpu.memory_space<vmem>>, vector<1x4xf32>
    %119 = vector.broadcast %118 : vector<1x4xf32> to vector<256x4xf32>
    %120 = arith.addf %117, %119 : vector<256x4xf32>
    %121 = vector.shape_cast %1 : vector<16x16x4xf32> to vector<256x4xf32>
    %122 = arith.addf %120, %121 : vector<256x4xf32>
    %cst_135 = arith.constant 0.000000e+00 : f32
    %123 = vector.broadcast %cst_135 : f32 to vector<256x4xf32>
    %124 = arith.maximumf %122, %123 : vector<256x4xf32>
    %125 = vector.shape_cast %124 : vector<256x4xf32> to vector<16x16x4xf32>
    %c0_136 = arith.constant 0 : index
    %c0_137 = arith.constant 0 : index
    %c0_138 = arith.constant 0 : index
    %c0_139 = arith.constant 0 : index
    %126 = vector.load %arg6[%c0_136, %c0_137, %c0_138, %c0_139] : memref<1x16x16x4xf32, #tpu.memory_space<vmem>>, vector<1x16x16x4xf32>
    %127 = vector.shape_cast %126 : vector<1x16x16x4xf32> to vector<16x16x4xf32>
    %128 = vector.shape_cast %125 : vector<16x16x4xf32> to vector<1x16x16x4xf32>
    tpu.vector_store %arg6[%c0_136, %c0_137, %c0_138, %c0_139], %128 {strides = array<i32>} : memref<1x16x16x4xf32, #tpu.memory_space<vmem>>, vector<1x16x16x4xf32>,
    return
  }
  func.func @transform_0(%arg0: i32) -> (i32, i32, i32, i32) {
    %c0_i32 = arith.constant 0 : i32
    %c0_i32_0 = arith.constant 0 : i32
    %c0_i32_1 = arith.constant 0 : i32
    %c0_i32_2 = arith.constant 0 : i32
    return %arg0, %c0_i32, %c0_i32_0, %c0_i32_1 : i32, i32, i32, i32
  }
  func.func @transform_1(%arg0: i32) -> (i32, i32, i32) {
    %c0_i32 = arith.constant 0 : i32
    %c0_i32_0 = arith.constant 0 : i32
    %c0_i32_1 = arith.constant 0 : i32
    %c0_i32_2 = arith.constant 0 : i32
    return %c0_i32, %c0_i32_0, %c0_i32_1 : i32, i32, i32
  }
  func.func @transform_2(%arg0: i32) -> (i32, i32) {
    %c0_i32 = arith.constant 0 : i32
    %c0_i32_0 = arith.constant 0 : i32
    %c0_i32_1 = arith.constant 0 : i32
    return %c0_i32, %c0_i32_0 : i32, i32
  }
  func.func @transform_3(%arg0: i32) -> (i32, i32, i32) {
    %c0_i32 = arith.constant 0 : i32
    %c0_i32_0 = arith.constant 0 : i32
    %c0_i32_1 = arith.constant 0 : i32
    %c0_i32_2 = arith.constant 0 : i32
    return %c0_i32, %c0_i32_0, %c0_i32_1 : i32, i32, i32
  }
  func.func @transform_4(%arg0: i32) -> (i32, i32) {
    %c0_i32 = arith.constant 0 : i32
    %c0_i32_0 = arith.constant 0 : i32
    %c0_i32_1 = arith.constant 0 : i32
    return %c0_i32, %c0_i32_0 : i32, i32
  }
  func.func @transform_5(%arg0: i32) -> (i32, i32, i32, i32) {
    %c0_i32 = arith.constant 0 : i32
    %c0_i32_0 = arith.constant 0 : i32
    %c0_i32_1 = arith.constant 0 : i32
    %c0_i32_2 = arith.constant 0 : i32
    return %arg0, %c0_i32, %c0_i32_0, %c0_i32_1 : i32, i32, i32, i32
  }
}

</mosaic_0001>

<bundles_post_ra>
// kernel: basic_block_forward.1
= control target key start
LH: loop header
LB: loop body
LE: loop exit
PB: predicated region body
PF: predicated region fallthrough
CT: control target
= control target key end

     0   :  { %s9698_s18 = smov 0   ;;  %s12967_s0 = inlined_call_operand.vmem [shape: f32[2,16,16,4], index: 0, kind: input, shape index: {}]   ;;  %s12968_s1 = inlined_call_operand.vmem [shape: f32[9,4,4], index: 1, kind: input, shape index: {}]   ;;  %s12969_s2 = inlined_call_operand.vmem [shape: f32[1,4], index: 2, kind: input, shape index: {}]   ;;  %s12970_s3 = inlined_call_operand.vmem [shape: f32[9,4,4], index: 3, kind: input, shape index: {}]   ;;  %s12971_s4 = inlined_call_operand.vmem [shape: f32[1,4], index: 4, kind: input, shape index: {}]   ;;  %s12972_s5 = inlined_call_operand.vmem [shape: f32[2,16,16,4], index: 5, kind: output, shape index: {}]  }
   0x1 LB: > { %s7531_s19 = sadd.s32 4294967295, %s9665_s18   ;;  %p7535_p0 = scmp.ge.s32.totalorder %s9665_s18, 1  ;;  %s9665_s18 = sphi %s9698_s18, %s15_s18  }
   0x2   : > { %p187_p1 = scmp.lt.s32.totalorder %s9665_s18, 3 }
   0x4   : > { %p188_p2 = pnand %p7535_p0, %p187_p1 }
   0x6   : > { %191 = sbr.rel (%p188_p2) target bundleno = 1032 (0x408), region = 40 }
   0xb   : > { %v7540_v0 = vld [vmem:[%s12968_s1 + $0x4] sm:$0xf]  ;;  %vm509_vm0 = vcmask 1043456   ;;  %v378_v1 = vld [vmem:[%s12968_s1] sm:$0xf]  ;;  %vm257_vm1 = vcmask 31744  }
   0xc   : > { %8750 = vmatprep.subr.msk.mxu0 %vm509_vm0, %v7540_v0  ;;  %8800 = vmatprep.subr.msk.mxu1 %vm509_vm0, %v378_v1  ;;  %vm260_vm2 = vcmask 25600   ;;  %v9717_v2 = vld [vmem:[%s12968_s1 + $0x8] sm:$0xf]  ;;  %p9721_p3 = scmp.lt.s32.totalorder %s7531_s19, 1  ;;  %v9667_v3 = vmov 0.0  }
   0xd   : > { %8751 = vmatpush3.msk.msra.mxu0 %vm509_vm0, %v7540_v0  ;;  %258 = vst.msk [vmem:[#allocation2] sm:$0xff] %vm257_vm1, %v9667_v3  ;;  %259 = vst.msk [vmem:[#allocation2 + $0x8] sm:$0xff] %vm257_vm1, %v9667_v3  ;;  %8801 = vmatpush3.msk.msra.mxu1 %vm509_vm0, %v378_v1  ;;  %v7641_v4 = vld [vmem:[%s12968_s1 + $0xc] sm:$0xf]  ;;  %v9828_v11 = vld [vmem:[%s12968_s1 + $0x10] sm:$0xf] }
   0xe   : > { %262 = vst.msk [vmem:[#allocation2 + $0x18] sm:$0xff] %vm257_vm1, %v9667_v3  ;;  %263 = vst.msk [vmem:[#allocation2 + $0x20] sm:$0xff] %vm257_vm1, %v9667_v3  ;;  %8850 = vmatprep.subr.msk.mxu0 %vm509_vm0, %v9717_v2  ;;  %s13564_s19 = smov (!%p9721_p3, %s7531_s19), 1  ;;  %8900 = vmatprep.subr.msk.mxu1 %vm509_vm0, %v7641_v4 }
   0xf   : > { %265 = vst.msk [vmem:[#allocation2 + $0x30] sm:$0xff] %vm257_vm1, %v9667_v3  ;;  %266 = vst.msk [vmem:[#allocation2 + $0x38] sm:$0xff] %vm257_vm1, %v9667_v3  ;;  %s8154_s29 = sshll.u32 %s13564_s19, 8 }
  0x10   : > { %268 = vst.msk [vmem:[#allocation2 + $0x48] sm:$0xff] %vm257_vm1, %v9667_v3  ;;  %269 = vst.msk [vmem:[#allocation2 + $0x50] sm:$0xff] %vm257_vm1, %v9667_v3  ;;  %s9799_s7 = scalar_lea.vmem %s12967_s0, %s8154_s29  ;;  %s12727_s22 = scalar_lea.vmem %s12972_s5, %s8154_s29 }
  0x11   : > { %271 = vst.msk [vmem:[#allocation2 + $0x60] sm:$0xff] %vm257_vm1, %v9667_v3  ;;  %272 = vst.msk [vmem:[#allocation2 + $0x68] sm:$0xff] %vm257_vm1, %v9667_v3  ;;  %v9802_v5 = vld [vmem:[%s9799_s7] sm:$0xff]  ;;  %v9805_v6 = vld [vmem:[%s9799_s7 + $0x8] sm:$0xff] }
  0x12   : > { %274 = vst.msk [vmem:[#allocation2 + $0x78] sm:$0xff] %vm257_vm1, %v9667_v3  ;;  %275 = vst.msk [vmem:[#allocation2 + $0x80] sm:$0xff] %vm257_vm1, %v9667_v3  ;;  %v9808_v7 = vld [vmem:[%s9799_s7 + $0x10] sm:$0xff]  ;;  %v9817_v8 = vld [vmem:[%s9799_s7 + $0x18] sm:$0xff] }
  0x13   : > { %277 = vst.msk [vmem:[#allocation2 + $0x90] sm:$0xff] %vm257_vm1, %v9667_v3  ;;  %278 = vst.msk [vmem:[#allocation2 + $0x98] sm:$0xff] %vm257_vm1, %v9667_v3  ;;  %v9820_v9 = vld [vmem:[%s9799_s7 + $0x20] sm:$0xff]  ;;  %v9823_v10 = vld [vmem:[%s9799_s7 + $0x28] sm:$0xff] }
  0x14   : > { %280 = vst.msk [vmem:[#allocation2 + $0xa8] sm:$0xff] %vm257_vm1, %v9667_v3  ;;  %281 = vst.msk [vmem:[#allocation2 + $0xb0] sm:$0xff] %vm257_vm1, %v9667_v3  ;;  %v379_v12 = vld [vmem:[#allocation2 + $0x1] sm:$0xff]  ;;  %v9839_v16 = vld [vmem:[%s9799_s7 + $0x30] sm:$0xff] }
  0x15   : > { %283 = vst.msk [vmem:[#allocation2 + $0xc0] sm:$0xff] %vm257_vm1, %v9667_v3  ;;  %284 = vst.msk [vmem:[#allocation2 + $0xc8] sm:$0xff] %vm257_vm1, %v9667_v3  ;;  %v346_v13 = vld [vmem:[#allocation2] sm:$0xff]  ;;  %8752 = vmatprep.mubr.msk.f32.mxu0 %vm257_vm1, %v379_v12  ;;  %v347_v15 = vld [vmem:[#allocation2 + $0x8] sm:$0xff] }
  0x16   : > { %286 = vst.msk [vmem:[#allocation2 + $0xd8] sm:$0xff] %vm257_vm1, %v9667_v3  ;;  %287 = vst.msk [vmem:[#allocation2 + $0xe0] sm:$0xff] %vm257_vm1, %v9667_v3  ;;  %8802 = vmatprep.mubr.msk.f32.mxu1 %vm257_vm1, %v346_v13  ;;  %v9842_v17 = vld [vmem:[%s9799_s7 + $0x38] sm:$0xff]  ;;  %v9851_v18 = vld [vmem:[%s9799_s7 + $0x40] sm:$0xff] }
  0x17   : > { %289 = vst.msk [vmem:[#allocation2 + $0xf0] sm:$0xff] %vm257_vm1, %v9667_v3  ;;  %290 = vst.msk [vmem:[#allocation2 + $0xf8] sm:$0xff] %vm257_vm1, %v9667_v3  ;;  %8803 = vmatmul.mubr.msk.f32.vlgmr.msra.gmra.mxu1 %vm257_vm1, %v347_v15  ;;  %v9854_v19 = vld [vmem:[%s9799_s7 + $0x48] sm:$0xff]  ;;  %v9857_v20 = vld [vmem:[%s9799_s7 + $0x50] sm:$0xff] }
  0x18   : > { %292 = vst.msk [vmem:[#allocation2 + $0x108] sm:$0xff] %vm257_vm1, %v9667_v3  ;;  %293 = vst.msk [vmem:[#allocation2 + $0x110] sm:$0xff] %vm257_vm1, %v9667_v3  ;;  %v9868_v21 = vld [vmem:[%s9799_s7 + $0x58] sm:$0xff]  ;;  %v9871_v22 = vld [vmem:[%s9799_s7 + $0x60] sm:$0xff]  ;;  %8901 = vmatpush3.msk.msra.mxu1 %vm509_vm0, %v7641_v4 }
  0x19   : > { %295 = vst.msk [vmem:[#allocation2 + $0x120] sm:$0xff] %vm257_vm1, %v9667_v3  ;;  %296 = vst.msk [vmem:[#allocation2 + $0x128] sm:$0xff] %vm257_vm1, %v9667_v3  ;;  %v9874_v23 = vld [vmem:[%s9799_s7 + $0x68] sm:$0xff]  ;;  %v9884_v24 = vld [vmem:[%s9799_s7 + $0x70] sm:$0xff] }
  0x1a   : > { %298 = vst.msk [vmem:[#allocation2 + $0x138] sm:$0xff] %vm257_vm1, %v9667_v3  ;;  %299 = vst.msk [vmem:[#allocation2 + $0x140] sm:$0xff] %vm257_vm1, %v9667_v3  ;;  %v9887_v25 = vld [vmem:[%s9799_s7 + $0x78] sm:$0xff]  ;;  %v9890_v26 = vld [vmem:[%s9799_s7 + $0x80] sm:$0xff] }
  0x1b   : > { %301 = vst.msk [vmem:[#allocation2 + $0x150] sm:$0xff] %vm257_vm1, %v9667_v3  ;;  %302 = vst.msk [vmem:[#allocation2 + $0x158] sm:$0xff] %vm257_vm1, %v9667_v3  ;;  %v9901_v27 = vld [vmem:[%s9799_s7 + $0x88] sm:$0xff]  ;;  %v9904_v28 = vld [vmem:[%s9799_s7 + $0x90] sm:$0xff] }
  0x1c   : > { %304 = vst.msk [vmem:[#allocation2 + $0x168] sm:$0xff] %vm257_vm1, %v9667_v3  ;;  %305 = vst.msk [vmem:[#allocation2 + $0x170] sm:$0xff] %vm257_vm1, %v9667_v3  ;;  %v9907_v29 = vld [vmem:[%s9799_s7 + $0x98] sm:$0xff]  ;;  %v9984_v50 = vld [vmem:[%s9799_s7 + $0xa0] sm:$0xff] }
  0x1d   : > { %307 = vst.msk [vmem:[#allocation2 + $0x180] sm:$0xff] %vm257_vm1, %v9667_v3  ;;  %308 = vst.msk [vmem:[#allocation2 + $0x188] sm:$0xff] %vm257_vm1, %v9667_v3  ;;  %v9987_v51 = vld [vmem:[%s9799_s7 + $0xa8] sm:$0xff]  ;;  %v10000_v53 = vld [vmem:[%s9799_s7 + $0xb0] sm:$0xff] }
  0x1e   : > { %310 = vst.msk [vmem:[#allocation2 + $0x198] sm:$0xff] %vm257_vm1, %v9667_v3  ;;  %311 = vst.msk [vmem:[#allocation2 + $0x1a0] sm:$0xff] %vm257_vm1, %v9667_v3  ;;  %v10003_v54 = vld [vmem:[%s9799_s7 + $0xb8] sm:$0xff]  ;;  %v10006_v55 = vld [vmem:[%s9799_s7 + $0xc0] sm:$0xff] }
  0x1f   : > { %261 = vst.msk [vmem:[#allocation2 + $0x10] sm:$0x3] %vm260_vm2, %v9667_v3  ;;  %264 = vst.msk [vmem:[#allocation2 + $0x28] sm:$0x3] %vm260_vm2, %v9667_v3  ;;  %v10019_v56 = vld [vmem:[%s9799_s7 + $0xc8] sm:$0xff]  ;;  %v10022_v57 = vld [vmem:[%s9799_s7 + $0xd0] sm:$0xff] }
  0x20   : > { %267 = vst.msk [vmem:[#allocation2 + $0x40] sm:$0x3] %vm260_vm2, %v9667_v3  ;;  %270 = vst.msk [vmem:[#allocation2 + $0x58] sm:$0x3] %vm260_vm2, %v9667_v3  ;;  %v10025_v58 = vld [vmem:[%s9799_s7 + $0xd8] sm:$0xff]  ;;  %v10036_v60 = vld [vmem:[%s9799_s7 + $0xe0] sm:$0xff] }
  0x21   : > { %273 = vst.msk [vmem:[#allocation2 + $0x70] sm:$0x3] %vm260_vm2, %v9667_v3  ;;  %276 = vst.msk [vmem:[#allocation2 + $0x88] sm:$0x3] %vm260_vm2, %v9667_v3  ;;  %v10039_v61 = vld [vmem:[%s9799_s7 + $0xe8] sm:$0xff] }
  0x22   : > { %279 = vst.msk [vmem:[#allocation2 + $0xa0] sm:$0x3] %vm260_vm2, %v9667_v3  ;;  %282 = vst.msk [vmem:[#allocation2 + $0xb8] sm:$0x3] %vm260_vm2, %v9667_v3 }
  0x23   : > { %285 = vst.msk [vmem:[#allocation2 + $0xd0] sm:$0x3] %vm260_vm2, %v9667_v3  ;;  %288 = vst.msk [vmem:[#allocation2 + $0xe8] sm:$0x3] %vm260_vm2, %v9667_v3 }
  0x24   : > { %291 = vst.msk [vmem:[#allocation2 + $0x100] sm:$0x3] %vm260_vm2, %v9667_v3  ;;  %294 = vst.msk [vmem:[#allocation2 + $0x118] sm:$0x3] %vm260_vm2, %v9667_v3 }
  0x25   : > { %297 = vst.msk [vmem:[#allocation2 + $0x130] sm:$0x3] %vm260_vm2, %v9667_v3  ;;  %300 = vst.msk [vmem:[#allocation2 + $0x148] sm:$0x3] %vm260_vm2, %v9667_v3 }
  0x26   : > { %303 = vst.msk [vmem:[#allocation2 + $0x160] sm:$0x3] %vm260_vm2, %v9667_v3  ;;  %306 = vst.msk [vmem:[#allocation2 + $0x178] sm:$0x3] %vm260_vm2, %v9667_v3  ;;  %v380_v14 = vld [vmem:[#allocation2 + $0x9] sm:$0xff] }
  0x27   : > { %309 = vst.msk [vmem:[#allocation2 + $0x190] sm:$0x3] %vm260_vm2, %v9667_v3  ;;  %312 = vst.msk [vmem:[#allocation2 + $0x1a8] sm:$0x3] %vm260_vm2, %v9667_v3  ;;  %8753 = vmatmul.mubr.msk.f32.vlgmr.msra.gmra.mxu0 %vm257_vm1, %v380_v14 }
  0x28   : > { %13071 = vst [vmem:[#allocation3_spill] sm:$0xff] %v9802_v5  ;;  %13072 = vst [vmem:[#allocation4_spill] sm:$0xff] %v9805_v6  ;;  %8851 = vmatpush3.msk.msra.mxu0 %vm509_vm0, %v9717_v2 }
  0x29   : > { %13073 = vst [vmem:[#allocation5_spill] sm:$0xff] %v9808_v7  ;;  %314 = vst.msk [vmem:[#allocation2 + $0x19] sm:$0xff] %vm257_vm1, %v9802_v5  ;;  %8950 = vmatprep.subr.msk.mxu0 %vm509_vm0, %v9828_v11  ;;  %v1062_v5 = vld [vmem:[#allocation2 + $0x2] sm:$0xff] }
  0x2a   : > { %315 = vst.msk [vmem:[#allocation2 + $0x21] sm:$0xff] %vm257_vm1, %v9805_v6  ;;  %316 = vst.msk [vmem:[#allocation2 + $0x31] sm:$0xff] %vm257_vm1, %v9808_v7  ;;  %v1063_v6 = vld [vmem:[#allocation2 + $0xa] sm:$0xff] }
  0x2b   : > { %13074 = vst [vmem:[#allocation6_spill] sm:$0xff] %v9817_v8  ;;  %13075 = vst [vmem:[#allocation7_spill] sm:$0xff] %v9820_v9 }
  0x2c   : > { %13076 = vst [vmem:[#allocation8_spill] sm:$0xff] %v9823_v10  ;;  %317 = vst.msk [vmem:[#allocation2 + $0x39] sm:$0xff] %vm257_vm1, %v9817_v8 }
  0x2d   : > { %318 = vst.msk [vmem:[#allocation2 + $0x49] sm:$0xff] %vm257_vm1, %v9820_v9  ;;  %319 = vst.msk [vmem:[#allocation2 + $0x51] sm:$0xff] %vm257_vm1, %v9823_v10 }
  0x2e   : > { %13077 = vst [vmem:[#allocation9_spill] sm:$0xff] %v9839_v16  ;;  %13078 = vst [vmem:[#allocation10_spill] sm:$0xff] %v9842_v17 }
  0x2f   : > { %320 = vst.msk [vmem:[#allocation2 + $0x61] sm:$0xff] %vm257_vm1, %v9839_v16  ;;  %321 = vst.msk [vmem:[#allocation2 + $0x69] sm:$0xff] %vm257_vm1, %v9842_v17 }
  0x30   : > { %13079 = vst [vmem:[#allocation11_spill] sm:$0xff] %v9851_v18  ;;  %13080 = vst [vmem:[#allocation12_spill] sm:$0xff] %v9854_v19  ;;  %v9909_v30 = vld [vmem:[#allocation2 + $0x19] sm:$0xff] }
  0x31   : > { %13081 = vst [vmem:[#allocation13_spill] sm:$0xff] %v9857_v20  ;;  %322 = vst.msk [vmem:[#allocation2 + $0x79] sm:$0xff] %vm257_vm1, %v9851_v18  ;;  %v9911_v31 = vld [vmem:[#allocation2 + $0x18] sm:$0xff]  ;;  %v9913_v32 = vld [vmem:[#allocation2 + $0x21] sm:$0xff]  ;;  %8755 = vmatprep.mubr.msk.f32.mxu0 %vm257_vm1, %v9909_v30 }
  0x32   : > { %323 = vst.msk [vmem:[#allocation2 + $0x81] sm:$0xff] %vm257_vm1, %v9854_v19  ;;  %324 = vst.msk [vmem:[#allocation2 + $0x91] sm:$0xff] %vm257_vm1, %v9857_v20  ;;  %8805 = vmatprep.mubr.msk.f32.mxu1 %vm257_vm1, %v9911_v31  ;;  %v9925_v33 = vld [vmem:[#allocation2 + $0x20] sm:$0xff]  ;;  %v9927_v34 = vld [vmem:[#allocation2 + $0x31] sm:$0xff]  ;;  %8756 = vmatmul.mubr.msk.f32.gmra.mxu0 %vm257_vm1, %v9913_v32 }
  0x33   : > { %13082 = vst [vmem:[#allocation14_spill] sm:$0xff] %v9868_v21  ;;  %13083 = vst [vmem:[#allocation15_spill] sm:$0xff] %v9871_v22  ;;  %v9929_v35 = vld [vmem:[#allocation2 + $0x30] sm:$0xff]  ;;  %8806 = vmatmul.mubr.msk.f32.gmra.mxu1 %vm257_vm1, %v9925_v33  ;;  %8758 = vmatprep.mubr.msk.f32.mxu0 %vm257_vm1, %v9927_v34  ;;  %v9939_v36 = vld [vmem:[#allocation2 + $0x39] sm:$0xff] }
  0x34   : > { %13084 = vst [vmem:[#allocation16_spill] sm:$0xff] %v9874_v23  ;;  %325 = vst.msk [vmem:[#allocation2 + $0x99] sm:$0xff] %vm257_vm1, %v9868_v21  ;;  %8808 = vmatprep.mubr.msk.f32.mxu1 %vm257_vm1, %v9929_v35  ;;  %v9941_v37 = vld [vmem:[#allocation2 + $0x38] sm:$0xff]  ;;  %v9943_v38 = vld [vmem:[#allocation2 + $0x49] sm:$0xff] }
  0x35   : > { %326 = vst.msk [vmem:[#allocation2 + $0xa9] sm:$0xff] %vm257_vm1, %v9871_v22  ;;  %327 = vst.msk [vmem:[#allocation2 + $0xb1] sm:$0xff] %vm257_vm1, %v9874_v23  ;;  %v9945_v39 = vld [vmem:[#allocation2 + $0x48] sm:$0xff]  ;;  %v9955_v40 = vld [vmem:[#allocation2 + $0x51] sm:$0xff] }
  0x36   : > { %13085 = vst [vmem:[#allocation17_spill] sm:$0xff] %v9884_v24  ;;  %13086 = vst [vmem:[#allocation18_spill] sm:$0xff] %v9887_v25  ;;  %8759 = vmatmul.mubr.msk.f32.gmra.mxu0 %vm257_vm1, %v9939_v36  ;;  %v9957_v41 = vld [vmem:[#allocation2 + $0x50] sm:$0xff]  ;;  %v9959_v42 = vld [vmem:[#allocation2 + $0x61] sm:$0xff] }
  0x37   : > { %13087 = vst [vmem:[#allocation19_spill] sm:$0xff] %v9890_v26  ;;  %328 = vst.msk [vmem:[#allocation2 + $0xc1] sm:$0xff] %vm257_vm1, %v9884_v24  ;;  %8809 = vmatmul.mubr.msk.f32.gmra.mxu1 %vm257_vm1, %v9941_v37  ;;  %8761 = vmatprep.mubr.msk.f32.mxu0 %vm257_vm1, %v9943_v38  ;;  %v9961_v43 = vld [vmem:[#allocation2 + $0x60] sm:$0xff]  ;;  %v9971_v44 = vld [vmem:[#allocation2 + $0x69] sm:$0xff] }
  0x38   : > { %329 = vst.msk [vmem:[#allocation2 + $0xc9] sm:$0xff] %vm257_vm1, %v9887_v25  ;;  %330 = vst.msk [vmem:[#allocation2 + $0xd9] sm:$0xff] %vm257_vm1, %v9890_v26  ;;  %8811 = vmatprep.mubr.msk.f32.mxu1 %vm257_vm1, %v9945_v39  ;;  %v9973_v45 = vld [vmem:[#allocation2 + $0x68] sm:$0xff]  ;;  %v9975_v46 = vld [vmem:[#allocation2 + $0x79] sm:$0xff] }
  0x39   : > { %13088 = vst [vmem:[#allocation20_spill] sm:$0xff] %v9901_v27  ;;  %13089 = vst [vmem:[#allocation21_spill] sm:$0xff] %v9904_v28  ;;  %v9977_v47 = vld [vmem:[#allocation2 + $0x78] sm:$0xff]  ;;  %v9979_v48 = vld [vmem:[#allocation2 + $0x81] sm:$0xff] }
  0x3a   : > { %13090 = vst [vmem:[#allocation22_spill] sm:$0xff] %v9907_v29  ;;  %331 = vst.msk [vmem:[#allocation2 + $0xe1] sm:$0xff] %vm257_vm1, %v9901_v27  ;;  %8762 = vmatmul.mubr.msk.f32.gmra.mxu0 %vm257_vm1, %v9955_v40  ;;  %v9981_v49 = vld [vmem:[#allocation2 + $0x80] sm:$0xff]  ;;  %v9993_v52 = vld [vmem:[#allocation2 + $0x91] sm:$0xff] }
  0x3b   : > { %332 = vst.msk [vmem:[#allocation2 + $0xf1] sm:$0xff] %vm257_vm1, %v9904_v28  ;;  %333 = vst.msk [vmem:[#allocation2 + $0xf9] sm:$0xff] %vm257_vm1, %v9907_v29  ;;  %8812 = vmatmul.mubr.msk.f32.gmra.mxu1 %vm257_vm1, %v9957_v41  ;;  %8764 = vmatprep.mubr.msk.f32.mxu0 %vm257_vm1, %v9959_v42  ;;  %v10027_v59 = vld [vmem:[#allocation2 + $0x90] sm:$0xff]  ;;  %v10053_v62 = vld [vmem:[#allocation2 + $0x99] sm:$0xff] }
  0x3c   : > { %13091 = vst [vmem:[#allocation23_spill] sm:$0xff] %v9929_v35  ;;  %13092 = vst [vmem:[#allocation24_spill] sm:$0xff] %v9941_v37  ;;  %8814 = vmatprep.mubr.msk.f32.mxu1 %vm257_vm1, %v9961_v43  ;;  %v10055_v63 = vld [vmem:[#allocation2 + $0x98] sm:$0xff]  ;;  %v10057_v0 = vld [vmem:[#allocation2 + $0xa9] sm:$0xff] }
  0x3d   : > { %13093 = vst [vmem:[#allocation25_spill] sm:$0xff] %v9945_v39  ;;  %13094 = vst [vmem:[#allocation26_spill] sm:$0xff] %v9957_v41  ;;  %v10059_v1 = vld [vmem:[#allocation2 + $0xa8] sm:$0xff]  ;;  %v10069_v2 = vld [vmem:[#allocation2 + $0xb1] sm:$0xff] }
  0x3e   : > { %13095 = vst [vmem:[#allocation27_spill] sm:$0xff] %v9961_v43  ;;  %13096 = vst [vmem:[#allocation28_spill] sm:$0xff] %v9973_v45  ;;  %8765 = vmatmul.mubr.msk.f32.gmra.mxu0 %vm257_vm1, %v9971_v44  ;;  %v10071_v3 = vld [vmem:[#allocation2 + $0xb0] sm:$0xff]  ;;  %v10073_v4 = vld [vmem:[#allocation2 + $0xc1] sm:$0xff] }
  0x3f   : > { %13097 = vst [vmem:[#allocation29_spill] sm:$0xff] %v9977_v47  ;;  %13098 = vst [vmem:[#allocation30_spill] sm:$0xff] %v9981_v49  ;;  %8815 = vmatmul.mubr.msk.f32.gmra.mxu1 %vm257_vm1, %v9973_v45  ;;  %8767 = vmatprep.mubr.msk.f32.mxu0 %vm257_vm1, %v9975_v46  ;;  %v10075_v12 = vld [vmem:[#allocation2 + $0xc0] sm:$0xff]  ;;  %v10085_v13 = vld [vmem:[#allocation2 + $0xc9] sm:$0xff] }
  0x40   : > { %13099 = vst [vmem:[#allocation31_spill] sm:$0xff] %v9984_v50  ;;  %13100 = vst [vmem:[#allocation32_spill] sm:$0xff] %v9987_v51  ;;  %8817 = vmatprep.mubr.msk.f32.mxu1 %vm257_vm1, %v9977_v47  ;;  %v10087_v14 = vld [vmem:[#allocation2 + $0xc8] sm:$0xff]  ;;  %v10089_v15 = vld [vmem:[#allocation2 + $0xd9] sm:$0xff] }
  0x41   : > { %334 = vst.msk [vmem:[#allocation2 + $0x109] sm:$0xff] %vm257_vm1, %v9984_v50  ;;  %335 = vst.msk [vmem:[#allocation2 + $0x111] sm:$0xff] %vm257_vm1, %v9987_v51 }
  0x42   : > { %13101 = vst [vmem:[#allocation33_spill] sm:$0xff] %v10000_v53  ;;  %13102 = vst [vmem:[#allocation34_spill] sm:$0xff] %v10003_v54  ;;  %8768 = vmatmul.mubr.msk.f32.gmra.mxu0 %vm257_vm1, %v9979_v48  ;;  %v10128_v50 = vld [vmem:[#allocation2 + $0xf9] sm:$0xff] }
  0x43   : > { %13103 = vst [vmem:[#allocation35_spill] sm:$0xff] %v10006_v55  ;;  %336 = vst.msk [vmem:[#allocation2 + $0x121] sm:$0xff] %vm257_vm1, %v10000_v53  ;;  %8818 = vmatmul.mubr.msk.f32.gmra.mxu1 %vm257_vm1, %v9981_v49  ;;  %8770 = vmatprep.mubr.msk.f32.mxu0 %vm257_vm1, %v9993_v52  ;;  %v10119_v53 = vld [vmem:[%s12968_s1 + $0x14] sm:$0xf]  ;;  %v10130_v51 = vld [vmem:[#allocation2 + $0xf8] sm:$0xff] }
  0x44   : > { %337 = vst.msk [vmem:[#allocation2 + $0x129] sm:$0xff] %vm257_vm1, %v10003_v54  ;;  %338 = vst.msk [vmem:[#allocation2 + $0x139] sm:$0xff] %vm257_vm1, %v10006_v55  ;;  %8820 = vmatprep.mubr.msk.f32.mxu1 %vm257_vm1, %v10027_v59  ;;  %v10107_v55 = vld [vmem:[#allocation2 + $0xf0] sm:$0xff]  ;;  %v10122_v54 = vld [vmem:[%s9799_s7 + $0xf8] sm:$0xff]  ;;  %9000 = vmatprep.subr.msk.mxu1 %vm509_vm0, %v10119_v53 }
  0x45   : > { %13104 = vst [vmem:[#allocation36_spill] sm:$0xff] %v10019_v56  ;;  %13105 = vst [vmem:[#allocation37_spill] sm:$0xff] %v10022_v57 }
  0x46   : > { %13106 = vst [vmem:[#allocation38_spill] sm:$0xff] %v10025_v58  ;;  %13107 = vst [vmem:[#allocation39_spill] sm:$0xff] %v10027_v59  ;;  %8771 = vmatmul.mubr.msk.f32.gmra.mxu0 %vm257_vm1, %v10053_v62 }
  0x47   : > { %339 = vst.msk [vmem:[#allocation2 + $0x141] sm:$0xff] %vm257_vm1, %v10019_v56  ;;  %340 = vst.msk [vmem:[#allocation2 + $0x151] sm:$0xff] %vm257_vm1, %v10022_v57  ;;  %8821 = vmatmul.mubr.msk.f32.gmra.mxu1 %vm257_vm1, %v10055_v63  ;;  %8773 = vmatprep.mubr.msk.f32.mxu0 %vm257_vm1, %v10057_v0  ;;  %v10103_v57 = vld [vmem:[#allocation2 + $0xe0] sm:$0xff]  ;;  %v10114_v56 = vld [vmem:[%s9799_s7 + $0xf0] sm:$0xff] }
  0x48   : > { %341 = vst.msk [vmem:[#allocation2 + $0x159] sm:$0xff] %vm257_vm1, %v10025_v58  ;;  %13108 = vst [vmem:[#allocation40_spill] sm:$0xff] %v10036_v60  ;;  %8823 = vmatprep.mubr.msk.f32.mxu1 %vm257_vm1, %v10059_v1  ;;  %v10105_v58 = vld [vmem:[#allocation2 + $0xf1] sm:$0xff]  ;;  %v10136_v28 = vld [vmem:[#allocation2 + $0x109] sm:$0xff] }
  0x49   : > { %13109 = vst [vmem:[#allocation41_spill] sm:$0xff] %v10039_v61  ;;  %342 = vst.msk [vmem:[#allocation2 + $0x169] sm:$0xff] %vm257_vm1, %v10036_v60  ;;  %v10091_v60 = vld [vmem:[#allocation2 + $0xd8] sm:$0xff]  ;;  %v10138_v29 = vld [vmem:[#allocation2 + $0x108] sm:$0xff] }
  0x4a   : > { %343 = vst.msk [vmem:[#allocation2 + $0x171] sm:$0xff] %vm257_vm1, %v10039_v61  ;;  %13110 = vst [vmem:[#allocation42_spill] sm:$0xff] %v10055_v63  ;;  %8774 = vmatmul.mubr.msk.f32.gmra.mxu0 %vm257_vm1, %v10069_v2  ;;  %v10101_v61 = vld [vmem:[#allocation2 + $0xe1] sm:$0xff] }
  0x4b   : > { %13111 = vst [vmem:[#allocation43_spill] sm:$0xff] %v10059_v1  ;;  %13112 = vst [vmem:[#allocation44_spill] sm:$0xff] %v10071_v3  ;;  %8824 = vmatmul.mubr.msk.f32.gmra.mxu1 %vm257_vm1, %v10071_v3  ;;  %8776 = vmatprep.mubr.msk.f32.mxu0 %vm257_vm1, %v10073_v4  ;;  %v10154_v26 = vld [vmem:[#allocation2 + $0x121] sm:$0xff]  ;;  %v10166_v24 = vld [vmem:[#allocation2 + $0x129] sm:$0xff] }
  0x4c   : > { %13113 = vst [vmem:[#allocation45_spill] sm:$0xff] %v10075_v12  ;;  %8826 = vmatprep.mubr.msk.f32.mxu1 %vm257_vm1, %v10075_v12  ;;  %13114 = vst [vmem:[#allocation46_spill] sm:$0xff] %v10087_v14  ;;  %v10156_v27 = vld [vmem:[#allocation2 + $0x120] sm:$0xff]  ;;  %v10168_v25 = vld [vmem:[#allocation2 + $0x128] sm:$0xff] }
  0x4d   : > { %13115 = vst [vmem:[#allocation47_spill] sm:$0xff] %v10091_v60  ;;  %13116 = vst [vmem:[#allocation48_spill] sm:$0xff] %v10103_v57  ;;  %v10170_v22 = vld [vmem:[#allocation2 + $0x139] sm:$0xff] }
  0x4e   : > { %8777 = vmatmul.mubr.msk.f32.gmra.mxu0 %vm257_vm1, %v10085_v13  ;;  %13117 = vst [vmem:[#allocation49_spill] sm:$0xff] %v10107_v55  ;;  %13118 = vst [vmem:[#allocation50_spill] sm:$0xff] %v10114_v56  ;;  %v10172_v23 = vld [vmem:[#allocation2 + $0x138] sm:$0xff]  ;;  %v10182_v20 = vld [vmem:[#allocation2 + $0x141] sm:$0xff] }
  0x4f   : > { %8827 = vmatmul.mubr.msk.f32.gmra.mxu1 %vm257_vm1, %v10087_v14  ;;  %8779 = vmatprep.mubr.msk.f32.mxu0 %vm257_vm1, %v10089_v15  ;;  %13119 = vst [vmem:[#allocation51_spill] sm:$0xff] %v10122_v54  ;;  %13120 = vst [vmem:[#allocation52_spill] sm:$0xff] %v10130_v51  ;;  %v10184_v21 = vld [vmem:[#allocation2 + $0x140] sm:$0xff]  ;;  %v10186_v18 = vld [vmem:[#allocation2 + $0x151] sm:$0xff] }
  0x50   : > { %8829 = vmatprep.mubr.msk.f32.mxu1 %vm257_vm1, %v10091_v60  ;;  %344 = vst.msk [vmem:[#allocation2 + $0x181] sm:$0xff] %vm257_vm1, %v10114_v56  ;;  %345 = vst.msk [vmem:[#allocation2 + $0x189] sm:$0xff] %vm257_vm1, %v10122_v54  ;;  %v10150_v56 = vld [vmem:[#allocation2 + $0x111] sm:$0xff]  ;;  %v10198_v16 = vld [vmem:[#allocation2 + $0x159] sm:$0xff] }
  0x51   : > { %13121 = vst [vmem:[#allocation53_spill] sm:$0xff] %v10138_v29  ;;  %v10152_v54 = vld [vmem:[#allocation2 + $0x110] sm:$0xff]  ;;  %13123 = vst [vmem:[#allocation55_spill] sm:$0xff] %v10156_v27  ;;  %v10200_v17 = vld [vmem:[#allocation2 + $0x158] sm:$0xff] }
  0x52   : > { %8780 = vmatmul.mubr.msk.f32.gmra.mxu0 %vm257_vm1, %v10101_v61  ;;  %13122 = vst [vmem:[#allocation54_spill] sm:$0xff] %v10152_v54  ;;  %13124 = vst [vmem:[#allocation56_spill] sm:$0xff] %v10168_v25  ;;  %v10188_v19 = vld [vmem:[#allocation2 + $0x150] sm:$0xff]  ;;  %v10204_v10 = vld [vmem:[#allocation2 + $0x168] sm:$0xff] }
  0x53   : > { %8830 = vmatmul.mubr.msk.f32.gmra.mxu1 %vm257_vm1, %v10103_v57  ;;  %8782 = vmatprep.mubr.msk.f32.mxu0 %vm257_vm1, %v10105_v58  ;;  %13125 = vst [vmem:[#allocation57_spill] sm:$0xff] %v10172_v23  ;;  %13126 = vst [vmem:[#allocation58_spill] sm:$0xff] %v10184_v21  ;;  %v10202_v9 = vld [vmem:[#allocation2 + $0x169] sm:$0xff]  ;;  %v10214_v7 = vld [vmem:[#allocation2 + $0x171] sm:$0xff] }
  0x54   : > { %8832 = vmatprep.mubr.msk.f32.mxu1 %vm257_vm1, %v10107_v55  ;;  %13127 = vst [vmem:[#allocation59_spill] sm:$0xff] %v10188_v19  ;;  %13128 = vst [vmem:[#allocation60_spill] sm:$0xff] %v10200_v17  ;;  %v10216_v8 = vld [vmem:[#allocation2 + $0x170] sm:$0xff] }
  0x55   : > { %13129 = vst [vmem:[#allocation61_spill] sm:$0xff] %v10202_v9  ;;  %13130 = vst [vmem:[#allocation62_spill] sm:$0xff] %v10214_v7 }
  0x56   : > { %8783 = vmatmul.mubr.msk.f32.gmra.mxu0 %vm257_vm1, %v10128_v50 }
  0x57   : > { %8833 = vmatmul.mubr.msk.f32.gmra.mxu1 %vm257_vm1, %v10130_v51  ;;  %8785 = vmatprep.mubr.msk.f32.mxu0 %vm257_vm1, %v10136_v28 }
  0x58   : > { %8835 = vmatprep.mubr.msk.f32.mxu1 %vm257_vm1, %v10138_v29 }
  0x5a   : > { %8786 = vmatmul.mubr.msk.f32.gmra.mxu0 %vm257_vm1, %v10150_v56 }
  0x5b   : > { %8836 = vmatmul.mubr.msk.f32.gmra.mxu1 %vm257_vm1, %v10152_v54  ;;  %8788 = vmatprep.mubr.msk.f32.mxu0 %vm257_vm1, %v10154_v26 }
  0x5c   : > { %8838 = vmatprep.mubr.msk.f32.mxu1 %vm257_vm1, %v10156_v27 }
  0x5e   : > { %8789 = vmatmul.mubr.msk.f32.gmra.mxu0 %vm257_vm1, %v10166_v24 }
  0x5f   : > { %8839 = vmatmul.mubr.msk.f32.gmra.mxu1 %vm257_vm1, %v10168_v25  ;;  %8791 = vmatprep.mubr.msk.f32.mxu0 %vm257_vm1, %v10170_v22 }
  0x60   : > { %8841 = vmatprep.mubr.msk.f32.mxu1 %vm257_vm1, %v10172_v23 }
  0x62   : > { %8792 = vmatmul.mubr.msk.f32.gmra.mxu0 %vm257_vm1, %v10182_v20 }
  0x63   : > { %8842 = vmatmul.mubr.msk.f32.gmra.mxu1 %vm257_vm1, %v10184_v21  ;;  %8794 = vmatprep.mubr.msk.f32.mxu0 %vm257_vm1, %v10186_v18 }
  0x64   : > { %8844 = vmatprep.mubr.msk.f32.mxu1 %vm257_vm1, %v10188_v19 }
  0x66   : > { %8795 = vmatmul.mubr.msk.f32.gmra.mxu0 %vm257_vm1, %v10198_v16 }
  0x67   : > { %8845 = vmatmul.mubr.msk.f32.gmra.mxu1 %vm257_vm1, %v10200_v17  ;;  %8797 = vmatprep.mubr.msk.f32.mxu0 %vm257_vm1, %v10202_v9  ;;  %v10225_v9 = vld [vmem:[#allocation2 + $0x1a] sm:$0xff] }
  0x68   : > { %8847 = vmatprep.mubr.msk.f32.mxu1 %vm257_vm1, %v10204_v10 }
  0x6a   : > { %8798 = vmatmul.mubr.msk.f32.gmra.mxu0 %vm257_vm1, %v10214_v7  ;;  %v10233_v7 = vld [vmem:[%s12968_s1 + $0x18] sm:$0xf] }
  0x6b   : > { %8848 = vmatmul.mubr.msk.f32.gmra.mxu1 %vm257_vm1, %v10216_v8  ;;  %8852 = vmatprep.mubr.msk.f32.mxu0 %vm257_vm1, %v1062_v5  ;;  %v10238_v5 = vld [vmem:[%s12968_s1 + $0x1c] sm:$0xf] }
  0x6c   : > { %8902 = vmatprep.mubr.msk.f32.mxu1 %vm257_vm1, %v9911_v31  ;;  %v10248_v31 = vld [vmem:[#allocation2 + $0x32] sm:$0xff] }
  0x6e   : > { %8853 = vmatmul.mubr.msk.f32.vlgmr.msra.gmra.mxu0 %vm257_vm1, %v1063_v6  ;;  %v10244_v6 = vld [vmem:[#allocation2 + $0x22] sm:$0xff] }
  0x6f   : > { %8903 = vmatmul.mubr.msk.f32.vlgmr.msra.gmra.mxu1 %vm257_vm1, %v9925_v33  ;;  %8951 = vmatpush3.msk.msra.mxu0 %vm509_vm0, %v9828_v11  ;;  %v10262_v11 = vld [vmem:[#allocation2 + $0x3a] sm:$0xff]  ;;  %v10266_v33 = vld [vmem:[#allocation2 + $0x4a] sm:$0xff] }
  0x70   : > { %8855 = vmatprep.mubr.msk.f32.mxu0 %vm257_vm1, %v10225_v9  ;;  %8905 = vmatprep.mubr.msk.f32.mxu1 %vm257_vm1, %v9929_v35  ;;  %v10412_v35 = vld [vmem:[#allocation2 + $0x180] sm:$0xff] }
  0x71   : > { %9001 = vmatpush3.msk.msra.mxu1 %vm509_vm0, %v10119_v53  ;;  %9050 = vmatprep.subr.msk.mxu0 %vm509_vm0, %v10233_v7  ;;  %v10274_v53 = vld [vmem:[#allocation2 + $0x52] sm:$0xff]  ;;  %13131 = vst [vmem:[#allocation63_spill] sm:$0xff] %v10412_v35 }
  0x72   : > { %9100 = vmatprep.subr.msk.mxu1 %vm509_vm0, %v10238_v5  ;;  %8856 = vmatmul.mubr.msk.f32.gmra.mxu0 %vm257_vm1, %v10244_v6 }
  0x73   : > { %8906 = vmatmul.mubr.msk.f32.gmra.mxu1 %vm257_vm1, %v9941_v37  ;;  %8858 = vmatprep.mubr.msk.f32.mxu0 %vm257_vm1, %v10248_v31  ;;  %v10278_v37 = vld [vmem:[#allocation2 + $0x62] sm:$0xff] }
  0x74   : > { %8908 = vmatprep.mubr.msk.f32.mxu1 %vm257_vm1, %v9945_v39  ;;  %v10290_v39 = vld [vmem:[#allocation2 + $0x7a] sm:$0xff] }
  0x76   : > { %8859 = vmatmul.mubr.msk.f32.gmra.mxu0 %vm257_vm1, %v10262_v11 }
  0x77   : > { %8909 = vmatmul.mubr.msk.f32.gmra.mxu1 %vm257_vm1, %v9957_v41  ;;  %8861 = vmatprep.mubr.msk.f32.mxu0 %vm257_vm1, %v10266_v33  ;;  %v10286_v41 = vld [vmem:[#allocation2 + $0x6a] sm:$0xff] }
  0x78   : > { %8911 = vmatprep.mubr.msk.f32.mxu1 %vm257_vm1, %v9961_v43  ;;  %v10302_v43 = vld [vmem:[#allocation2 + $0x92] sm:$0xff] }
  0x7a   : > { %8862 = vmatmul.mubr.msk.f32.gmra.mxu0 %vm257_vm1, %v10274_v53 }
  0x7b   : > { %8912 = vmatmul.mubr.msk.f32.gmra.mxu1 %vm257_vm1, %v9973_v45  ;;  %8864 = vmatprep.mubr.msk.f32.mxu0 %vm257_vm1, %v10278_v37  ;;  %v10298_v45 = vld [vmem:[#allocation2 + $0x82] sm:$0xff] }
  0x7c   : > { %8914 = vmatprep.mubr.msk.f32.mxu1 %vm257_vm1, %v9977_v47  ;;  %v10314_v47 = vld [vmem:[#allocation2 + $0xaa] sm:$0xff] }
  0x7e   : > { %8865 = vmatmul.mubr.msk.f32.gmra.mxu0 %vm257_vm1, %v10286_v41 }
  0x7f   : > { %8915 = vmatmul.mubr.msk.f32.gmra.mxu1 %vm257_vm1, %v9981_v49  ;;  %8867 = vmatprep.mubr.msk.f32.mxu0 %vm257_vm1, %v10290_v39  ;;  %v10310_v49 = vld [vmem:[#allocation2 + $0x9a] sm:$0xff] }
  0x80   : > { %8917 = vmatprep.mubr.msk.f32.mxu1 %vm257_vm1, %v10027_v59  ;;  %v10326_v59 = vld [vmem:[#allocation2 + $0xc2] sm:$0xff] }
  0x82   : > { %8868 = vmatmul.mubr.msk.f32.gmra.mxu0 %vm257_vm1, %v10298_v45 }
  0x83   : > { %8918 = vmatmul.mubr.msk.f32.gmra.mxu1 %vm257_vm1, %v10055_v63  ;;  %8870 = vmatprep.mubr.msk.f32.mxu0 %vm257_vm1, %v10302_v43  ;;  %v10322_v63 = vld [vmem:[#allocation2 + $0xb2] sm:$0xff] }
  0x84   : > { %8920 = vmatprep.mubr.msk.f32.mxu1 %vm257_vm1, %v10059_v1  ;;  %v10338_v1 = vld [vmem:[#allocation2 + $0xda] sm:$0xff] }
  0x86   : > { %8871 = vmatmul.mubr.msk.f32.gmra.mxu0 %vm257_vm1, %v10310_v49 }
  0x87   : > { %8921 = vmatmul.mubr.msk.f32.gmra.mxu1 %vm257_vm1, %v10071_v3  ;;  %8873 = vmatprep.mubr.msk.f32.mxu0 %vm257_vm1, %v10314_v47  ;;  %v10334_v3 = vld [vmem:[#allocation2 + $0xca] sm:$0xff] }
  0x88   : > { %8923 = vmatprep.mubr.msk.f32.mxu1 %vm257_vm1, %v10075_v12  ;;  %v10350_v12 = vld [vmem:[#allocation2 + $0xf2] sm:$0xff] }
  0x8a   : > { %8874 = vmatmul.mubr.msk.f32.gmra.mxu0 %vm257_vm1, %v10322_v63 }
  0x8b   : > { %8924 = vmatmul.mubr.msk.f32.gmra.mxu1 %vm257_vm1, %v10087_v14  ;;  %8876 = vmatprep.mubr.msk.f32.mxu0 %vm257_vm1, %v10326_v59  ;;  %v10346_v14 = vld [vmem:[#allocation2 + $0xe2] sm:$0xff] }
  0x8c   : > { %8926 = vmatprep.mubr.msk.f32.mxu1 %vm257_vm1, %v10091_v60  ;;  %v10362_v60 = vld [vmem:[#allocation2 + $0x10a] sm:$0xff] }
  0x8e   : > { %8877 = vmatmul.mubr.msk.f32.gmra.mxu0 %vm257_vm1, %v10334_v3 }
  0x8f   : > { %8927 = vmatmul.mubr.msk.f32.gmra.mxu1 %vm257_vm1, %v10103_v57  ;;  %8879 = vmatprep.mubr.msk.f32.mxu0 %vm257_vm1, %v10338_v1  ;;  %v10358_v57 = vld [vmem:[#allocation2 + $0xfa] sm:$0xff] }
  0x90   : > { %8929 = vmatprep.mubr.msk.f32.mxu1 %vm257_vm1, %v10107_v55  ;;  %v10374_v55 = vld [vmem:[#allocation2 + $0x122] sm:$0xff] }
  0x92   : > { %8880 = vmatmul.mubr.msk.f32.gmra.mxu0 %vm257_vm1, %v10346_v14 }
  0x93   : > { %8930 = vmatmul.mubr.msk.f32.gmra.mxu1 %vm257_vm1, %v10130_v51  ;;  %8882 = vmatprep.mubr.msk.f32.mxu0 %vm257_vm1, %v10350_v12  ;;  %v10370_v51 = vld [vmem:[#allocation2 + $0x112] sm:$0xff] }
  0x94   : > { %8932 = vmatprep.mubr.msk.f32.mxu1 %vm257_vm1, %v10138_v29  ;;  %v10386_v29 = vld [vmem:[#allocation2 + $0x13a] sm:$0xff] }
  0x96   : > { %8883 = vmatmul.mubr.msk.f32.gmra.mxu0 %vm257_vm1, %v10358_v57 }
  0x97   : > { %8933 = vmatmul.mubr.msk.f32.gmra.mxu1 %vm257_vm1, %v10152_v54  ;;  %8885 = vmatprep.mubr.msk.f32.mxu0 %vm257_vm1, %v10362_v60  ;;  %v10382_v54 = vld [vmem:[#allocation2 + $0x12a] sm:$0xff] }
  0x98   : > { %8935 = vmatprep.mubr.msk.f32.mxu1 %vm257_vm1, %v10156_v27  ;;  %v10398_v27 = vld [vmem:[#allocation2 + $0x152] sm:$0xff] }
  0x9a   : > { %8886 = vmatmul.mubr.msk.f32.gmra.mxu0 %vm257_vm1, %v10370_v51 }
  0x9b   : > { %8936 = vmatmul.mubr.msk.f32.gmra.mxu1 %vm257_vm1, %v10168_v25  ;;  %8888 = vmatprep.mubr.msk.f32.mxu0 %vm257_vm1, %v10374_v55  ;;  %v10394_v25 = vld [vmem:[#allocation2 + $0x142] sm:$0xff] }
  0x9c   : > { %8938 = vmatprep.mubr.msk.f32.mxu1 %vm257_vm1, %v10172_v23  ;;  %v10410_v23 = vld [vmem:[#allocation2 + $0x16a] sm:$0xff] }
  0x9e   : > { %8889 = vmatmul.mubr.msk.f32.gmra.mxu0 %vm257_vm1, %v10382_v54 }
  0x9f   : > { %8939 = vmatmul.mubr.msk.f32.gmra.mxu1 %vm257_vm1, %v10184_v21  ;;  %8891 = vmatprep.mubr.msk.f32.mxu0 %vm257_vm1, %v10386_v29  ;;  %v10406_v21 = vld [vmem:[#allocation2 + $0x15a] sm:$0xff] }
  0xa0   : > { %8941 = vmatprep.mubr.msk.f32.mxu1 %vm257_vm1, %v10188_v19  ;;  %v10424_v19 = vld [vmem:[#allocation2 + $0x188] sm:$0xff] }
  0xa2   : > { %8892 = vmatmul.mubr.msk.f32.gmra.mxu0 %vm257_vm1, %v10394_v25 }
  0xa3   : > { %8942 = vmatmul.mubr.msk.f32.gmra.mxu1 %vm257_vm1, %v10200_v17  ;;  %8894 = vmatprep.mubr.msk.f32.mxu0 %vm257_vm1, %v10398_v27  ;;  %v10420_v17 = vld [vmem:[#allocation2 + $0x172] sm:$0xff] }
  0xa4   : > { %8944 = vmatprep.mubr.msk.f32.mxu1 %vm257_vm1, %v10204_v10 }
  0xa6   : > { %8895 = vmatmul.mubr.msk.f32.gmra.mxu0 %vm257_vm1, %v10406_v21 }
  0xa7   : > { %8945 = vmatmul.mubr.msk.f32.gmra.mxu1 %vm257_vm1, %v10216_v8  ;;  %8897 = vmatprep.mubr.msk.f32.mxu0 %vm257_vm1, %v10410_v23 }
  0xa8   : > { %8947 = vmatprep.mubr.msk.f32.mxu1 %vm257_vm1, %v10412_v35  ;;  %v10441_v35 = vld [vmem:[%s12968_s1 + $0x20] sm:$0xf] }
  0xaa   : > { %8898 = vmatmul.mubr.msk.f32.gmra.mxu0 %vm257_vm1, %v10420_v17 }
  0xab   : > { %8948 = vmatmul.mubr.msk.f32.gmra.mxu1 %vm257_vm1, %v10424_v19  ;;  %8952 = vmatprep.mubr.msk.f32.mxu0 %vm257_vm1, %v9909_v30 }
  0xac   : > { %9002 = vmatprep.mubr.msk.f32.mxu1 %vm257_vm1, %v10225_v9  ;;  %v10557_v9 = vld [vmem:[#allocation2 + $0x181] sm:$0xff] }
  0xae   : > { %8953 = vmatmul.mubr.msk.f32.vlgmr.msra.gmra.mxu0 %vm257_vm1, %v9913_v32 }
  0xaf   : > { %9003 = vmatmul.mubr.msk.f32.vlgmr.msra.gmra.mxu1 %vm257_vm1, %v10244_v6  ;;  %9051 = vmatpush3.msk.msra.mxu0 %vm509_vm0, %v10233_v7  ;;  %v13132_v7 = vld [vmem:[#allocation61_spill] sm:$0xff]  ;;  %v13137_v6 = vld [vmem:[#allocation26_spill] sm:$0xff] }
  0xb0   : > { %8955 = vmatprep.mubr.msk.f32.mxu0 %vm257_vm1, %v9927_v34  ;;  %9005 = vmatprep.mubr.msk.f32.mxu1 %vm257_vm1, %v10248_v31 }
  0xb1   : > { %9101 = vmatpush3.msk.msra.mxu1 %vm509_vm0, %v10238_v5  ;;  %9150 = vmatprep.subr.msk.mxu0 %vm509_vm0, %v10441_v35 }
  0xb2   : > { %8956 = vmatmul.mubr.msk.f32.gmra.mxu0 %vm257_vm1, %v9939_v36 }
  0xb3   : > { %9006 = vmatmul.mubr.msk.f32.gmra.mxu1 %vm257_vm1, %v10262_v11  ;;  %8958 = vmatprep.mubr.msk.f32.mxu0 %vm257_vm1, %v9943_v38 }
  0xb4   : > { %9008 = vmatprep.mubr.msk.f32.mxu1 %vm257_vm1, %v10266_v33 }
  0xb6   : > { %8959 = vmatmul.mubr.msk.f32.gmra.mxu0 %vm257_vm1, %v9955_v40 }
  0xb7   : > { %9009 = vmatmul.mubr.msk.f32.gmra.mxu1 %vm257_vm1, %v10274_v53  ;;  %8961 = vmatprep.mubr.msk.f32.mxu0 %vm257_vm1, %v9959_v42 }
  0xb8   : > { %9011 = vmatprep.mubr.msk.f32.mxu1 %vm257_vm1, %v10278_v37 }
  0xba   : > { %8962 = vmatmul.mubr.msk.f32.gmra.mxu0 %vm257_vm1, %v9971_v44 }
  0xbb   : > { %9012 = vmatmul.mubr.msk.f32.gmra.mxu1 %vm257_vm1, %v10286_v41  ;;  %8964 = vmatprep.mubr.msk.f32.mxu0 %vm257_vm1, %v9975_v46 }
  0xbc   : > { %9014 = vmatprep.mubr.msk.f32.mxu1 %vm257_vm1, %v10290_v39 }
  0xbe   : > { %8965 = vmatmul.mubr.msk.f32.gmra.mxu0 %vm257_vm1, %v9979_v48 }
  0xbf   : > { %9015 = vmatmul.mubr.msk.f32.gmra.mxu1 %vm257_vm1, %v10298_v45  ;;  %8967 = vmatprep.mubr.msk.f32.mxu0 %vm257_vm1, %v9993_v52 }
  0xc0   : > { %9017 = vmatprep.mubr.msk.f32.mxu1 %vm257_vm1, %v10302_v43 }
  0xc2   : > { %8968 = vmatmul.mubr.msk.f32.gmra.mxu0 %vm257_vm1, %v10053_v62 }
  0xc3   : > { %9018 = vmatmul.mubr.msk.f32.gmra.mxu1 %vm257_vm1, %v10310_v49  ;;  %8970 = vmatprep.mubr.msk.f32.mxu0 %vm257_vm1, %v10057_v0 }
  0xc4   : > { %9020 = vmatprep.mubr.msk.f32.mxu1 %vm257_vm1, %v10314_v47 }
  0xc6   : > { %8971 = vmatmul.mubr.msk.f32.gmra.mxu0 %vm257_vm1, %v10069_v2 }
  0xc7   : > { %9021 = vmatmul.mubr.msk.f32.gmra.mxu1 %vm257_vm1, %v10322_v63  ;;  %8973 = vmatprep.mubr.msk.f32.mxu0 %vm257_vm1, %v10073_v4 }
  0xc8   : > { %9023 = vmatprep.mubr.msk.f32.mxu1 %vm257_vm1, %v10326_v59 }
  0xca   : > { %8974 = vmatmul.mubr.msk.f32.gmra.mxu0 %vm257_vm1, %v10085_v13 }
  0xcb   : > { %9024 = vmatmul.mubr.msk.f32.gmra.mxu1 %vm257_vm1, %v10334_v3  ;;  %8976 = vmatprep.mubr.msk.f32.mxu0 %vm257_vm1, %v10089_v15 }
  0xcc   : > { %9026 = vmatprep.mubr.msk.f32.mxu1 %vm257_vm1, %v10338_v1 }
  0xce   : > { %8977 = vmatmul.mubr.msk.f32.gmra.mxu0 %vm257_vm1, %v10101_v61 }
  0xcf   : > { %9027 = vmatmul.mubr.msk.f32.gmra.mxu1 %vm257_vm1, %v10346_v14  ;;  %8979 = vmatprep.mubr.msk.f32.mxu0 %vm257_vm1, %v10105_v58 }
  0xd0   : > { %9029 = vmatprep.mubr.msk.f32.mxu1 %vm257_vm1, %v10350_v12 }
  0xd2   : > { %8980 = vmatmul.mubr.msk.f32.gmra.mxu0 %vm257_vm1, %v10128_v50 }
  0xd3   : > { %9030 = vmatmul.mubr.msk.f32.gmra.mxu1 %vm257_vm1, %v10358_v57  ;;  %8982 = vmatprep.mubr.msk.f32.mxu0 %vm257_vm1, %v10136_v28 }
  0xd4   : > { %9032 = vmatprep.mubr.msk.f32.mxu1 %vm257_vm1, %v10362_v60  ;;  %v13136_v60 = vld [vmem:[#allocation25_spill] sm:$0xff] }
  0xd6   : > { %8983 = vmatmul.mubr.msk.f32.gmra.mxu0 %vm257_vm1, %v10150_v56 }
  0xd7   : > { %9033 = vmatmul.mubr.msk.f32.gmra.mxu1 %vm257_vm1, %v10370_v51  ;;  %8985 = vmatprep.mubr.msk.f32.mxu0 %vm257_vm1, %v10154_v26  ;;  %v8804_v30 = vpop.f32.mrf.mxu1 }
  0xd8   : > { %9035 = vmatprep.mubr.msk.f32.mxu1 %vm257_vm1, %v10374_v55  ;;  %v13135_v55 = vld [vmem:[#allocation24_spill] sm:$0xff] }
  0xda   : > { %8986 = vmatmul.mubr.msk.f32.gmra.mxu0 %vm257_vm1, %v10166_v24 }
  0xdb   : > { %9036 = vmatmul.mubr.msk.f32.gmra.mxu1 %vm257_vm1, %v10382_v54  ;;  %8988 = vmatprep.mubr.msk.f32.mxu0 %vm257_vm1, %v10170_v22  ;;  %v903_v54 = vpop.f32.mrf.mxu1 }
  0xdc   : > { %9038 = vmatprep.mubr.msk.f32.mxu1 %vm257_vm1, %v10386_v29  ;;  %v13133_v29 = vld [vmem:[#allocation62_spill] sm:$0xff] }
  0xde   : > { %8989 = vmatmul.mubr.msk.f32.gmra.mxu0 %vm257_vm1, %v10182_v20 }
  0xdf   : > { %9039 = vmatmul.mubr.msk.f32.gmra.mxu1 %vm257_vm1, %v10394_v25  ;;  %8991 = vmatprep.mubr.msk.f32.mxu0 %vm257_vm1, %v10186_v18  ;;  %v10559_v25 = vld [vmem:[#allocation2 + $0x182] sm:$0xff] }
  0xe0   : > { %9041 = vmatprep.mubr.msk.f32.mxu1 %vm257_vm1, %v10398_v27  ;;  %v10571_v27 = vld [vmem:[#allocation2 + $0x18a] sm:$0xff] }
  0xe2   : > { %8992 = vmatmul.mubr.msk.f32.gmra.mxu0 %vm257_vm1, %v10198_v16 }
  0xe3   : > { %9042 = vmatmul.mubr.msk.f32.gmra.mxu1 %vm257_vm1, %v10406_v21  ;;  %8994 = vmatprep.mubr.msk.f32.mxu0 %vm257_vm1, %v13132_v7  ;;  %v10567_v21 = vld [vmem:[#allocation2 + $0x189] sm:$0xff] }
  0xe4   : > { %9044 = vmatprep.mubr.msk.f32.mxu1 %vm257_vm1, %v10410_v23  ;;  %v13134_v23 = vld [vmem:[#allocation23_spill] sm:$0xff] }
  0xe6   : > { %8995 = vmatmul.mubr.msk.f32.gmra.mxu0 %vm257_vm1, %v13133_v29 }
  0xe7   : > { %9045 = vmatmul.mubr.msk.f32.gmra.mxu1 %vm257_vm1, %v10420_v17  ;;  %8997 = vmatprep.mubr.msk.f32.mxu0 %vm257_vm1, %v10557_v9  ;;  %v8754_v17 = vpop.f32.mrf.mxu0 }
  0xe8   : > { %9047 = vmatprep.mubr.msk.f32.mxu1 %vm257_vm1, %v10559_v25  ;;  %v10581_v32 = vadd.f32 %v8804_v30, %v8754_v17 }
  0xe9   : > { %v579_v51 = vpop.f32.mrf.mxu0 }
  0xea   : > { %8998 = vmatmul.mubr.msk.f32.gmra.mxu0 %vm257_vm1, %v10567_v21  ;;  %v10587_v57 = vadd.f32 %v903_v54, %v579_v51  ;;  %v13139_v54 = vld [vmem:[#allocation28_spill] sm:$0xff] }
  0xeb   : > { %9048 = vmatmul.mubr.msk.f32.gmra.mxu1 %vm257_vm1, %v10571_v27  ;;  %9052 = vmatprep.mubr.msk.f32.mxu0 %vm257_vm1, %v13134_v23  ;;  %v13138_v23 = vld [vmem:[#allocation27_spill] sm:$0xff] }
  0xec   : > { %9102 = vmatprep.mubr.msk.f32.mxu1 %vm257_vm1, %v9927_v34 }
  0xee   : > { %9053 = vmatmul.mubr.msk.f32.vlgmr.msra.gmra.mxu0 %vm257_vm1, %v13135_v55  ;;  %v13140_v55 = vld [vmem:[#allocation29_spill] sm:$0xff] }
  0xef   : > { %9103 = vmatmul.mubr.msk.f32.vlgmr.msra.gmra.mxu1 %vm257_vm1, %v9939_v36  ;;  %9151 = vmatpush3.msk.msra.mxu0 %vm509_vm0, %v10441_v35 }
  0xf0   : > { %9055 = vmatprep.mubr.msk.f32.mxu0 %vm257_vm1, %v13136_v60  ;;  %9105 = vmatprep.mubr.msk.f32.mxu1 %vm257_vm1, %v9943_v38 }
  0xf2   : > { %v8757_v34 = vpop.f32.mrf.mxu0  ;;  %9056 = vmatmul.mubr.msk.f32.gmra.mxu0 %vm257_vm1, %v13137_v6 }
  0xf3   : > { %v8807_v5 = vpop.f32.mrf.mxu1  ;;  %9106 = vmatmul.mubr.msk.f32.gmra.mxu1 %vm257_vm1, %v9955_v40  ;;  %9058 = vmatprep.mubr.msk.f32.mxu0 %vm257_vm1, %v13138_v23  ;;  %v13141_v23 = vld [vmem:[#allocation30_spill] sm:$0xff] }
  0xf4   : > { %v10599_v36 = vadd.f32 %v8807_v5, %v8757_v34  ;;  %9108 = vmatprep.mubr.msk.f32.mxu1 %vm257_vm1, %v9959_v42  ;;  %v589_v35 = vpop.f32.mrf.mxu0 }
  0xf5   : > { %v913_v17 = vpop.f32.mrf.mxu1 }
  0xf6   : > { %v10605_v30 = vadd.f32 %v913_v17, %v589_v35  ;;  %v8760_v38 = vpop.f32.mrf.mxu0  ;;  %9059 = vmatmul.mubr.msk.f32.gmra.mxu0 %vm257_vm1, %v13139_v54  ;;  %v13142_v35 = vld [vmem:[#allocation39_spill] sm:$0xff] }
  0xf7   : > { %v8810_v51 = vpop.f32.mrf.mxu1  ;;  %9109 = vmatmul.mubr.msk.f32.gmra.mxu1 %vm257_vm1, %v9971_v44  ;;  %9061 = vmatprep.mubr.msk.f32.mxu0 %vm257_vm1, %v13140_v55  ;;  %v13143_v55 = vld [vmem:[#allocation42_spill] sm:$0xff] }
  0xf8   : > { %v10611_v40 = vadd.f32 %v8810_v51, %v8760_v38  ;;  %9111 = vmatprep.mubr.msk.f32.mxu1 %vm257_vm1, %v9975_v46  ;;  %v599_v42 = vpop.f32.mrf.mxu0 }
  0xf9   : > { %v923_v60 = vpop.f32.mrf.mxu1 }
  0xfa   : > { %v10617_v34 = vadd.f32 %v923_v60, %v599_v42  ;;  %v8763_v5 = vpop.f32.mrf.mxu0  ;;  %9062 = vmatmul.mubr.msk.f32.gmra.mxu0 %vm257_vm1, %v13141_v23  ;;  %v13144_v42 = vld [vmem:[#allocation43_spill] sm:$0xff] }
  0xfb   : > { %v8813_v6 = vpop.f32.mrf.mxu1  ;;  %9112 = vmatmul.mubr.msk.f32.gmra.mxu1 %vm257_vm1, %v9979_v48  ;;  %9064 = vmatprep.mubr.msk.f32.mxu0 %vm257_vm1, %v13142_v35  ;;  %v13145_v35 = vld [vmem:[#allocation44_spill] sm:$0xff] }
  0xfc   : > { %v10623_v44 = vadd.f32 %v8813_v6, %v8763_v5  ;;  %9114 = vmatprep.mubr.msk.f32.mxu1 %vm257_vm1, %v9993_v52  ;;  %v609_v46 = vpop.f32.mrf.mxu0 }
  0xfd   : > { %v933_v17 = vpop.f32.mrf.mxu1 }
  0xfe   : > { %v10629_v38 = vadd.f32 %v933_v17, %v609_v46  ;;  %v8766_v51 = vpop.f32.mrf.mxu0  ;;  %9065 = vmatmul.mubr.msk.f32.gmra.mxu0 %vm257_vm1, %v13143_v55  ;;  %v13146_v46 = vld [vmem:[#allocation45_spill] sm:$0xff] }
  0xff   : > { %v8816_v54 = vpop.f32.mrf.mxu1  ;;  %9115 = vmatmul.mubr.msk.f32.gmra.mxu1 %vm257_vm1, %v10053_v62  ;;  %9067 = vmatprep.mubr.msk.f32.mxu0 %vm257_vm1, %v13144_v42  ;;  %v13147_v42 = vld [vmem:[#allocation46_spill] sm:$0xff] }
 0x100   : > { %v10635_v48 = vadd.f32 %v8816_v54, %v8766_v51  ;;  %9117 = vmatprep.mubr.msk.f32.mxu1 %vm257_vm1, %v10057_v0  ;;  %v619_v52 = vpop.f32.mrf.mxu0 }
 0x101   : > { %v943_v60 = vpop.f32.mrf.mxu1 }
 0x102   : > { %v10641_v5 = vadd.f32 %v943_v60, %v619_v52  ;;  %v8769_v6 = vpop.f32.mrf.mxu0  ;;  %9068 = vmatmul.mubr.msk.f32.gmra.mxu0 %vm257_vm1, %v13145_v35  ;;  %v13148_v52 = vld [vmem:[#allocation47_spill] sm:$0xff] }
 0x103   : > { %v8819_v23 = vpop.f32.mrf.mxu1  ;;  %9118 = vmatmul.mubr.msk.f32.gmra.mxu1 %vm257_vm1, %v10069_v2  ;;  %9070 = vmatprep.mubr.msk.f32.mxu0 %vm257_vm1, %v13146_v46  ;;  %v13149_v46 = vld [vmem:[#allocation48_spill] sm:$0xff] }
 0x104   : > { %v10647_v62 = vadd.f32 %v8819_v23, %v8769_v6  ;;  %9120 = vmatprep.mubr.msk.f32.mxu1 %vm257_vm1, %v10073_v4  ;;  %v629_v0 = vpop.f32.mrf.mxu0 }
 0x105   : > { %v953_v17 = vpop.f32.mrf.mxu1 }
 0x106   : > { %v10653_v51 = vadd.f32 %v953_v17, %v629_v0  ;;  %v8772_v54 = vpop.f32.mrf.mxu0  ;;  %9071 = vmatmul.mubr.msk.f32.gmra.mxu0 %vm257_vm1, %v13147_v42  ;;  %v13150_v0 = vld [vmem:[#allocation49_spill] sm:$0xff] }
 0x107   : > { %v8822_v55 = vpop.f32.mrf.mxu1  ;;  %9121 = vmatmul.mubr.msk.f32.gmra.mxu1 %vm257_vm1, %v10085_v13  ;;  %9073 = vmatprep.mubr.msk.f32.mxu0 %vm257_vm1, %v13148_v52  ;;  %v13151_v52 = vld [vmem:[#allocation52_spill] sm:$0xff] }
 0x108   : > { %v10659_v2 = vadd.f32 %v8822_v55, %v8772_v54  ;;  %9123 = vmatprep.mubr.msk.f32.mxu1 %vm257_vm1, %v10089_v15  ;;  %v639_v4 = vpop.f32.mrf.mxu0 }
 0x109   : > { %v963_v60 = vpop.f32.mrf.mxu1 }
 0x10a   : > { %v10665_v6 = vadd.f32 %v963_v60, %v639_v4  ;;  %v8775_v23 = vpop.f32.mrf.mxu0  ;;  %9074 = vmatmul.mubr.msk.f32.gmra.mxu0 %vm257_vm1, %v13149_v46  ;;  %v13152_v4 = vld [vmem:[#allocation53_spill] sm:$0xff]  ;;  %v13153_v46 = vld [vmem:[#allocation54_spill] sm:$0xff] }
 0x10b   : > { %v8825_v35 = vpop.f32.mrf.mxu1  ;;  %9124 = vmatmul.mubr.msk.f32.gmra.mxu1 %vm257_vm1, %v10101_v61  ;;  %9076 = vmatprep.mubr.msk.f32.mxu0 %vm257_vm1, %v13150_v0  ;;  %v13154_v0 = vld [vmem:[#allocation55_spill] sm:$0xff] }
 0x10c   : > { %v10671_v13 = vadd.f32 %v8825_v35, %v8775_v23  ;;  %9126 = vmatprep.mubr.msk.f32.mxu1 %vm257_vm1, %v10105_v58  ;;  %v649_v15 = vpop.f32.mrf.mxu0 }
 0x10d   : > { %v973_v17 = vpop.f32.mrf.mxu1 }
 0x10e   : > { %v10677_v54 = vadd.f32 %v973_v17, %v649_v15  ;;  %v8778_v55 = vpop.f32.mrf.mxu0  ;;  %9077 = vmatmul.mubr.msk.f32.gmra.mxu0 %vm257_vm1, %v13151_v52  ;;  %v13156_v52 = vld [vmem:[#allocation57_spill] sm:$0xff] }
 0x10f   : > { %v8828_v42 = vpop.f32.mrf.mxu1  ;;  %9127 = vmatmul.mubr.msk.f32.gmra.mxu1 %vm257_vm1, %v10128_v50  ;;  %9079 = vmatprep.mubr.msk.f32.mxu0 %vm257_vm1, %v13152_v4 }
 0x110   : > { %v10683_v61 = vadd.f32 %v8828_v42, %v8778_v55  ;;  %9129 = vmatprep.mubr.msk.f32.mxu1 %vm257_vm1, %v10136_v28  ;;  %v10689_v58 = vpop.f32.mrf.mxu0  ;;  %v13155_v42 = vld [vmem:[#allocation56_spill] sm:$0xff] }
 0x111   : > { %v10691_v60 = vpop.f32.mrf.mxu1 }
 0x112   : > { %v8781_v23 = vpop.f32.mrf.mxu0  ;;  %9080 = vmatmul.mubr.msk.f32.gmra.mxu0 %vm257_vm1, %v13153_v46  ;;  %v13157_v46 = vld [vmem:[#allocation58_spill] sm:$0xff] }
 0x113   : > { %v8831_v35 = vpop.f32.mrf.mxu1  ;;  %9130 = vmatmul.mubr.msk.f32.gmra.mxu1 %vm257_vm1, %v10150_v56  ;;  %9082 = vmatprep.mubr.msk.f32.mxu0 %vm257_vm1, %v13154_v0  ;;  %v13158_v0 = vld [vmem:[#allocation59_spill] sm:$0xff] }
 0x114   : > { %v10697_v50 = vadd.f32 %v8831_v35, %v8781_v23  ;;  %9132 = vmatprep.mubr.msk.f32.mxu1 %vm257_vm1, %v10154_v26  ;;  %v10703_v28 = vpop.f32.mrf.mxu0 }
 0x115   : > { %v10705_v15 = vpop.f32.mrf.mxu1 }
 0x116   : > { %v8784_v17 = vpop.f32.mrf.mxu0  ;;  %9083 = vmatmul.mubr.msk.f32.gmra.mxu0 %vm257_vm1, %v13155_v42 }
 0x117   : > { %v8834_v55 = vpop.f32.mrf.mxu1  ;;  %9133 = vmatmul.mubr.msk.f32.gmra.mxu1 %vm257_vm1, %v10166_v24  ;;  %9085 = vmatprep.mubr.msk.f32.mxu0 %vm257_vm1, %v13156_v52  ;;  %v13159_v52 = vld [vmem:[#allocation60_spill] sm:$0xff] }
 0x118   : > { %v10711_v56 = vadd.f32 %v8834_v55, %v8784_v17  ;;  %9135 = vmatprep.mubr.msk.f32.mxu1 %vm257_vm1, %v10170_v22  ;;  %v10717_v26 = vpop.f32.mrf.mxu0 }
 0x119   : > { %v10719_v4 = vpop.f32.mrf.mxu1 }
 0x11a   : > { %v8787_v23 = vpop.f32.mrf.mxu0  ;;  %9086 = vmatmul.mubr.msk.f32.gmra.mxu0 %vm257_vm1, %v13157_v46 }
 0x11b   : > { %v8837_v35 = vpop.f32.mrf.mxu1  ;;  %9136 = vmatmul.mubr.msk.f32.gmra.mxu1 %vm257_vm1, %v10182_v20  ;;  %9088 = vmatprep.mubr.msk.f32.mxu0 %vm257_vm1, %v13158_v0  ;;  %v13161_v0 = vld [vmem:[#allocation63_spill] sm:$0xff] }
 0x11c   : > { %v10725_v24 = vadd.f32 %v8837_v35, %v8787_v23  ;;  %9138 = vmatprep.mubr.msk.f32.mxu1 %vm257_vm1, %v10186_v18  ;;  %v10731_v22 = vpop.f32.mrf.mxu0 }
 0x11d   : > { %v10733_v17 = vpop.f32.mrf.mxu1 }
 0x11e   : > { %v8790_v55 = vpop.f32.mrf.mxu0  ;;  %9089 = vmatmul.mubr.msk.f32.gmra.mxu0 %vm257_vm1, %v13159_v52 }
 0x11f   : > { %v8840_v42 = vpop.f32.mrf.mxu1  ;;  %9139 = vmatmul.mubr.msk.f32.gmra.mxu1 %vm257_vm1, %v10198_v16  ;;  %9091 = vmatprep.mubr.msk.f32.mxu0 %vm257_vm1, %v10204_v10 }
 0x120   : > { %v10739_v20 = vadd.f32 %v8840_v42, %v8790_v55  ;;  %9141 = vmatprep.mubr.msk.f32.mxu1 %vm257_vm1, %v13132_v7  ;;  %v10745_v18 = vpop.f32.mrf.mxu0  ;;  %v2653_v55 = vld [vmem:[#allocation2 + $0x198] sm:$0xff] }
 0x121   : > { %v10747_v23 = vpop.f32.mrf.mxu1  ;;  %v3043_v42 = vld [vmem:[#allocation2 + $0x199] sm:$0xff] }
 0x122   : > { %13160 = vst [vmem:[#allocation61_spill] sm:$0xff] %v10747_v23  ;;  %v8793_v35 = vpop.f32.mrf.mxu0  ;;  %9092 = vmatmul.mubr.msk.f32.gmra.mxu0 %vm257_vm1, %v10216_v8 }
 0x123   : > { %v8843_v46 = vpop.f32.mrf.mxu1  ;;  %9142 = vmatmul.mubr.msk.f32.gmra.mxu1 %vm257_vm1, %v13133_v29  ;;  %9094 = vmatprep.mubr.msk.f32.mxu0 %vm257_vm1, %v13161_v0  ;;  %v2654_v29 = vld [vmem:[#allocation2 + $0x1a0] sm:$0xff] }
 0x124   : > { %v10753_v16 = vadd.f32 %v8843_v46, %v8793_v35  ;;  %9144 = vmatprep.mubr.msk.f32.mxu1 %vm257_vm1, %v10557_v9  ;;  %v10759_v10 = vpop.f32.mrf.mxu0  ;;  %v3044_v9 = vld [vmem:[#allocation2 + $0x1a1] sm:$0xff] }
 0x125   : > { %13162 = vst [vmem:[#allocation62_spill] sm:$0xff] %v10759_v10  ;;  %v10761_v7 = vpop.f32.mrf.mxu1 }
 0x126   : > { %13163 = vst [vmem:[#allocation23_spill] sm:$0xff] %v10761_v7  ;;  %v8796_v52 = vpop.f32.mrf.mxu0  ;;  %9095 = vmatmul.mubr.msk.f32.gmra.mxu0 %vm257_vm1, %v10424_v19 }
 0x127   : > { %v8846_v23 = vpop.f32.mrf.mxu1  ;;  %9145 = vmatmul.mubr.msk.f32.gmra.mxu1 %vm257_vm1, %v10567_v21  ;;  %9097 = vmatprep.mubr.msk.f32.mxu0 %vm257_vm1, %v2653_v55 }
 0x128   : > { %v10767_v8 = vadd.f32 %v8846_v23, %v8796_v52  ;;  %9147 = vmatprep.mubr.msk.f32.mxu1 %vm257_vm1, %v3043_v42  ;;  %v10771_v35 = vpop.f32.mrf.mxu0 }
 0x129   : > { %13164 = vst [vmem:[#allocation24_spill] sm:$0xff] %v10771_v35  ;;  %v10773_v46 = vpop.f32.mrf.mxu1 }
 0x12a   : > { %13165 = vst [vmem:[#allocation25_spill] sm:$0xff] %v10773_v46  ;;  %v8799_v0 = vpop.f32.mrf.mxu0  ;;  %9098 = vmatmul.mubr.msk.f32.gmra.mxu0 %vm257_vm1, %v2654_v29 }
 0x12b   : > { %v8849_v7 = vpop.f32.mrf.mxu1  ;;  %9148 = vmatmul.mubr.msk.f32.gmra.mxu1 %vm257_vm1, %v3044_v9  ;;  %9152 = vmatprep.mubr.msk.f32.mxu0 %vm257_vm1, %v10248_v31 }
 0x12c   : > { %v10777_v19 = vadd.f32 %v8849_v7, %v8799_v0  ;;  %v10781_v21 = vpop.f32.mrf.mxu0 }
 0x12d   : > { %13166 = vst [vmem:[#allocation26_spill] sm:$0xff] %v10781_v21  ;;  %v10783_v23 = vpop.f32.mrf.mxu1 }
 0x12e   : > { %13167 = vst [vmem:[#allocation27_spill] sm:$0xff] %v10783_v23  ;;  %v8854_v55 = vpop.f32.mrf.mxu0  ;;  %9153 = vmatmul.mubr.msk.f32.vlgmr.msra.gmra.mxu0 %vm257_vm1, %v10262_v11 }
 0x12f   : > { %v8904_v42 = vpop.f32.mrf.mxu1  ;;  %v1421_v52 = vadd.f32 %v8854_v55, %v10581_v32  ;;  %9155 = vmatprep.mubr.msk.f32.mxu0 %vm257_vm1, %v10266_v33 }
 0x130   : > { %v1261_v29 = vpop.f32.mrf.mxu0 }
 0x131   : > { %v10790_v7 = vpop.f32.mrf.mxu1  ;;  %v10793_v9 = vadd.f32 %v1261_v29, %v10587_v57  ;;  %v10795_v31 = vadd.f32 %v8904_v42, %v1421_v52 }
 0x132   : > { %v8857_v0 = vpop.f32.mrf.mxu0  ;;  %9156 = vmatmul.mubr.msk.f32.gmra.mxu0 %vm257_vm1, %v10274_v53 }
 0x133   : > { %v8907_v23 = vpop.f32.mrf.mxu1  ;;  %v1423_v11 = vadd.f32 %v8857_v0, %v10599_v36  ;;  %9158 = vmatprep.mubr.msk.f32.mxu0 %vm257_vm1, %v10278_v37 }
 0x134   : > { %v1271_v32 = vpop.f32.mrf.mxu0 }
 0x135   : > { %v10802_v33 = vpop.f32.mrf.mxu1  ;;  %v10805_v55 = vadd.f32 %v1271_v32, %v10605_v30  ;;  %v10807_v57 = vadd.f32 %v8907_v23, %v1423_v11 }
 0x136   : > { %v8860_v42 = vpop.f32.mrf.mxu0  ;;  %9159 = vmatmul.mubr.msk.f32.gmra.mxu0 %vm257_vm1, %v10286_v41 }
 0x137   : > { %v8910_v52 = vpop.f32.mrf.mxu1  ;;  %v1425_v53 = vadd.f32 %v8860_v42, %v10611_v40  ;;  %9161 = vmatprep.mubr.msk.f32.mxu0 %vm257_vm1, %v10290_v39  ;;  %v7846_v39 = vld [vmem:[%s12970_s3 + $0x4] sm:$0xf] }
 0x138   : > { %v1281_v36 = vpop.f32.mrf.mxu0  ;;  %9200 = vmatprep.subr.msk.mxu1 %vm509_vm0, %v7846_v39 }
 0x139   : > { %v10814_v37 = vpop.f32.mrf.mxu1  ;;  %v10817_v29 = vadd.f32 %v1281_v36, %v10617_v34  ;;  %v10819_v30 = vadd.f32 %v8910_v52, %v1425_v53  ;;  %9201 = vmatpush3.msk.msra.mxu1 %vm509_vm0, %v7846_v39 }
 0x13a   : > { %v8863_v23 = vpop.f32.mrf.mxu0  ;;  %9162 = vmatmul.mubr.msk.f32.gmra.mxu0 %vm257_vm1, %v10298_v45 }
 0x13b   : > { %v8913_v0 = vpop.f32.mrf.mxu1  ;;  %v1427_v41 = vadd.f32 %v8863_v23, %v10623_v44  ;;  %9164 = vmatprep.mubr.msk.f32.mxu0 %vm257_vm1, %v10302_v43 }
 0x13c   : > { %v1291_v40 = vpop.f32.mrf.mxu0 }
 0x13d   : > { %v10829_v11 = vpop.f32.mrf.mxu1  ;;  %v10833_v34 = vadd.f32 %v1291_v40, %v10629_v38  ;;  %v10835_v32 = vadd.f32 %v8913_v0, %v1427_v41 }
 0x13e   : > { %v8866_v45 = vpop.f32.mrf.mxu0  ;;  %9165 = vmatmul.mubr.msk.f32.gmra.mxu0 %vm257_vm1, %v10310_v49 }
 0x13f   : > { %v8916_v43 = vpop.f32.mrf.mxu1  ;;  %v1429_v44 = vadd.f32 %v8866_v45, %v10635_v48  ;;  %9167 = vmatprep.mubr.msk.f32.mxu0 %vm257_vm1, %v10314_v47 }
 0x140   : > { %v1301_v42 = vpop.f32.mrf.mxu0 }
 0x141   : > { %v10843_v52 = vpop.f32.mrf.mxu1  ;;  %v10846_v38 = vadd.f32 %v1301_v42, %v10641_v5  ;;  %v10848_v53 = vadd.f32 %v8916_v43, %v1429_v44  ;;  %v3421_v42 = vld [vmem:[#allocation2 + $0x10a] sm:$0xff] }
 0x142   : > { %v8869_v36 = vpop.f32.mrf.mxu0  ;;  %9168 = vmatmul.mubr.msk.f32.gmra.mxu0 %vm257_vm1, %v10322_v63 }
 0x143   : > { %v8919_v23 = vpop.f32.mrf.mxu1  ;;  %v1431_v49 = vadd.f32 %v8869_v36, %v10647_v62  ;;  %9170 = vmatprep.mubr.msk.f32.mxu0 %vm257_vm1, %v10326_v59 }
 0x144   : > { %v1311_v48 = vpop.f32.mrf.mxu0 }
 0x145   : > { %v10855_v47 = vpop.f32.mrf.mxu1  ;;  %v10858_v0 = vadd.f32 %v1311_v48, %v10653_v51  ;;  %v10860_v5 = vadd.f32 %v8919_v23, %v1431_v49 }
 0x146   : > { %v8872_v41 = vpop.f32.mrf.mxu0  ;;  %9171 = vmatmul.mubr.msk.f32.gmra.mxu0 %vm257_vm1, %v10334_v3 }
 0x147   : > { %v8922_v39 = vpop.f32.mrf.mxu1  ;;  %v1433_v63 = vadd.f32 %v8872_v41, %v10659_v2  ;;  %9173 = vmatprep.mubr.msk.f32.mxu0 %vm257_vm1, %v10338_v1  ;;  %v3420_v2 = vld [vmem:[#allocation2 + $0xfa] sm:$0xff] }
 0x148   : > { %v1321_v62 = vpop.f32.mrf.mxu0 }
 0x149   : > { %v10867_v59 = vpop.f32.mrf.mxu1  ;;  %v10870_v40 = vadd.f32 %v1321_v62, %v10665_v6  ;;  %v10872_v51 = vadd.f32 %v8922_v39, %v1433_v63  ;;  %v3423_v39 = vld [vmem:[#allocation2 + $0x122] sm:$0xff] }
 0x14a   : > { %13168 = vst [vmem:[#allocation28_spill] sm:$0xff] %v10867_v59  ;;  %v8875_v45 = vpop.f32.mrf.mxu0  ;;  %9174 = vmatmul.mubr.msk.f32.gmra.mxu0 %vm257_vm1, %v10346_v14 }
 0x14b   : > { %13169 = vst [vmem:[#allocation29_spill] sm:$0xff] %v10870_v40  ;;  %v8925_v43 = vpop.f32.mrf.mxu1  ;;  %v1435_v3 = vadd.f32 %v8875_v45, %v10671_v13  ;;  %9176 = vmatprep.mubr.msk.f32.mxu0 %vm257_vm1, %v10350_v12  ;;  %v984_v13 = vadd.f32 %v10691_v60, %v10689_v58  ;;  %v3422_v12 = vld [vmem:[#allocation2 + $0x112] sm:$0xff] }
 0x14c   : > { %v1331_v1 = vpop.f32.mrf.mxu0 }
 0x14d   : > { %v10879_v44 = vpop.f32.mrf.mxu1  ;;  %v10882_v6 = vadd.f32 %v1331_v1, %v10677_v54  ;;  %v10884_v36 = vadd.f32 %v8925_v43, %v1435_v3  ;;  %v3425_v3 = vld [vmem:[#allocation2 + $0x13a] sm:$0xff] }
 0x14e   : > { %13170 = vst [vmem:[#allocation30_spill] sm:$0xff] %v10879_v44  ;;  %v8878_v23 = vpop.f32.mrf.mxu0  ;;  %9177 = vmatmul.mubr.msk.f32.gmra.mxu0 %vm257_vm1, %v3420_v2 }
 0x14f   : > { %13171 = vst [vmem:[#allocation39_spill] sm:$0xff] %v10882_v6  ;;  %v8928_v14 = vpop.f32.mrf.mxu1  ;;  %v1437_v49 = vadd.f32 %v8878_v23, %v10683_v61  ;;  %9179 = vmatprep.mubr.msk.f32.mxu0 %vm257_vm1, %v3421_v42  ;;  %v3424_v61 = vld [vmem:[#allocation2 + $0x12a] sm:$0xff] }
 0x150   : > { %v1341_v48 = vpop.f32.mrf.mxu0 }
 0x151   : > { %v10891_v41 = vpop.f32.mrf.mxu1  ;;  %v10893_v54 = vadd.f32 %v1341_v48, %v984_v13  ;;  %v10895_v63 = vadd.f32 %v8928_v14, %v1437_v49  ;;  %v3426_v14 = vld [vmem:[#allocation2 + $0x142] sm:$0xff]  ;;  %v3427_v49 = vld [vmem:[#allocation2 + $0x152] sm:$0xff] }
 0x152   : > { %13172 = vst [vmem:[#allocation42_spill] sm:$0xff] %v10891_v41  ;;  %v8881_v62 = vpop.f32.mrf.mxu0  ;;  %9180 = vmatmul.mubr.msk.f32.gmra.mxu0 %vm257_vm1, %v3422_v12 }
 0x153   : > { %13173 = vst [vmem:[#allocation43_spill] sm:$0xff] %v10893_v54  ;;  %v8931_v45 = vpop.f32.mrf.mxu1  ;;  %v1439_v43 = vadd.f32 %v8881_v62, %v10697_v50  ;;  %9182 = vmatprep.mubr.msk.f32.mxu0 %vm257_vm1, %v3423_v39 }
 0x154   : > { %v10900_v58 = vpop.f32.mrf.mxu0 }
 0x155   : > { %13174 = vst [vmem:[#allocation44_spill] sm:$0xff] %v10900_v58  ;;  %v10902_v60 = vpop.f32.mrf.mxu1  ;;  %v10904_v2 = vadd.f32 %v8931_v45, %v1439_v43  ;;  %v3428_v45 = vld [vmem:[#allocation2 + $0x15a] sm:$0xff] }
 0x156   : > { %13175 = vst [vmem:[#allocation45_spill] sm:$0xff] %v10902_v60  ;;  %v8884_v1 = vpop.f32.mrf.mxu0  ;;  %9183 = vmatmul.mubr.msk.f32.gmra.mxu0 %vm257_vm1, %v3424_v61  ;;  %v3429_v61 = vld [vmem:[#allocation2 + $0x16a] sm:$0xff] }
 0x157   : > { %v8934_v42 = vpop.f32.mrf.mxu1  ;;  %v1441_v23 = vadd.f32 %v8884_v1, %v10711_v56  ;;  %9185 = vmatprep.mubr.msk.f32.mxu0 %vm257_vm1, %v3425_v3 }
 0x158   : > { %v10909_v50 = vpop.f32.mrf.mxu0 }
 0x159   : > { %13176 = vst [vmem:[#allocation46_spill] sm:$0xff] %v10909_v50  ;;  %v10911_v13 = vpop.f32.mrf.mxu1  ;;  %v10913_v12 = vadd.f32 %v8934_v42, %v1441_v23 }
 0x15a   : > { %13177 = vst [vmem:[#allocation47_spill] sm:$0xff] %v10911_v13  ;;  %v8887_v48 = vpop.f32.mrf.mxu0  ;;  %9186 = vmatmul.mubr.msk.f32.gmra.mxu0 %vm257_vm1, %v3426_v14  ;;  %v3430_v14 = vld [vmem:[#allocation2 + $0x172] sm:$0xff]  ;;  %v3897_v13 = vld [vmem:[#allocation2 + $0x8] sm:$0xff] }
 0x15b   : > { %v8937_v39 = vpop.f32.mrf.mxu1  ;;  %v1443_v62 = vadd.f32 %v8887_v48, %v10725_v24  ;;  %9188 = vmatprep.mubr.msk.f32.mxu0 %vm257_vm1, %v3427_v49 }
 0x15c   : > { %v10918_v56 = vpop.f32.mrf.mxu0 }
 0x15d   : > { %13178 = vst [vmem:[#allocation48_spill] sm:$0xff] %v10918_v56  ;;  %v10920_v43 = vpop.f32.mrf.mxu1  ;;  %v10922_v3 = vadd.f32 %v8937_v39, %v1443_v62 }
 0x15e   : > { %13179 = vst [vmem:[#allocation49_spill] sm:$0xff] %v10920_v43  ;;  %v8890_v1 = vpop.f32.mrf.mxu0  ;;  %9189 = vmatmul.mubr.msk.f32.gmra.mxu0 %vm257_vm1, %v3428_v45  ;;  %v3930_v43 = vld [vmem:[#allocation2 + $0x9] sm:$0xff] }
 0x15f   : > { %v8940_v42 = vpop.f32.mrf.mxu1  ;;  %v1445_v23 = vadd.f32 %v8890_v1, %v10739_v20  ;;  %9191 = vmatprep.mubr.msk.f32.mxu0 %vm257_vm1, %v3429_v61  ;;  %v3433_v61 = vld [vmem:[#allocation2 + $0x19a] sm:$0xff] }
 0x160   : > { %v10927_v24 = vpop.f32.mrf.mxu0 }
 0x161   : > { %13180 = vst [vmem:[#allocation52_spill] sm:$0xff] %v10927_v24  ;;  %v10929_v49 = vpop.f32.mrf.mxu1  ;;  %v10931_v48 = vadd.f32 %v8940_v42, %v1445_v23 }
 0x162   : > { %13181 = vst [vmem:[#allocation53_spill] sm:$0xff] %v10929_v49  ;;  %v8893_v56 = vpop.f32.mrf.mxu0  ;;  %9192 = vmatmul.mubr.msk.f32.gmra.mxu0 %vm257_vm1, %v3430_v14 }
 0x163   : > { %v8943_v39 = vpop.f32.mrf.mxu1  ;;  %v1447_v62 = vadd.f32 %v8893_v56, %v10753_v16  ;;  %9194 = vmatprep.mubr.msk.f32.mxu0 %vm257_vm1, %v10559_v25  ;;  %v3434_v16 = vld [vmem:[#allocation2 + $0x1a2] sm:$0xff] }
 0x164   : > { %v10937_v45 = vpop.f32.mrf.mxu0 }
 0x165   : > { %13182 = vst [vmem:[#allocation54_spill] sm:$0xff] %v10937_v45  ;;  %v10939_v20 = vpop.f32.mrf.mxu1  ;;  %v10941_v1 = vadd.f32 %v8943_v39, %v1447_v62 }
 0x166   : > { %13183 = vst [vmem:[#allocation55_spill] sm:$0xff] %v10939_v20  ;;  %v8896_v24 = vpop.f32.mrf.mxu0  ;;  %9195 = vmatmul.mubr.msk.f32.gmra.mxu0 %vm257_vm1, %v10571_v27 }
 0x167   : > { %v8946_v42 = vpop.f32.mrf.mxu1  ;;  %v1449_v23 = vadd.f32 %v8896_v24, %v10767_v8  ;;  %9197 = vmatprep.mubr.msk.f32.mxu0 %vm257_vm1, %v3433_v61 }
 0x168   : > { %v10947_v56 = vpop.f32.mrf.mxu0 }
 0x169   : > { %13184 = vst [vmem:[#allocation56_spill] sm:$0xff] %v10947_v56  ;;  %v10949_v25 = vpop.f32.mrf.mxu1  ;;  %v10951_v14 = vadd.f32 %v8946_v42, %v1449_v23 }
 0x16a   : > { %13185 = vst [vmem:[#allocation57_spill] sm:$0xff] %v10949_v25  ;;  %v8899_v20 = vpop.f32.mrf.mxu0  ;;  %9198 = vmatmul.mubr.msk.f32.gmra.mxu0 %vm257_vm1, %v3434_v16 }
 0x16b   : > { %v8949_v39 = vpop.f32.mrf.mxu1  ;;  %v1451_v62 = vadd.f32 %v8899_v20, %v10777_v19 }
 0x16c   : > { %v10955_v45 = vpop.f32.mrf.mxu0 }
 0x16d   : > { %13186 = vst [vmem:[#allocation58_spill] sm:$0xff] %v10955_v45  ;;  %v10957_v27 = vpop.f32.mrf.mxu1  ;;  %v10959_v8 = vadd.f32 %v8949_v39, %v1451_v62 }
 0x16e   : > { %13187 = vst [vmem:[#allocation59_spill] sm:$0xff] %v10957_v27  ;;  %v8954_v24 = vpop.f32.mrf.mxu0 }
 0x16f   : > { %v10961_v61 = vpop.f32.mrf.mxu1  ;;  %v10964_v56 = vadd.f32 %v8954_v24, %v10795_v31  ;;  %v3928_v24 = vld [vmem:[%s12970_s3] sm:$0xf] }
 0x170   : > { %v10966_v42 = vpop.f32.mrf.mxu0  ;;  %9250 = vmatprep.subr.msk.mxu0 %vm509_vm0, %v3928_v24 }
 0x171   : > { %v10968_v23 = vpop.f32.mrf.mxu1  ;;  %9251 = vmatpush3.msk.msra.mxu0 %vm509_vm0, %v3928_v24 }
 0x172   : > { %v8957_v16 = vpop.f32.mrf.mxu0 }
 0x173   : > { %v10970_v25 = vpop.f32.mrf.mxu1  ;;  %v10973_v19 = vadd.f32 %v8957_v16, %v10807_v57  ;;  %v3929_v57 = vld [vmem:[#allocation2 + $0x1] sm:$0xff] }
 0x174   : > { %v10975_v20 = vpop.f32.mrf.mxu0  ;;  %v3896_v16 = vld [vmem:[#allocation2] sm:$0xff]  ;;  %9202 = vmatprep.mubr.msk.f32.mxu1 %vm257_vm1, %v3929_v57 }
 0x175   : > { %v10977_v39 = vpop.f32.mrf.mxu1  ;;  %9252 = vmatprep.mubr.msk.f32.mxu0 %vm257_vm1, %v3896_v16  ;;  %9203 = vmatmul.mubr.msk.f32.vlgmr.msra.gmra.mxu1 %vm257_vm1, %v3930_v43 }
 0x176   : > { %v8960_v62 = vpop.f32.mrf.mxu0  ;;  %9253 = vmatmul.mubr.msk.f32.vlgmr.msra.gmra.mxu0 %vm257_vm1, %v3897_v13 }
 0x177   : > { %v10979_v27 = vpop.f32.mrf.mxu1  ;;  %v10982_v31 = vadd.f32 %v8960_v62, %v10819_v30 }
 0x178   : > { %v10987_v45 = vpop.f32.mrf.mxu0 }
 0x179   : > { %v10989_v49 = vpop.f32.mrf.mxu1 }
 0x17a   : > { %v8963_v30 = vpop.f32.mrf.mxu0 }
 0x17b   : > { %v10994_v62 = vpop.f32.mrf.mxu1  ;;  %v10999_v50 = vadd.f32 %v8963_v30, %v10835_v32  ;;  %v7913_v32 = vld [vmem:[%s12970_s3 + $0x8] sm:$0xf] }
 0x17c   : > { %v11002_v60 = vpop.f32.mrf.mxu0  ;;  %9300 = vmatprep.subr.msk.mxu1 %vm509_vm0, %v7913_v32 }
 0x17d   : > { %v11004_v58 = vpop.f32.mrf.mxu1  ;;  %9301 = vmatpush3.msk.msra.mxu1 %vm509_vm0, %v7913_v32 }
 0x17e   : > { %v8966_v57 = vpop.f32.mrf.mxu0 }
 0x17f   : > { %v11006_v24 = vpop.f32.mrf.mxu1  ;;  %v11009_v41 = vadd.f32 %v8966_v57, %v10848_v53 }
 0x180   : > { %v11011_v54 = vpop.f32.mrf.mxu0 }
 0x181   : > { %v11013_v16 = vpop.f32.mrf.mxu1 }
 0x182   : > { %v8969_v43 = vpop.f32.mrf.mxu0 }
 0x183   : > { %v11018_v13 = vpop.f32.mrf.mxu1  ;;  %v11022_v30 = vadd.f32 %v8969_v43, %v10860_v5 }
 0x184   : > { %13188 = vst [vmem:[#allocation60_spill] sm:$0xff] %v11018_v13  ;;  %v11025_v53 = vpop.f32.mrf.mxu0 }
 0x185   : > { %13189 = vst [vmem:[#allocation63_spill] sm:$0xff] %v11022_v30  ;;  %13190 = vst [vmem:[#allocation64_spill] sm:$0xff] %v11025_v53  ;;  %v11027_v57 = vpop.f32.mrf.mxu1 }
 0x186   : > { %13191 = vst [vmem:[#allocation65_spill] sm:$0xff] %v11027_v57  ;;  %v8972_v44 = vpop.f32.mrf.mxu0 }
 0x187   : > { %v11029_v6 = vpop.f32.mrf.mxu1  ;;  %v11032_v21 = vadd.f32 %v8972_v44, %v10872_v51 }
 0x188   : > { %13192 = vst [vmem:[#allocation66_spill] sm:$0xff] %v11029_v6  ;;  %v11034_v46 = vpop.f32.mrf.mxu0 }
 0x189   : > { %13193 = vst [vmem:[#allocation67_spill] sm:$0xff] %v11032_v21  ;;  %13194 = vst [vmem:[#allocation68_spill] sm:$0xff] %v11034_v46  ;;  %v11036_v35 = vpop.f32.mrf.mxu1 }
 0x18a   : > { %13195 = vst [vmem:[#allocation69_spill] sm:$0xff] %v11036_v35  ;;  %v8975_v13 = vpop.f32.mrf.mxu0 }
 0x18b   : > { %v11038_v59 = vpop.f32.mrf.mxu1  ;;  %v11041_v5 = vadd.f32 %v8975_v13, %v10884_v36 }
 0x18c   : > { %13196 = vst [vmem:[#allocation70_spill] sm:$0xff] %v11038_v59  ;;  %v11043_v32 = vpop.f32.mrf.mxu0 }
 0x18d   : > { %13197 = vst [vmem:[#allocation71_spill] sm:$0xff] %v11041_v5  ;;  %13198 = vst [vmem:[#allocation72_spill] sm:$0xff] %v11043_v32  ;;  %v11045_v43 = vpop.f32.mrf.mxu1 }
 0x18e   : > { %13199 = vst [vmem:[#allocation73_spill] sm:$0xff] %v11045_v43  ;;  %v8978_v57 = vpop.f32.mrf.mxu0 }
 0x18f   : > { %v11047_v30 = vpop.f32.mrf.mxu1  ;;  %v11050_v51 = vadd.f32 %v8978_v57, %v10895_v63 }
 0x190   : > { %13200 = vst [vmem:[#allocation74_spill] sm:$0xff] %v11047_v30  ;;  %v11052_v44 = vpop.f32.mrf.mxu0 }
 0x191   : > { %13201 = vst [vmem:[#allocation75_spill] sm:$0xff] %v11050_v51  ;;  %13202 = vst [vmem:[#allocation76_spill] sm:$0xff] %v11052_v44  ;;  %v11054_v6 = vpop.f32.mrf.mxu1 }
 0x192   : > { %13203 = vst [vmem:[#allocation77_spill] sm:$0xff] %v11054_v6  ;;  %v8981_v35 = vpop.f32.mrf.mxu0 }
 0x193   : > { %v11056_v21 = vpop.f32.mrf.mxu1  ;;  %v11059_v36 = vadd.f32 %v8981_v35, %v10904_v2 }
 0x194   : > { %13204 = vst [vmem:[#allocation78_spill] sm:$0xff] %v11056_v21  ;;  %v11061_v13 = vpop.f32.mrf.mxu0 }
 0x195   : > { %13205 = vst [vmem:[#allocation79_spill] sm:$0xff] %v11059_v36  ;;  %13206 = vst [vmem:[#allocation80_spill] sm:$0xff] %v11061_v13  ;;  %v11063_v59 = vpop.f32.mrf.mxu1 }
 0x196   : > { %13207 = vst [vmem:[#allocation81_spill] sm:$0xff] %v11063_v59  ;;  %v8984_v43 = vpop.f32.mrf.mxu0 }
 0x197   : > { %v11065_v5 = vpop.f32.mrf.mxu1  ;;  %v11068_v63 = vadd.f32 %v8984_v43, %v10913_v12 }
 0x198   : > { %13208 = vst [vmem:[#allocation82_spill] sm:$0xff] %v11065_v5  ;;  %v11070_v57 = vpop.f32.mrf.mxu0 }
 0x199   : > { %13209 = vst [vmem:[#allocation83_spill] sm:$0xff] %v11068_v63  ;;  %13210 = vst [vmem:[#allocation84_spill] sm:$0xff] %v11070_v57  ;;  %v11072_v30 = vpop.f32.mrf.mxu1 }
 0x19a   : > { %13211 = vst [vmem:[#allocation85_spill] sm:$0xff] %v11072_v30  ;;  %v8987_v6 = vpop.f32.mrf.mxu0 }
 0x19b   : > { %v11074_v51 = vpop.f32.mrf.mxu1  ;;  %v11077_v35 = vadd.f32 %v8987_v6, %v10922_v3 }
 0x19c   : > { %13212 = vst [vmem:[#allocation86_spill] sm:$0xff] %v11074_v51  ;;  %v11079_v2 = vpop.f32.mrf.mxu0 }
 0x19d   : > { %13213 = vst [vmem:[#allocation87_spill] sm:$0xff] %v11077_v35  ;;  %13214 = vst [vmem:[#allocation88_spill] sm:$0xff] %v11079_v2  ;;  %v11081_v21 = vpop.f32.mrf.mxu1 }
 0x19e   : > { %13215 = vst [vmem:[#allocation89_spill] sm:$0xff] %v11081_v21  ;;  %v8990_v59 = vpop.f32.mrf.mxu0 }
 0x19f   : > { %v11083_v36 = vpop.f32.mrf.mxu1  ;;  %v11086_v12 = vadd.f32 %v8990_v59, %v10931_v48 }
 0x1a0   : > { %13216 = vst [vmem:[#allocation90_spill] sm:$0xff] %v11083_v36  ;;  %v11088_v43 = vpop.f32.mrf.mxu0 }
 0x1a1   : > { %13217 = vst [vmem:[#allocation91_spill] sm:$0xff] %v11086_v12  ;;  %13218 = vst [vmem:[#allocation92_spill] sm:$0xff] %v11088_v43  ;;  %v11090_v5 = vpop.f32.mrf.mxu1 }
 0x1a2   : > { %13219 = vst [vmem:[#allocation93_spill] sm:$0xff] %v11090_v5  ;;  %v8993_v30 = vpop.f32.mrf.mxu0 }
 0x1a3   : > { %v11092_v63 = vpop.f32.mrf.mxu1  ;;  %v11095_v6 = vadd.f32 %v8993_v30, %v10941_v1 }
 0x1a4   : > { %13220 = vst [vmem:[#allocation94_spill] sm:$0xff] %v11092_v63  ;;  %v11097_v3 = vpop.f32.mrf.mxu0 }
 0x1a5   : > { %13221 = vst [vmem:[#allocation95_spill] sm:$0xff] %v11095_v6  ;;  %13222 = vst [vmem:[#allocation96_spill] sm:$0xff] %v11097_v3  ;;  %v11099_v51 = vpop.f32.mrf.mxu1 }
 0x1a6   : > { %13223 = vst [vmem:[#allocation97_spill] sm:$0xff] %v11099_v51  ;;  %v8996_v21 = vpop.f32.mrf.mxu0 }
 0x1a7   : > { %v11101_v35 = vpop.f32.mrf.mxu1  ;;  %v11104_v59 = vadd.f32 %v8996_v21, %v10951_v14 }
 0x1a8   : > { %13224 = vst [vmem:[#allocation98_spill] sm:$0xff] %v11101_v35  ;;  %v11106_v48 = vpop.f32.mrf.mxu0 }
 0x1a9   : > { %13225 = vst [vmem:[#allocation99_spill] sm:$0xff] %v11104_v59  ;;  %13226 = vst [vmem:[#allocation100_spill] sm:$0xff] %v11106_v48  ;;  %v11108_v36 = vpop.f32.mrf.mxu1 }
 0x1aa   : > { %13227 = vst [vmem:[#allocation101_spill] sm:$0xff] %v11108_v36  ;;  %v8999_v5 = vpop.f32.mrf.mxu0 }
 0x1ab   : > { %v11110_v12 = vpop.f32.mrf.mxu1  ;;  %v11113_v1 = vadd.f32 %v8999_v5, %v10959_v8 }
 0x1ac   : > { %13228 = vst [vmem:[#allocation102_spill] sm:$0xff] %v11110_v12  ;;  %v11115_v30 = vpop.f32.mrf.mxu0 }
 0x1ad   : > { %13229 = vst [vmem:[#allocation103_spill] sm:$0xff] %v11113_v1  ;;  %13230 = vst [vmem:[#allocation104_spill] sm:$0xff] %v11115_v30  ;;  %v11117_v63 = vpop.f32.mrf.mxu1  ;;  %v11142_v1 = vld [vmem:[%s12970_s3 + $0x10] sm:$0xf] }
 0x1ae   : > { %13231 = vst [vmem:[#allocation105_spill] sm:$0xff] %v11117_v63  ;;  %v9054_v51 = vpop.f32.mrf.mxu0  ;;  %v7947_v63 = vld [vmem:[%s12970_s3 + $0xc] sm:$0xf]  ;;  %13232 = vst [vmem:[#allocation106_spill] sm:$0xff] %v11142_v1  ;;  %9400 = vmatprep.subr.msk.mxu1 %vm509_vm0, %v11142_v1 }
 0x1af   : > { %v11119_v6 = vpop.f32.mrf.mxu1  ;;  %9350 = vmatprep.subr.msk.mxu0 %vm509_vm0, %v7947_v63 }
 0x1b0   : > { %v2822_v35 = vpop.f32.mrf.mxu0  ;;  %9351 = vmatpush3.msk.msra.mxu0 %vm509_vm0, %v7947_v63 }
 0x1b1   : > { %v11121_v21 = vpop.f32.mrf.mxu1 }
 0x1b2   : > { %v11123_v14 = vpop.f32.mrf.mxu0 }
 0x1b3   : > { %v11127_v36 = vpop.f32.mrf.mxu1 }
 0x1b4   : > { %v11125_v59 = vpop.f32.mrf.mxu0 }
 0x1b5   : > { %v11131_v8 = vpop.f32.mrf.mxu1 }
 0x1b6   : > { %v11129_v12 = vpop.f32.mrf.mxu0 }
 0x1b7   : > { %v11149_v48 = vpop.f32.mrf.mxu1 }
 0x1b8   : > { %v11133_v5 = vpop.f32.mrf.mxu0 }
 0x1b9   : > { %v11155_v2 = vpop.f32.mrf.mxu1 }
 0x1ba   : > { %v11144_v30 = vpop.f32.mrf.mxu0 }
 0x1bb   : > { %v11161_v44 = vpop.f32.mrf.mxu1 }
 0x1bc   : > { %v11151_v3 = vpop.f32.mrf.mxu0  ;;  %13236 = vst [vmem:[#allocation110_spill] sm:$0xff] %v11161_v44 }
 0x1bd   : > { %v11167_v46 = vpop.f32.mrf.mxu1 }
 0x1be   : > { %v11153_v43 = vpop.f32.mrf.mxu0  ;;  %13239 = vst [vmem:[#allocation113_spill] sm:$0xff] %v11167_v46 }
 0x1bf   : > { %13233 = vst [vmem:[#allocation107_spill] sm:$0xff] %v11153_v43  ;;  %v11173_v10 = vpop.f32.mrf.mxu1 }
 0x1c0   : > { %v11157_v57 = vpop.f32.mrf.mxu0  ;;  %13242 = vst [vmem:[#allocation116_spill] sm:$0xff] %v11173_v10 }
 0x1c1   : > { %13234 = vst [vmem:[#allocation108_spill] sm:$0xff] %v11157_v57  ;;  %v11179_v57 = vpop.f32.mrf.mxu1 }
 0x1c2   : > { %v11159_v13 = vpop.f32.mrf.mxu0  ;;  %13245 = vst [vmem:[#allocation119_spill] sm:$0xff] %v11179_v57 }
 0x1c3   : > { %13235 = vst [vmem:[#allocation109_spill] sm:$0xff] %v11159_v13 }
 0x1c4   : > { %v11163_v32 = vpop.f32.mrf.mxu0 }
 0x1c5   : > { %13237 = vst [vmem:[#allocation111_spill] sm:$0xff] %v11163_v32  ;;  %v11185_v32 = vpop.f32.mrf.mxu1 }
 0x1c6   : > { %v11165_v63 = vpop.f32.mrf.mxu0  ;;  %13248 = vst [vmem:[#allocation122_spill] sm:$0xff] %v11185_v32 }
 0x1c7   : > { %13238 = vst [vmem:[#allocation112_spill] sm:$0xff] %v11165_v63 }
 0x1c8   : > { %v11169_v1 = vpop.f32.mrf.mxu0 }
 0x1c9   : > { %13240 = vst [vmem:[#allocation114_spill] sm:$0xff] %v11169_v1  ;;  %v11191_v1 = vpop.f32.mrf.mxu1 }
 0x1ca   : > { %v11171_v40 = vpop.f32.mrf.mxu0 }
 0x1cb   : > { %13241 = vst [vmem:[#allocation115_spill] sm:$0xff] %v11171_v40 }
 0x1cc   : > { %v11175_v43 = vpop.f32.mrf.mxu0 }
 0x1cd   : > { %13243 = vst [vmem:[#allocation117_spill] sm:$0xff] %v11175_v43  ;;  %v11197_v43 = vpop.f32.mrf.mxu1 }
 0x1ce   : > { %v11177_v53 = vpop.f32.mrf.mxu0  ;;  %13253 = vst [vmem:[#allocation127_spill] sm:$0xff] %v11197_v43 }
 0x1cf   : > { %13244 = vst [vmem:[#allocation118_spill] sm:$0xff] %v11177_v53 }
 0x1d0   : > { %v11181_v13 = vpop.f32.mrf.mxu0 }
 0x1d1   : > { %13246 = vst [vmem:[#allocation120_spill] sm:$0xff] %v11181_v13  ;;  %v11203_v13 = vpop.f32.mrf.mxu1 }
 0x1d2   : > { %v11183_v44 = vpop.f32.mrf.mxu0 }
 0x1d3   : > { %13247 = vst [vmem:[#allocation121_spill] sm:$0xff] %v11183_v44 }
 0x1d4   : > { %v11187_v63 = vpop.f32.mrf.mxu0 }
 0x1d5   : > { %13249 = vst [vmem:[#allocation123_spill] sm:$0xff] %v11187_v63  ;;  %v11211_v63 = vpop.f32.mrf.mxu1 }
 0x1d6   : > { %v11189_v46 = vpop.f32.mrf.mxu0  ;;  %13258 = vst [vmem:[#allocation132_spill] sm:$0xff] %v11211_v63 }
 0x1d7   : > { %13250 = vst [vmem:[#allocation124_spill] sm:$0xff] %v11189_v46  ;;  %v1810_v46 = vadd.f32 %v10790_v7, %v10793_v9 }
 0x1d8   : > { %v11193_v40 = vpop.f32.mrf.mxu0 }
 0x1d9   : > { %13251 = vst [vmem:[#allocation125_spill] sm:$0xff] %v11193_v40 }
 0x1da   : > { %v11195_v10 = vpop.f32.mrf.mxu0 }
 0x1db   : > { %13252 = vst [vmem:[#allocation126_spill] sm:$0xff] %v11195_v10  ;;  %v2200_v10 = vadd.f32 %v10966_v42, %v1810_v46  ;;  %v1814_v46 = vadd.f32 %v10814_v37, %v10817_v29  ;;  %v1816_v37 = vadd.f32 %v10829_v11, %v10833_v34  ;;  %v2595_v29 = vadd.f32 %v10979_v27, %v10982_v31 }
 0x1dc   : > { %v11199_v53 = vpop.f32.mrf.mxu0 }
 0x1dd   : > { %13254 = vst [vmem:[#allocation128_spill] sm:$0xff] %v11199_v53  ;;  %v2591_v53 = vadd.f32 %v10961_v61, %v10964_v56  ;;  %v2590_v7 = vadd.f32 %v10968_v23, %v2200_v10  ;;  %v2204_v56 = vadd.f32 %v10987_v45, %v1814_v46  ;;  %v11249_v45 = vld [vmem:[%s12969_s2] ss:$0 sm:$0xff]  ;;  %v2986_v11 = vadd.f32 %v11129_v12, %v2595_v29 }
 0x1de   : > { %v11201_v57 = vpop.f32.mrf.mxu0 }
 0x1df   : > { %13255 = vst [vmem:[#allocation129_spill] sm:$0xff] %v11201_v57  ;;  %v1812_v57 = vadd.f32 %v10802_v33, %v10805_v55  ;;  %v2982_v63 = vadd.f32 %v9054_v51, %v2591_v53  ;;  %v2593_v33 = vadd.f32 %v10970_v25, %v10973_v19  ;;  %v2981_v55 = vadd.f32 %v2822_v35, %v2590_v7 }
 0x1e0   : > { %v11205_v44 = vpop.f32.mrf.mxu0  ;;  %v2594_v51 = vadd.f32 %v10989_v49, %v2204_v56 }
 0x1e1   : > { %13256 = vst [vmem:[#allocation130_spill] sm:$0xff] %v11205_v44  ;;  %v11222_v44 = vpop.f32.mrf.mxu1  ;;  %v2202_v9 = vadd.f32 %v10975_v20, %v1812_v57  ;;  %v3372_v23 = vadd.f32 %v11119_v6, %v2982_v63  ;;  %v2984_v20 = vadd.f32 %v11123_v14, %v2593_v33  ;;  %v3371_v19 = vadd.f32 %v11121_v21, %v2981_v55 }
 0x1e2   : > { %v11207_v32 = vpop.f32.mrf.mxu0  ;;  %v2206_v57 = vadd.f32 %v11002_v60, %v1816_v37  ;;  %v11262_v21 = vadd.f32 %v10705_v15, %v10703_v28  ;;  %v2597_v60 = vadd.f32 %v10994_v62, %v10999_v50  ;;  %v2985_v49 = vadd.f32 %v11133_v5, %v2594_v51  ;;  %v13267_v51 = vld [vmem:[#allocation28_spill] sm:$0xff] }
 0x1e3   : > { %13257 = vst [vmem:[#allocation131_spill] sm:$0xff] %v11207_v32  ;;  %v11235_v61 = vpop.f32.mrf.mxu1  ;;  %v2592_v10 = vadd.f32 %v10977_v39, %v2202_v9  ;;  %v3374_v31 = vadd.f32 %v11127_v36, %v2984_v20  ;;  %v11273_v9 = vadd.f32 %v10719_v4, %v10717_v26  ;;  %v11285_v26 = vadd.f32 %v10733_v17, %v10731_v22  ;;  %v13260_v22 = vld [vmem:[#allocation61_spill] sm:$0xff] }
 0x1e4   : > { %v11213_v40 = vpop.f32.mrf.mxu0  ;;  %v2596_v28 = vadd.f32 %v11004_v58, %v2206_v57  ;;  %v2988_v62 = vadd.f32 %v11144_v30, %v2597_v60  ;;  %v1820_v4 = vadd.f32 %v10855_v47, %v10858_v0  ;;  %v3375_v58 = vadd.f32 %v11155_v2, %v2985_v49  ;;  %v13261_v0 = vld [vmem:[#allocation64_spill] sm:$0xff]  ;;  %v13271_v60 = vld [vmem:[#allocation113_spill] sm:$0xff] }
 0x1e5   : > { %v2983_v39 = vadd.f32 %v11125_v59, %v2592_v10  ;;  %v11256_v34 = vpop.f32.mrf.mxu1  ;;  %v1818_v59 = vadd.f32 %v10843_v52, %v10846_v38  ;;  %v3376_v52 = vadd.f32 %v11149_v48, %v2986_v11  ;;  %v11297_v17 = vadd.f32 %v13260_v22, %v10745_v18  ;;  %v11310_v18 = vld [vmem:[%s12970_s3 + $0x14] sm:$0xf] }
 0x1e6   : > { %v11216_v43 = vpop.f32.mrf.mxu0  ;;  %v2987_v30 = vadd.f32 %v11151_v3, %v2596_v28  ;;  %v2210_v10 = vadd.f32 %v13261_v0, %v1820_v4  ;;  %v13263_v3 = vld [vmem:[#allocation110_spill] sm:$0xff]  ;;  %v13268_v11 = vld [vmem:[#allocation63_spill] sm:$0xff]  ;;  %9450 = vmatprep.subr.msk.mxu0 %vm509_vm0, %v11310_v18 }
 0x1e7   : > { %13259 = vst [vmem:[#allocation133_spill] sm:$0xff] %v11216_v43  ;;  %v3373_v14 = vadd.f32 %v11131_v8, %v2983_v39  ;;  %v2208_v15 = vadd.f32 %v11011_v54, %v1818_v59  ;;  %v11278_v38 = vpop.f32.mrf.mxu1  ;;  %v2599_v54 = vadd.f32 %v11006_v24, %v11009_v41  ;;  %v13262_v41 = vld [vmem:[#allocation107_spill] sm:$0xff]  ;;  %v3378_v20 = vadd.f32 %v13263_v3, %v2988_v62  ;;  %v13281_v0 = vld [vmem:[#allocation30_spill] sm:$0xff] }
 0x1e8   : > { %v11224_v32 = vpop.f32.mrf.mxu0  ;;  %v3377_v49 = vadd.f32 %v13271_v60, %v2987_v30  ;;  %v13284_v3 = vld [vmem:[#allocation119_spill] sm:$0xff]  ;;  %v13288_v60 = vld [vmem:[#allocation112_spill] sm:$0xff] }
 0x1e9   : > { %v2598_v47 = vadd.f32 %v11013_v16, %v2208_v15  ;;  %v2990_v24 = vadd.f32 %v13262_v41, %v2599_v54  ;;  %v11302_v2 = vpop.f32.mrf.mxu1  ;;  %v13264_v16 = vld [vmem:[#allocation62_spill] sm:$0xff]  ;;  %v13274_v15 = vld [vmem:[#allocation65_spill] sm:$0xff]  ;;  %v13282_v41 = vld [vmem:[#allocation67_spill] sm:$0xff] }
 0x1ea   : > { %v11230_v42 = vpop.f32.mrf.mxu0  ;;  %v13277_v54 = vld [vmem:[#allocation109_spill] sm:$0xff] }
 0x1ec   : > { %v11237_v43 = vpop.f32.mrf.mxu0 }
 0x1ee   : > { %v9154_v25 = vpop.f32.mrf.mxu0 }
 0x1ef   : > { %v3762_v53 = vadd.f32 %v9154_v25, %v3372_v23 }
 0x1f0   : > { %v3602_v27 = vpop.f32.mrf.mxu0 }
 0x1f1   : > { %v3801_v35 = vadd.f32 %v11249_v45, %v3762_v53  ;;  %v3761_v6 = vadd.f32 %v3602_v27, %v3371_v19  ;;  %v13265_v19 = vld [vmem:[#allocation23_spill] sm:$0xff]  ;;  %v13266_v53 = vld [vmem:[#allocation29_spill] sm:$0xff]  ;;  %v13269_v27 = vld [vmem:[#allocation60_spill] sm:$0xff] }
 0x1f2   : > { %v9157_v12 = vpop.f32.mrf.mxu0  ;;  %v11314_v39 = vadd.f32 %v13265_v19, %v13264_v16  ;;  %v1822_v57 = vadd.f32 %v13267_v51, %v13266_v53  ;;  %v13285_v19 = vld [vmem:[#allocation111_spill] sm:$0xff] }
 0x1f3   : > { %v3833_v63 = vmax.f32 %v3801_v35, 0.0  ;;  %v3800_v36 = vadd.f32 %v11249_v45, %v3761_v6  ;;  %v3764_v7 = vadd.f32 %v9157_v12, %v3374_v31  ;;  %v2601_v31 = vadd.f32 %v13269_v27, %v13268_v11  ;;  %v13270_v35 = vld [vmem:[#allocation108_spill] sm:$0xff] }
 0x1f4   : > { %v3612_v50 = vpop.f32.mrf.mxu0  ;;  %v2989_v6 = vadd.f32 %v13270_v35, %v2598_v47  ;;  %v13280_v47 = vld [vmem:[#allocation39_spill] sm:$0xff] }
 0x1f5   : > { %3865 = vst.msk [vmem:[#allocation2 + $0x21] sm:$0xff] %vm257_vm1, %v3833_v63  ;;  %v3832_v8 = vmax.f32 %v3800_v36, 0.0  ;;  %v3803_v5 = vadd.f32 %v11249_v45, %v3764_v7  ;;  %v3763_v46 = vadd.f32 %v3612_v50, %v3373_v14  ;;  %v13272_v36 = vld [vmem:[#allocation24_spill] sm:$0xff]  ;;  %v13273_v7 = vld [vmem:[#allocation25_spill] sm:$0xff] }
 0x1f6   : > { %v9160_v48 = vpop.f32.mrf.mxu0  ;;  %v11328_v28 = vadd.f32 %v13273_v7, %v13272_v36  ;;  %v13275_v50 = vld [vmem:[#allocation68_spill] sm:$0xff] }
 0x1f7   : > { %3864 = vst.msk [vmem:[#allocation2 + $0x19] sm:$0xff] %vm257_vm1, %v3832_v8  ;;  %v3835_v33 = vmax.f32 %v3803_v5, 0.0  ;;  %v3802_v55 = vadd.f32 %v11249_v45, %v3763_v46  ;;  %v3766_v56 = vadd.f32 %v9160_v48, %v3376_v52  ;;  %v2600_v52 = vadd.f32 %v13274_v15, %v2210_v10  ;;  %v13276_v8 = vld [vmem:[#allocation116_spill] sm:$0xff]  ;;  %v11333_v46 = vpop.f32.mrf.mxu1 }
 0x1f8   : > { %v3622_v23 = vpop.f32.mrf.mxu0  ;;  %v2212_v62 = vadd.f32 %v13275_v50, %v1822_v57  ;;  %v3380_v5 = vadd.f32 %v13276_v8, %v2990_v24  ;;  %v1824_v10 = vadd.f32 %v13281_v0, %v13280_v47  ;;  %v13283_v24 = vld [vmem:[#allocation66_spill] sm:$0xff]  ;;  %v13290_v50 = vld [vmem:[#allocation43_spill] sm:$0xff] }
 0x1f9   : > { %3867 = vst.msk [vmem:[#allocation2 + $0x39] sm:$0xff] %vm257_vm1, %v3835_v33  ;;  %v3834_v37 = vmax.f32 %v3802_v55, 0.0  ;;  %v3805_v29 = vadd.f32 %v11249_v45, %v3766_v56  ;;  %v3765_v25 = vadd.f32 %v3622_v23, %v3375_v58  ;;  %v2992_v58 = vadd.f32 %v13277_v54, %v2601_v31  ;;  %v13278_v55 = vld [vmem:[#allocation26_spill] sm:$0xff]  ;;  %v13279_v56 = vld [vmem:[#allocation27_spill] sm:$0xff]  ;;  %v13286_v31 = vld [vmem:[#allocation69_spill] sm:$0xff] }
 0x1fa   : > { %v9163_v59 = vpop.f32.mrf.mxu0  ;;  %v11340_v22 = vadd.f32 %v13279_v56, %v13278_v55  ;;  %v2603_v23 = vadd.f32 %v13283_v24, %v13282_v41  ;;  %v2991_v53 = vadd.f32 %v13285_v19, %v2600_v52  ;;  %v2602_v35 = vadd.f32 %v13286_v31, %v2212_v62  ;;  %v13291_v62 = vld [vmem:[#allocation42_spill] sm:$0xff]  ;;  %v13293_v54 = vld [vmem:[#allocation71_spill] sm:$0xff] }
 0x1fb   : > { %3866 = vst.msk [vmem:[#allocation2 + $0x31] sm:$0xff] %vm257_vm1, %v3834_v37  ;;  %v3837_v12 = vmax.f32 %v3805_v29, 0.0  ;;  %v3804_v14 = vadd.f32 %v11249_v45, %v3765_v25  ;;  %v3768_v63 = vadd.f32 %v9163_v59, %v3378_v20  ;;  %v3379_v20 = vadd.f32 %v13284_v3, %v2989_v6  ;;  %v13287_v6 = vld [vmem:[#allocation72_spill] sm:$0xff]  ;;  %v13296_v3 = vld [vmem:[#allocation73_spill] sm:$0xff] }
 0x1fc   : > { %v3632_v4 = vpop.f32.mrf.mxu0  ;;  %v11360_v27 = vld [vmem:[#allocation2 + $0x21] sm:$0xff]  ;;  %v2214_v59 = vadd.f32 %v13287_v6, %v1824_v10  ;;  %v1826_v8 = vadd.f32 %v13291_v62, %v13290_v50  ;;  %v3381_v10 = vadd.f32 %v11191_v1, %v2991_v53 }
 0x1fd   : > { %3869 = vst.msk [vmem:[#allocation2 + $0x51] sm:$0xff] %vm257_vm1, %v3837_v12  ;;  %v3836_v48 = vmax.f32 %v3804_v14, 0.0  ;;  %v3807_v30 = vadd.f32 %v11249_v45, %v3768_v63  ;;  %v3767_v33 = vadd.f32 %v3632_v4, %v3377_v49  ;;  %v2994_v49 = vadd.f32 %v13288_v60, %v2603_v23  ;;  %v11365_v12 = vpop.f32.mrf.mxu1  ;;  %v13289_v63 = vld [vmem:[#allocation122_spill] sm:$0xff]  ;;  %v13300_v60 = vld [vmem:[#allocation45_spill] sm:$0xff] }
 0x1fe   : > { %v9166_v37 = vpop.f32.mrf.mxu0  ;;  %v11347_v29 = vld [vmem:[#allocation2 + $0x19] sm:$0xff]  ;;  %v3382_v36 = vadd.f32 %v13289_v63, %v2992_v58 }
 0x1ff   : > { %v11349_v25 = vld [vmem:[#allocation2 + $0x18] sm:$0xff]  ;;  %v11351_v16 = vld [vmem:[#allocation2 + $0x20] sm:$0xff]  ;;  %3868 = vst.msk [vmem:[#allocation2 + $0x49] sm:$0xff] %vm257_vm1, %v3836_v48  ;;  %v3839_v51 = vmax.f32 %v3807_v30, 0.0  ;;  %v3806_v57 = vadd.f32 %v11249_v45, %v3767_v33  ;;  %v3770_v11 = vadd.f32 %v9166_v37, %v3380_v5  ;;  %9205 = vmatprep.mubr.msk.f32.mxu1 %vm257_vm1, %v11347_v29  ;;  %v13294_v48 = vld [vmem:[#allocation70_spill] sm:$0xff]  ;;  %v11399_v53 = vpop.f32.mrf.mxu1 }
 0x200   : > { %9255 = vmatprep.mubr.msk.f32.mxu0 %vm257_vm1, %v11349_v25  ;;  %v3642_v14 = vpop.f32.mrf.mxu0  ;;  %9206 = vmatmul.mubr.msk.f32.gmra.mxu1 %vm257_vm1, %v11360_v27  ;;  %v13292_v5 = vld [vmem:[#allocation44_spill] sm:$0xff]  ;;  %v2605_v30 = vadd.f32 %v13294_v48, %v13293_v54  ;;  %v13295_v33 = vld [vmem:[#allocation114_spill] sm:$0xff]  ;;  %v13305_v54 = vld [vmem:[#allocation117_spill] sm:$0xff] }
 0x201   : > { %9256 = vmatmul.mubr.msk.f32.gmra.mxu0 %vm257_vm1, %v11351_v16  ;;  %3871 = vst.msk [vmem:[#allocation2 + $0x69] sm:$0xff] %vm257_vm1, %v3839_v51  ;;  %v3838_v7 = vmax.f32 %v3806_v57, 0.0  ;;  %v3809_v15 = vadd.f32 %v11249_v45, %v3770_v11  ;;  %v3769_v52 = vadd.f32 %v3642_v14, %v3379_v20  ;;  %v1438_v4 = vadd.f32 %v13292_v5, %v11262_v21  ;;  %v11394_v23 = vld [vmem:[#allocation2 + $0x39] sm:$0xff]  ;;  %v13298_v51 = vld [vmem:[#allocation127_spill] sm:$0xff] }
 0x202   : > { %v2993_v55 = vadd.f32 %v13295_v33, %v2602_v35  ;;  %v9169_v56 = vpop.f32.mrf.mxu0  ;;  %v11381_v47 = vld [vmem:[#allocation2 + $0x31] sm:$0xff]  ;;  %v2604_v20 = vadd.f32 %v13296_v3, %v2214_v59  ;;  %v3384_v1 = vadd.f32 %v13298_v51, %v2994_v49  ;;  %v13301_v49 = vld [vmem:[#allocation46_spill] sm:$0xff]  ;;  %v13306_v33 = vld [vmem:[#allocation77_spill] sm:$0xff] }
 0x203   : > { %v11383_v58 = vld [vmem:[#allocation2 + $0x30] sm:$0xff]  ;;  %v11385_v0 = vld [vmem:[#allocation2 + $0x38] sm:$0xff]  ;;  %3870 = vst.msk [vmem:[#allocation2 + $0x61] sm:$0xff] %vm257_vm1, %v3838_v7  ;;  %v3841_v41 = vmax.f32 %v3809_v15, 0.0  ;;  %v3808_v24 = vadd.f32 %v11249_v45, %v3769_v52  ;;  %v3772_v21 = vadd.f32 %v9169_v56, %v3382_v36  ;;  %9208 = vmatprep.mubr.msk.f32.mxu1 %vm257_vm1, %v11381_v47  ;;  %v1828_v14 = vadd.f32 %v13300_v60, %v1438_v4  ;;  %v13303_v7 = vld [vmem:[#allocation74_spill] sm:$0xff] }
 0x204   : > { %9258 = vmatprep.mubr.msk.f32.mxu0 %vm257_vm1, %v11383_v58  ;;  %v13297_v37 = vld [vmem:[#allocation76_spill] sm:$0xff]  ;;  %v3652_v57 = vpop.f32.mrf.mxu0  ;;  %9209 = vmatmul.mubr.msk.f32.gmra.mxu1 %vm257_vm1, %v11394_v23  ;;  %v13299_v11 = vld [vmem:[#allocation115_spill] sm:$0xff]  ;;  %v1440_v63 = vadd.f32 %v13301_v49, %v11273_v9  ;;  %v3383_v52 = vadd.f32 %v11203_v13, %v2993_v55  ;;  %v2995_v48 = vadd.f32 %v13305_v54, %v2604_v20  ;;  %v13313_v60 = vld [vmem:[#allocation78_spill] sm:$0xff] }
 0x205   : > { %v2216_v19 = vadd.f32 %v13297_v37, %v1826_v8  ;;  %9259 = vmatmul.mubr.msk.f32.gmra.mxu0 %vm257_vm1, %v11385_v0  ;;  %v2996_v31 = vadd.f32 %v13299_v11, %v2605_v30  ;;  %3873 = vst.msk [vmem:[#allocation2 + $0x81] sm:$0xff] %vm257_vm1, %v3841_v41  ;;  %v3840_v35 = vmax.f32 %v3808_v24, 0.0  ;;  %v3811_v6 = vadd.f32 %v11249_v45, %v3772_v21  ;;  %v13302_v36 = vld [vmem:[#allocation75_spill] sm:$0xff]  ;;  %v13307_v56 = vld [vmem:[#allocation80_spill] sm:$0xff]  ;;  %v13308_v41 = vld [vmem:[#allocation118_spill] sm:$0xff]  ;;  %v11432_v21 = vpop.f32.mrf.mxu1 }
 0x206   : > { %v3771_v59 = vadd.f32 %v3652_v57, %v3381_v10  ;;  %v2607_v15 = vadd.f32 %v13303_v7, %v13302_v36  ;;  %v9172_v50 = vpop.f32.mrf.mxu0  ;;  %v11414_v62 = vld [vmem:[#allocation2 + $0x49] sm:$0xff]  ;;  %v11427_v13 = vld [vmem:[#allocation2 + $0x51] sm:$0xff]  ;;  %v2218_v10 = vadd.f32 %v13307_v56, %v1828_v14  ;;  %v3385_v54 = vadd.f32 %v11222_v44, %v2995_v48 }
 0x207   : > { %v11416_v8 = vld [vmem:[#allocation2 + $0x48] sm:$0xff]  ;;  %v11418_v5 = vld [vmem:[#allocation2 + $0x50] sm:$0xff]  ;;  %3872 = vst.msk [vmem:[#allocation2 + $0x79] sm:$0xff] %vm257_vm1, %v3840_v35  ;;  %v3843_v4 = vmax.f32 %v3811_v6, 0.0  ;;  %v3774_v9 = vadd.f32 %v9172_v50, %v3384_v1  ;;  %9211 = vmatprep.mubr.msk.f32.mxu1 %vm257_vm1, %v11414_v62  ;;  %v2606_v55 = vadd.f32 %v13306_v33, %v2216_v19  ;;  %v13309_v20 = vld [vmem:[#allocation132_spill] sm:$0xff]  ;;  %v11465_v48 = vpop.f32.mrf.mxu1 }
 0x208   : > { %13304 = vst [vmem:[#allocation61_spill] sm:$0xff] %v11418_v5  ;;  %v3810_v30 = vadd.f32 %v11249_v45, %v3771_v59  ;;  %9261 = vmatprep.mubr.msk.f32.mxu0 %vm257_vm1, %v11416_v8  ;;  %v2998_v24 = vadd.f32 %v13308_v41, %v2607_v15  ;;  %v3662_v3 = vpop.f32.mrf.mxu0  ;;  %9212 = vmatmul.mubr.msk.f32.gmra.mxu1 %vm257_vm1, %v11427_v13  ;;  %v13310_v57 = vld [vmem:[#allocation47_spill] sm:$0xff]  ;;  %v13311_v35 = vld [vmem:[#allocation48_spill] sm:$0xff]  ;;  %v13319_v41 = vld [vmem:[#allocation121_spill] sm:$0xff] }
 0x209   : > { %9262 = vmatmul.mubr.msk.f32.gmra.mxu0 %vm257_vm1, %v11418_v5  ;;  %v3386_v37 = vadd.f32 %v13309_v20, %v2996_v31  ;;  %3875 = vst.msk [vmem:[#allocation2 + $0x99] sm:$0xff] %vm257_vm1, %v3843_v4  ;;  %v3813_v19 = vadd.f32 %v11249_v45, %v3774_v9  ;;  %v3773_v1 = vadd.f32 %v3662_v3, %v3383_v52  ;;  %v13312_v59 = vld [vmem:[#allocation79_spill] sm:$0xff]  ;;  %v13314_v49 = vld [vmem:[#allocation120_spill] sm:$0xff] }
 0x20a   : > { %v3842_v51 = vmax.f32 %v3810_v30, 0.0  ;;  %v1830_v11 = vadd.f32 %v13310_v57, %v1440_v63  ;;  %v1442_v6 = vadd.f32 %v13311_v35, %v11285_v26  ;;  %v2609_v14 = vadd.f32 %v13313_v60, %v13312_v59  ;;  %v9175_v7 = vpop.f32.mrf.mxu0  ;;  %v11447_v15 = vld [vmem:[#allocation2 + $0x61] sm:$0xff]  ;;  %v11460_v4 = vld [vmem:[#allocation2 + $0x69] sm:$0xff]  ;;  %v13318_v33 = vld [vmem:[#allocation84_spill] sm:$0xff] }
 0x20b   : > { %v2997_v36 = vadd.f32 %v13314_v49, %v2606_v55  ;;  %v11449_v31 = vld [vmem:[#allocation2 + $0x60] sm:$0xff]  ;;  %v11451_v50 = vld [vmem:[#allocation2 + $0x68] sm:$0xff]  ;;  %v3845_v63 = vmax.f32 %v3813_v19, 0.0  ;;  %v3812_v52 = vadd.f32 %v11249_v45, %v3773_v1  ;;  %v3776_v26 = vadd.f32 %v9175_v7, %v3386_v37  ;;  %9214 = vmatprep.mubr.msk.f32.mxu1 %vm257_vm1, %v11447_v15  ;;  %v13322_v1 = vld [vmem:[#allocation83_spill] sm:$0xff] }
 0x20c   : > { %13315 = vst [vmem:[#allocation64_spill] sm:$0xff] %v11449_v31  ;;  %13316 = vst [vmem:[#allocation107_spill] sm:$0xff] %v11451_v50  ;;  %9264 = vmatprep.mubr.msk.f32.mxu0 %vm257_vm1, %v11449_v31  ;;  %v13317_v30 = vld [vmem:[#allocation81_spill] sm:$0xff]  ;;  %v2220_v55 = vadd.f32 %v13318_v33, %v1830_v11  ;;  %v3388_v44 = vadd.f32 %v11235_v61, %v2998_v24  ;;  %v3672_v56 = vpop.f32.mrf.mxu0  ;;  %9215 = vmatmul.mubr.msk.f32.gmra.mxu1 %vm257_vm1, %v11460_v4  ;;  %v13321_v61 = vld [vmem:[#allocation52_spill] sm:$0xff] }
 0x20d   : > { %3874 = vst.msk [vmem:[#allocation2 + $0x91] sm:$0xff] %vm257_vm1, %v3842_v51  ;;  %v2608_v9 = vadd.f32 %v13317_v30, %v2218_v10  ;;  %9265 = vmatmul.mubr.msk.f32.gmra.mxu0 %vm257_vm1, %v11451_v50  ;;  %v3000_v3 = vadd.f32 %v13319_v41, %v2609_v14  ;;  %3877 = vst.msk [vmem:[#allocation2 + $0xb1] sm:$0xff] %vm257_vm1, %v3845_v63  ;;  %v3844_v20 = vmax.f32 %v3812_v52, 0.0  ;;  %v13320_v51 = vld [vmem:[#allocation49_spill] sm:$0xff]  ;;  %v13323_v57 = vld [vmem:[#allocation82_spill] sm:$0xff] }
 0x20e   : > { %v3815_v10 = vadd.f32 %v11249_v45, %v3776_v26  ;;  %v3775_v37 = vadd.f32 %v3672_v56, %v3385_v54  ;;  %v1832_v19 = vadd.f32 %v13320_v51, %v1442_v6  ;;  %v1444_v24 = vadd.f32 %v13321_v61, %v11297_v17  ;;  %v9178_v59 = vpop.f32.mrf.mxu0  ;;  %v11480_v60 = vld [vmem:[#allocation2 + $0x79] sm:$0xff]  ;;  %v13326_v7 = vld [vmem:[#allocation123_spill] sm:$0xff]  ;;  %v11498_v56 = vpop.f32.mrf.mxu1 }
 0x20f   : > { %v2611_v11 = vadd.f32 %v13323_v57, %v13322_v1  ;;  %v3387_v35 = vadd.f32 %v11256_v34, %v2997_v36  ;;  %v11482_v14 = vld [vmem:[#allocation2 + $0x78] sm:$0xff]  ;;  %v11484_v49 = vld [vmem:[#allocation2 + $0x80] sm:$0xff]  ;;  %v2999_v63 = vadd.f32 %v13326_v7, %v2608_v9  ;;  %3876 = vst.msk [vmem:[#allocation2 + $0xa9] sm:$0xff] %vm257_vm1, %v3844_v20  ;;  %v3778_v17 = vadd.f32 %v9178_v59, %v3388_v44  ;;  %v13332_v1 = vld [vmem:[#allocation87_spill] sm:$0xff] }
 0x210   : > { %13324 = vst [vmem:[#allocation110_spill] sm:$0xff] %v11482_v14  ;;  %13325 = vst [vmem:[#allocation62_spill] sm:$0xff] %v11484_v49  ;;  %v3847_v6 = vmax.f32 %v3815_v10, 0.0  ;;  %v3814_v54 = vadd.f32 %v11249_v45, %v3775_v37  ;;  %9217 = vmatprep.mubr.msk.f32.mxu1 %vm257_vm1, %v11480_v60  ;;  %9267 = vmatprep.mubr.msk.f32.mxu0 %vm257_vm1, %v11482_v14  ;;  %v11493_v34 = vld [vmem:[#allocation2 + $0x81] sm:$0xff]  ;;  %v13328_v26 = vld [vmem:[#allocation88_spill] sm:$0xff]  ;;  %v3682_v41 = vpop.f32.mrf.mxu0  ;;  %v3390_v44 = vadd.f32 %v11278_v38, %v3000_v3 }
 0x211   : > { %v13327_v36 = vld [vmem:[#allocation85_spill] sm:$0xff]  ;;  %v2222_v30 = vadd.f32 %v13328_v26, %v1832_v19  ;;  %v13329_v33 = vld [vmem:[#allocation124_spill] sm:$0xff]  ;;  %9218 = vmatmul.mubr.msk.f32.gmra.mxu1 %vm257_vm1, %v11493_v34  ;;  %9268 = vmatmul.mubr.msk.f32.gmra.mxu0 %vm257_vm1, %v11484_v49  ;;  %v3777_v10 = vadd.f32 %v3682_v41, %v3387_v35  ;;  %v13331_v19 = vld [vmem:[#allocation54_spill] sm:$0xff] }
 0x212   : > { %v2610_v52 = vadd.f32 %v13327_v36, %v2220_v55  ;;  %v3002_v9 = vadd.f32 %v13329_v33, %v2611_v11  ;;  %3879 = vst.msk [vmem:[#allocation2 + $0xc9] sm:$0xff] %vm257_vm1, %v3847_v6  ;;  %v3846_v20 = vmax.f32 %v3814_v54, 0.0  ;;  %v3817_v55 = vadd.f32 %v11249_v45, %v3778_v17  ;;  %v13330_v37 = vld [vmem:[#allocation53_spill] sm:$0xff]  ;;  %v13333_v57 = vld [vmem:[#allocation86_spill] sm:$0xff]  ;;  %v9181_v36 = vpop.f32.mrf.mxu0  ;;  %v13339_v33 = vld [vmem:[#allocation92_spill] sm:$0xff] }
 0x213   : > { %v1834_v51 = vadd.f32 %v13330_v37, %v1444_v24  ;;  %v1446_v61 = vadd.f32 %v13331_v19, %v11314_v39  ;;  %v2613_v11 = vadd.f32 %v13333_v57, %v13332_v1  ;;  %v13334_v59 = vld [vmem:[#allocation125_spill] sm:$0xff]  ;;  %v3389_v6 = vadd.f32 %v11302_v2, %v2999_v63  ;;  %v11531_v63 = vpop.f32.mrf.mxu1  ;;  %v13343_v1 = vld [vmem:[#allocation91_spill] sm:$0xff]  ;;  %v13344_v57 = vld [vmem:[#allocation90_spill] sm:$0xff] }
 0x214   : > { %v3001_v7 = vadd.f32 %v13334_v59, %v2610_v52  ;;  %v11513_v26 = vld [vmem:[#allocation2 + $0x91] sm:$0xff]  ;;  %3878 = vst.msk [vmem:[#allocation2 + $0xc1] sm:$0xff] %vm257_vm1, %v3846_v20  ;;  %v3849_v24 = vmax.f32 %v3817_v55, 0.0  ;;  %v3816_v35 = vadd.f32 %v11249_v45, %v3777_v10  ;;  %v3780_v39 = vadd.f32 %v9181_v36, %v3390_v44  ;;  %v11526_v54 = vld [vmem:[#allocation2 + $0x99] sm:$0xff]  ;;  %v3692_v20 = vpop.f32.mrf.mxu0  ;;  %v13340_v44 = vld [vmem:[#allocation126_spill] sm:$0xff] }
 0x215   : > { %v11515_v38 = vld [vmem:[#allocation2 + $0x90] sm:$0xff]  ;;  %v11517_v3 = vld [vmem:[#allocation2 + $0x98] sm:$0xff]  ;;  %9220 = vmatprep.mubr.msk.f32.mxu1 %vm257_vm1, %v11513_v26  ;;  %13337 = vst [vmem:[#allocation28_spill] sm:$0xff] %v11526_v54  ;;  %v13338_v17 = vld [vmem:[#allocation89_spill] sm:$0xff]  ;;  %v2224_v41 = vadd.f32 %v13339_v33, %v1834_v51  ;;  %v3392_v2 = vadd.f32 %v11333_v46, %v3002_v9  ;;  %v3004_v55 = vadd.f32 %v13340_v44, %v2613_v11 }
 0x216   : > { %13335 = vst [vmem:[#allocation23_spill] sm:$0xff] %v11515_v38  ;;  %13336 = vst [vmem:[#allocation29_spill] sm:$0xff] %v11517_v3  ;;  %9270 = vmatprep.mubr.msk.f32.mxu0 %vm257_vm1, %v11515_v38  ;;  %v2612_v52 = vadd.f32 %v13338_v17, %v2222_v30  ;;  %9221 = vmatmul.mubr.msk.f32.gmra.mxu1 %vm257_vm1, %v11526_v54  ;;  %v3848_v10 = vmax.f32 %v3816_v35, 0.0  ;;  %v3819_v30 = vadd.f32 %v11249_v45, %v3780_v39  ;;  %v13341_v51 = vld [vmem:[#allocation55_spill] sm:$0xff]  ;;  %v13342_v46 = vld [vmem:[#allocation56_spill] sm:$0xff]  ;;  %v9184_v17 = vpop.f32.mrf.mxu0 }
 0x217   : > { %9271 = vmatmul.mubr.msk.f32.gmra.mxu0 %vm257_vm1, %v11517_v3  ;;  %3881 = vst.msk [vmem:[#allocation2 + $0xe1] sm:$0xff] %vm257_vm1, %v3849_v24  ;;  %v3779_v37 = vadd.f32 %v3692_v20, %v3389_v6  ;;  %v1836_v19 = vadd.f32 %v13341_v51, %v1446_v61  ;;  %v1448_v9 = vadd.f32 %v13342_v46, %v11328_v28  ;;  %v11546_v33 = vld [vmem:[#allocation2 + $0xa9] sm:$0xff]  ;;  %v13348_v35 = vld [vmem:[#allocation128_spill] sm:$0xff]  ;;  %v13352_v46 = vld [vmem:[#allocation129_spill] sm:$0xff] }
 0x218   : > { %v2615_v59 = vadd.f32 %v13344_v57, %v13343_v1  ;;  %v3391_v36 = vadd.f32 %v11365_v12, %v3001_v7  ;;  %13345 = vst [vmem:[#allocation63_spill] sm:$0xff] %v11546_v33  ;;  %v11548_v11 = vld [vmem:[#allocation2 + $0xa8] sm:$0xff]  ;;  %v11550_v24 = vld [vmem:[#allocation2 + $0xb0] sm:$0xff]  ;;  %v3003_v39 = vadd.f32 %v13348_v35, %v2612_v52  ;;  %3880 = vst.msk [vmem:[#allocation2 + $0xd9] sm:$0xff] %vm257_vm1, %v3848_v10  ;;  %v3851_v61 = vmax.f32 %v3819_v30, 0.0  ;;  %v11564_v1 = vpop.f32.mrf.mxu1  ;;  %v3702_v10 = vpop.f32.mrf.mxu0 }
 0x219   : > { %13346 = vst [vmem:[#allocation60_spill] sm:$0xff] %v11548_v11  ;;  %13347 = vst [vmem:[#allocation108_spill] sm:$0xff] %v11550_v24  ;;  %v3818_v6 = vadd.f32 %v11249_v45, %v3779_v37  ;;  %v3782_v28 = vadd.f32 %v9184_v17, %v3392_v2  ;;  %9223 = vmatprep.mubr.msk.f32.mxu1 %vm257_vm1, %v11546_v33  ;;  %9273 = vmatprep.mubr.msk.f32.mxu0 %vm257_vm1, %v11548_v11  ;;  %v11559_v12 = vld [vmem:[#allocation2 + $0xb1] sm:$0xff]  ;;  %v13350_v7 = vld [vmem:[#allocation93_spill] sm:$0xff] }
 0x21a   : > { %13349 = vst [vmem:[#allocation113_spill] sm:$0xff] %v11559_v12  ;;  %v2614_v20 = vadd.f32 %v13350_v7, %v2224_v41  ;;  %v13351_v44 = vld [vmem:[#allocation96_spill] sm:$0xff]  ;;  %v3006_v52 = vadd.f32 %v13352_v46, %v2615_v59  ;;  %9224 = vmatmul.mubr.msk.f32.gmra.mxu1 %vm257_vm1, %v11559_v12  ;;  %v3394_v2 = vadd.f32 %v11399_v53, %v3004_v55  ;;  %3883 = vst.msk [vmem:[#allocation2 + $0xf9] sm:$0xff] %vm257_vm1, %v3851_v61  ;;  %v13354_v59 = vld [vmem:[#allocation58_spill] sm:$0xff]  ;;  %v9187_v33 = vpop.f32.mrf.mxu0 }
 0x21b   : > { %v2226_v51 = vadd.f32 %v13351_v44, %v1836_v19  ;;  %9274 = vmatmul.mubr.msk.f32.gmra.mxu0 %vm257_vm1, %v11550_v24  ;;  %v3850_v30 = vmax.f32 %v3818_v6, 0.0  ;;  %v3821_v41 = vadd.f32 %v11249_v45, %v3782_v28  ;;  %v3781_v37 = vadd.f32 %v3702_v10, %v3391_v36  ;;  %v13353_v19 = vld [vmem:[#allocation57_spill] sm:$0xff]  ;;  %v13355_v35 = vld [vmem:[#allocation95_spill] sm:$0xff]  ;;  %v13356_v7 = vld [vmem:[#allocation94_spill] sm:$0xff] }
 0x21c   : > { %v1838_v57 = vadd.f32 %v13353_v19, %v1448_v9  ;;  %v1450_v17 = vadd.f32 %v13354_v59, %v11340_v22  ;;  %v2617_v44 = vadd.f32 %v13356_v7, %v13355_v35  ;;  %v13357_v46 = vld [vmem:[#allocation130_spill] sm:$0xff]  ;;  %v11581_v53 = vld [vmem:[#allocation2 + $0xc0] sm:$0xff]  ;;  %v3393_v61 = vadd.f32 %v11432_v21, %v3003_v39  ;;  %v13362_v10 = vld [vmem:[#allocation100_spill] sm:$0xff]  ;;  %v9146_v39 = vpop.f32.mrf.mxu1 }
 0x21d   : > { %v3005_v12 = vadd.f32 %v13357_v46, %v2614_v20  ;;  %v11579_v54 = vld [vmem:[#allocation2 + $0xc1] sm:$0xff]  ;;  %13358 = vst [vmem:[#allocation24_spill] sm:$0xff] %v11581_v53  ;;  %3882 = vst.msk [vmem:[#allocation2 + $0xf1] sm:$0xff] %vm257_vm1, %v3850_v30  ;;  %v3853_v9 = vmax.f32 %v3821_v41, 0.0  ;;  %v3820_v36 = vadd.f32 %v11249_v45, %v3781_v37  ;;  %v3784_v22 = vadd.f32 %v9187_v33, %v3394_v2  ;;  %v11592_v6 = vld [vmem:[#allocation2 + $0xc9] sm:$0xff]  ;;  %v3712_v30 = vpop.f32.mrf.mxu0 }
 0x21e   : > { %v11583_v55 = vld [vmem:[#allocation2 + $0xc8] sm:$0xff]  ;;  %9226 = vmatprep.mubr.msk.f32.mxu1 %vm257_vm1, %v11579_v54  ;;  %9276 = vmatprep.mubr.msk.f32.mxu0 %vm257_vm1, %v11581_v53  ;;  %13360 = vst [vmem:[#allocation65_spill] sm:$0xff] %v11592_v6  ;;  %v13361_v28 = vld [vmem:[#allocation97_spill] sm:$0xff]  ;;  %v2228_v19 = vadd.f32 %v13362_v10, %v1838_v57  ;;  %v3396_v21 = vadd.f32 %v11465_v48, %v3006_v52  ;;  %v13363_v33 = vld [vmem:[#allocation131_spill] sm:$0xff] }
 0x21f   : > { %13359 = vst [vmem:[#allocation25_spill] sm:$0xff] %v11583_v55  ;;  %v2616_v20 = vadd.f32 %v13361_v28, %v2226_v51  ;;  %9227 = vmatmul.mubr.msk.f32.gmra.mxu1 %vm257_vm1, %v11592_v6  ;;  %9277 = vmatmul.mubr.msk.f32.gmra.mxu0 %vm257_vm1, %v11583_v55  ;;  %v3008_v2 = vadd.f32 %v13363_v33, %v2617_v44  ;;  %3885 = vst.msk [vmem:[#allocation2 + $0x111] sm:$0xff] %vm257_vm1, %v3853_v9  ;;  %v3852_v41 = vmax.f32 %v3820_v36, 0.0  ;;  %v13364_v59 = vld [vmem:[#allocation59_spill] sm:$0xff]  ;;  %v13366_v48 = vld [vmem:[#allocation98_spill] sm:$0xff]  ;;  %v9190_v46 = vpop.f32.mrf.mxu0 }
 0x220   : > { %v3823_v37 = vadd.f32 %v11249_v45, %v3784_v22  ;;  %v3783_v51 = vadd.f32 %v3712_v30, %v3393_v61  ;;  %v1840_v57 = vadd.f32 %v13364_v59, %v1450_v17  ;;  %v13365_v35 = vld [vmem:[#allocation99_spill] sm:$0xff]  ;;  %v3395_v7 = vadd.f32 %v11498_v56, %v3005_v12  ;;  %v11608_v28 = vld [vmem:[#allocation2 + $0xd9] sm:$0xff]  ;;  %v11621_v56 = vld [vmem:[#allocation2 + $0xe1] sm:$0xff] }
 0x221   : > { %v2619_v52 = vadd.f32 %v13366_v48, %v13365_v35  ;;  %v11610_v10 = vld [vmem:[#allocation2 + $0xd8] sm:$0xff]  ;;  %v11612_v6 = vld [vmem:[#allocation2 + $0xe0] sm:$0xff]  ;;  %v3007_v44 = vadd.f32 %v11213_v40, %v2616_v20  ;;  %3884 = vst.msk [vmem:[#allocation2 + $0x109] sm:$0xff] %vm257_vm1, %v3852_v41  ;;  %v3786_v17 = vadd.f32 %v9190_v46, %v3396_v21  ;;  %9229 = vmatprep.mubr.msk.f32.mxu1 %vm257_vm1, %v11608_v28  ;;  %v3352_v20 = vpop.f32.mrf.mxu1  ;;  %v3722_v41 = vpop.f32.mrf.mxu0  ;;  %v13372_v59 = vld [vmem:[#allocation103_spill] sm:$0xff] }
 0x222   : > { %13367 = vst [vmem:[#allocation68_spill] sm:$0xff] %v11610_v10  ;;  %13368 = vst [vmem:[#allocation116_spill] sm:$0xff] %v11612_v6  ;;  %v3855_v9 = vmax.f32 %v3823_v37, 0.0  ;;  %v3822_v61 = vadd.f32 %v11249_v45, %v3783_v51  ;;  %9279 = vmatprep.mubr.msk.f32.mxu0 %vm257_vm1, %v11610_v10  ;;  %v13369_v12 = vld [vmem:[#allocation101_spill] sm:$0xff]  ;;  %v13370_v22 = vld [vmem:[#allocation104_spill] sm:$0xff]  ;;  %v3398_v21 = vadd.f32 %v11531_v63, %v3008_v2 }
 0x223   : > { %v2618_v36 = vadd.f32 %v13369_v12, %v2228_v19  ;;  %v2230_v30 = vadd.f32 %v13370_v22, %v1840_v57  ;;  %v13371_v33 = vld [vmem:[#allocation133_spill] sm:$0xff]  ;;  %9230 = vmatmul.mubr.msk.f32.gmra.mxu1 %vm257_vm1, %v11621_v56  ;;  %9280 = vmatmul.mubr.msk.f32.gmra.mxu0 %vm257_vm1, %v11612_v6  ;;  %v3825_v51 = vadd.f32 %v11249_v45, %v3786_v17  ;;  %v13373_v57 = vld [vmem:[#allocation102_spill] sm:$0xff] }
 0x224   : > { %v3010_v40 = vadd.f32 %v13371_v33, %v2619_v52  ;;  %3887 = vst.msk [vmem:[#allocation2 + $0x129] sm:$0xff] %vm257_vm1, %v3855_v9  ;;  %v3854_v37 = vmax.f32 %v3822_v61, 0.0  ;;  %v3785_v19 = vadd.f32 %v3722_v41, %v3395_v7  ;;  %v2621_v35 = vadd.f32 %v13373_v57, %v13372_v59  ;;  %v9193_v52 = vpop.f32.mrf.mxu0  ;;  %v11636_v46 = vld [vmem:[#allocation2 + $0xf1] sm:$0xff]  ;;  %v13376_v61 = vld [vmem:[#allocation105_spill] sm:$0xff]  ;;  %v9149_v33 = vpop.f32.mrf.mxu1 }
 0x225   : > { %v3009_v48 = vadd.f32 %v11224_v32, %v2618_v36  ;;  %v11638_v12 = vld [vmem:[#allocation2 + $0xf0] sm:$0xff]  ;;  %v11640_v22 = vld [vmem:[#allocation2 + $0xf8] sm:$0xff]  ;;  %v3397_v63 = vadd.f32 %v11564_v1, %v3007_v44  ;;  %v3857_v2 = vmax.f32 %v3825_v51, 0.0  ;;  %v3788_v7 = vadd.f32 %v9193_v52, %v3398_v21  ;;  %9232 = vmatprep.mubr.msk.f32.mxu1 %vm257_vm1, %v11636_v46 }
 0x226   : > { %13374 = vst [vmem:[#allocation109_spill] sm:$0xff] %v11638_v12  ;;  %13375 = vst [vmem:[#allocation26_spill] sm:$0xff] %v11640_v22  ;;  %v3824_v9 = vadd.f32 %v11249_v45, %v3785_v19  ;;  %9282 = vmatprep.mubr.msk.f32.mxu0 %vm257_vm1, %v11638_v12  ;;  %v11649_v32 = vld [vmem:[#allocation2 + $0xf9] sm:$0xff]  ;;  %v2620_v17 = vadd.f32 %v13376_v61, %v2230_v30  ;;  %v3400_v36 = vadd.f32 %v9146_v39, %v3010_v40  ;;  %v3732_v41 = vpop.f32.mrf.mxu0 }
 0x227   : > { %3886 = vst.msk [vmem:[#allocation2 + $0x121] sm:$0xff] %vm257_vm1, %v3854_v37  ;;  %9233 = vmatmul.mubr.msk.f32.gmra.mxu1 %vm257_vm1, %v11649_v32  ;;  %9283 = vmatmul.mubr.msk.f32.gmra.mxu0 %vm257_vm1, %v11640_v22  ;;  %v3012_v1 = vadd.f32 %v11230_v42, %v2621_v35  ;;  %3889 = vst.msk [vmem:[#allocation2 + $0x141] sm:$0xff] %vm257_vm1, %v3857_v2  ;;  %v3827_v21 = vadd.f32 %v11249_v45, %v3788_v7 }
 0x228   : > { %v3856_v44 = vmax.f32 %v3824_v9, 0.0  ;;  %v3787_v37 = vadd.f32 %v3732_v41, %v3397_v63  ;;  %v3399_v51 = vadd.f32 %v3352_v20, %v3009_v48  ;;  %v9196_v19 = vpop.f32.mrf.mxu0  ;;  %v11659_v30 = vld [vmem:[#allocation2 + $0x109] sm:$0xff]  ;;  %v3011_v59 = vadd.f32 %v11237_v43, %v2620_v17  ;;  %v11672_v20 = vld [vmem:[#allocation2 + $0x111] sm:$0xff]  ;;  %v3362_v48 = vpop.f32.mrf.mxu1 }
 0x229   : > { %v11661_v39 = vld [vmem:[#allocation2 + $0x108] sm:$0xff]  ;;  %v11663_v40 = vld [vmem:[#allocation2 + $0x110] sm:$0xff]  ;;  %v3859_v57 = vmax.f32 %v3827_v21, 0.0  ;;  %v3790_v35 = vadd.f32 %v9196_v19, %v3400_v36  ;;  %9235 = vmatprep.mubr.msk.f32.mxu1 %vm257_vm1, %v11659_v30  ;;  %v3402_v43 = vadd.f32 %v9149_v33, %v3012_v1 }
 0x22a   : > { %13377 = vst [vmem:[#allocation27_spill] sm:$0xff] %v11661_v39  ;;  %13378 = vst [vmem:[#allocation39_spill] sm:$0xff] %v11663_v40  ;;  %v3826_v42 = vadd.f32 %v11249_v45, %v3787_v37  ;;  %9285 = vmatprep.mubr.msk.f32.mxu0 %vm257_vm1, %v11661_v39  ;;  %v3742_v52 = vpop.f32.mrf.mxu0  ;;  %v3401_v41 = vadd.f32 %v3362_v48, %v3011_v59 }
 0x22b   : > { %3888 = vst.msk [vmem:[#allocation2 + $0x139] sm:$0xff] %vm257_vm1, %v3856_v44  ;;  %9236 = vmatmul.mubr.msk.f32.gmra.mxu1 %vm257_vm1, %v11672_v20  ;;  %9286 = vmatmul.mubr.msk.f32.gmra.mxu0 %vm257_vm1, %v11663_v40  ;;  %3891 = vst.msk [vmem:[#allocation2 + $0x159] sm:$0xff] %vm257_vm1, %v3859_v57  ;;  %v3829_v2 = vadd.f32 %v11249_v45, %v3790_v35  ;;  %v3789_v9 = vadd.f32 %v3742_v52, %v3399_v51  ;;  %v11692_v1 = vld [vmem:[#allocation2 + $0x129] sm:$0xff] }
 0x22c   : > { %v3858_v63 = vmax.f32 %v3826_v42, 0.0  ;;  %v9199_v7 = vpop.f32.mrf.mxu0 }
 0x22d   : > { %v3861_v44 = vmax.f32 %v3829_v2, 0.0  ;;  %v3828_v21 = vadd.f32 %v11249_v45, %v3789_v9  ;;  %v3792_v33 = vadd.f32 %v9199_v7, %v3402_v43 }
 0x22e   : > { %v11680_v61 = vld [vmem:[#allocation2 + $0x121] sm:$0xff]  ;;  %3890 = vst.msk [vmem:[#allocation2 + $0x151] sm:$0xff] %vm257_vm1, %v3858_v63  ;;  %v3752_v37 = vpop.f32.mrf.mxu0 }
 0x22f   : > { %v11682_v17 = vld [vmem:[#allocation2 + $0x120] sm:$0xff]  ;;  %v11684_v36 = vld [vmem:[#allocation2 + $0x128] sm:$0xff]  ;;  %9238 = vmatprep.mubr.msk.f32.mxu1 %vm257_vm1, %v11680_v61  ;;  %3893 = vst.msk [vmem:[#allocation2 + $0x171] sm:$0xff] %vm257_vm1, %v3861_v44  ;;  %v3860_v51 = vmax.f32 %v3828_v21, 0.0  ;;  %v3831_v19 = vadd.f32 %v11249_v45, %v3792_v33  ;;  %v3791_v59 = vadd.f32 %v3752_v37, %v3401_v41 }
 0x230   : > { %13379 = vst [vmem:[#allocation30_spill] sm:$0xff] %v11682_v17  ;;  %13380 = vst [vmem:[#allocation67_spill] sm:$0xff] %v11684_v36  ;;  %9288 = vmatprep.mubr.msk.f32.mxu0 %vm257_vm1, %v11682_v17  ;;  %9239 = vmatmul.mubr.msk.f32.gmra.mxu1 %vm257_vm1, %v11692_v1  ;;  %v11712_v43 = vld [vmem:[#allocation2 + $0x141] sm:$0xff] }
 0x231   : > { %9289 = vmatmul.mubr.msk.f32.gmra.mxu0 %vm257_vm1, %v11684_v36  ;;  %3892 = vst.msk [vmem:[#allocation2 + $0x169] sm:$0xff] %vm257_vm1, %v3860_v51  ;;  %v3863_v48 = vmax.f32 %v3831_v19, 0.0  ;;  %v3830_v52 = vadd.f32 %v11249_v45, %v3791_v59  ;;  %v4611_v41 = vld [vmem:[#allocation2 + $0x2] sm:$0xff]  ;;  %v4612_v51 = vld [vmem:[#allocation2 + $0xa] sm:$0xff] }
 0x232   : > { %v11700_v57 = vld [vmem:[#allocation2 + $0x139] sm:$0xff] }
 0x233   : > { %v11702_v42 = vld [vmem:[#allocation2 + $0x138] sm:$0xff]  ;;  %v11704_v35 = vld [vmem:[#allocation2 + $0x140] sm:$0xff]  ;;  %9241 = vmatprep.mubr.msk.f32.mxu1 %vm257_vm1, %v11700_v57  ;;  %3895 = vst.msk [vmem:[#allocation2 + $0x189] sm:$0xff] %vm257_vm1, %v3863_v48  ;;  %v3862_v63 = vmax.f32 %v3830_v52, 0.0 }
 0x234   : > { %13381 = vst [vmem:[#allocation66_spill] sm:$0xff] %v11702_v42  ;;  %13382 = vst [vmem:[#allocation119_spill] sm:$0xff] %v11704_v35  ;;  %9291 = vmatprep.mubr.msk.f32.mxu0 %vm257_vm1, %v11702_v42  ;;  %9242 = vmatmul.mubr.msk.f32.gmra.mxu1 %vm257_vm1, %v11712_v43  ;;  %v11730_v7 = vld [vmem:[#allocation2 + $0x159] sm:$0xff] }
 0x235   : > { %9292 = vmatmul.mubr.msk.f32.gmra.mxu0 %vm257_vm1, %v11704_v35  ;;  %v11719_v2 = vld [vmem:[#allocation2 + $0x151] sm:$0xff]  ;;  %3894 = vst.msk [vmem:[#allocation2 + $0x181] sm:$0xff] %vm257_vm1, %v3862_v63  ;;  %v9204_v19 = vpop.f32.mrf.mxu1  ;;  %v11758_v48 = vld [vmem:[#allocation2 + $0x1a] sm:$0xff] }
 0x236   : > { %v11721_v45 = vld [vmem:[#allocation2 + $0x150] sm:$0xff]  ;;  %v11723_v9 = vld [vmem:[#allocation2 + $0x158] sm:$0xff]  ;;  %9244 = vmatprep.mubr.msk.f32.mxu1 %vm257_vm1, %v11719_v2  ;;  %v9254_v59 = vpop.f32.mrf.mxu0 }
 0x237   : > { %13383 = vst [vmem:[#allocation111_spill] sm:$0xff] %v11721_v45  ;;  %13384 = vst [vmem:[#allocation69_spill] sm:$0xff] %v11723_v9  ;;  %9294 = vmatprep.mubr.msk.f32.mxu0 %vm257_vm1, %v11721_v45  ;;  %v11746_v37 = vld [vmem:[#allocation2 + $0x171] sm:$0xff]  ;;  %v11770_v63 = vadd.f32 %v9254_v59, %v9204_v19 }
 0x238   : > { %9245 = vmatmul.mubr.msk.f32.gmra.mxu1 %vm257_vm1, %v11730_v7  ;;  %v11736_v44 = vld [vmem:[#allocation2 + $0x169] sm:$0xff]  ;;  %v11763_v52 = vld [vmem:[%s12970_s3 + $0x18] sm:$0xf] }
 0x239   : > { %9295 = vmatmul.mubr.msk.f32.gmra.mxu0 %vm257_vm1, %v11723_v9  ;;  %v11738_v21 = vld [vmem:[#allocation2 + $0x168] sm:$0xff]  ;;  %v11740_v33 = vld [vmem:[#allocation2 + $0x170] sm:$0xff]  ;;  %9247 = vmatprep.mubr.msk.f32.mxu1 %vm257_vm1, %v11736_v44  ;;  %13386 = vst [vmem:[#allocation112_spill] sm:$0xff] %v11770_v63 }
 0x23a   : > { %13385 = vst [vmem:[#allocation72_spill] sm:$0xff] %v11738_v21  ;;  %9297 = vmatprep.mubr.msk.f32.mxu0 %vm257_vm1, %v11738_v21  ;;  %v11802_v19 = vld [vmem:[#allocation2 + $0x4a] sm:$0xff]  ;;  %v11808_v59 = vld [vmem:[#allocation2 + $0x52] sm:$0xff] }
 0x23b   : > { %v11820_v63 = vld [vmem:[#allocation2 + $0x6a] sm:$0xff] }
 0x23c   : > { %9248 = vmatmul.mubr.msk.f32.gmra.mxu1 %vm257_vm1, %v11746_v37 }
 0x23d   : > { %9298 = vmatmul.mubr.msk.f32.gmra.mxu0 %vm257_vm1, %v11740_v33  ;;  %9302 = vmatprep.mubr.msk.f32.mxu1 %vm257_vm1, %v4611_v41  ;;  %v13387_v41 = vld [vmem:[#allocation106_spill] sm:$0xff] }
 0x23e   : > { %9352 = vmatprep.mubr.msk.f32.mxu0 %vm257_vm1, %v11349_v25  ;;  %v11768_v25 = vld [vmem:[%s12970_s3 + $0x1c] sm:$0xf] }
 0x240   : > { %9303 = vmatmul.mubr.msk.f32.vlgmr.msra.gmra.mxu1 %vm257_vm1, %v4612_v51  ;;  %v11790_v51 = vld [vmem:[#allocation2 + $0x32] sm:$0xff] }
 0x241   : > { %9353 = vmatmul.mubr.msk.f32.vlgmr.msra.gmra.mxu0 %vm257_vm1, %v11351_v16  ;;  %9401 = vmatpush3.msk.msra.mxu1 %vm509_vm0, %v13387_v41  ;;  %v11780_v16 = vld [vmem:[#allocation2 + $0x22] sm:$0xff] }
 0x242   : > { %9305 = vmatprep.mubr.msk.f32.mxu1 %vm257_vm1, %v11758_v48  ;;  %9355 = vmatprep.mubr.msk.f32.mxu0 %vm257_vm1, %v11383_v58  ;;  %v11814_v41 = vld [vmem:[#allocation2 + $0x62] sm:$0xff] }
 0x243   : > { %9451 = vmatpush3.msk.msra.mxu0 %vm509_vm0, %v11310_v18  ;;  %9500 = vmatprep.subr.msk.mxu1 %vm509_vm0, %v11763_v52  ;;  %v11796_v18 = vld [vmem:[#allocation2 + $0x3a] sm:$0xff] }
 0x244   : > { %9550 = vmatprep.subr.msk.mxu0 %vm509_vm0, %v11768_v25  ;;  %9306 = vmatmul.mubr.msk.f32.gmra.mxu1 %vm257_vm1, %v11780_v16 }
 0x245   : > { %9356 = vmatmul.mubr.msk.f32.gmra.mxu0 %vm257_vm1, %v11385_v0  ;;  %9308 = vmatprep.mubr.msk.f32.mxu1 %vm257_vm1, %v11790_v51 }
 0x246   : > { %9358 = vmatprep.mubr.msk.f32.mxu0 %vm257_vm1, %v11416_v8 }
 0x248   : > { %9309 = vmatmul.mubr.msk.f32.gmra.mxu1 %vm257_vm1, %v11796_v18 }
 0x249   : > { %9359 = vmatmul.mubr.msk.f32.gmra.mxu0 %vm257_vm1, %v11418_v5  ;;  %9311 = vmatprep.mubr.msk.f32.mxu1 %vm257_vm1, %v11802_v19  ;;  %v11948_v5 = vld [vmem:[#allocation2 + $0x180] sm:$0xff] }
 0x24a   : > { %9361 = vmatprep.mubr.msk.f32.mxu0 %vm257_vm1, %v11449_v31  ;;  %v11826_v31 = vld [vmem:[#allocation2 + $0x7a] sm:$0xff]  ;;  %13388 = vst [vmem:[#allocation122_spill] sm:$0xff] %v11948_v5 }
 0x24c   : > { %9312 = vmatmul.mubr.msk.f32.gmra.mxu1 %vm257_vm1, %v11808_v59 }
 0x24d   : > { %9362 = vmatmul.mubr.msk.f32.gmra.mxu0 %vm257_vm1, %v11451_v50  ;;  %9314 = vmatprep.mubr.msk.f32.mxu1 %vm257_vm1, %v11814_v41  ;;  %v11832_v50 = vld [vmem:[#allocation2 + $0x82] sm:$0xff] }
 0x24e   : > { %9364 = vmatprep.mubr.msk.f32.mxu0 %vm257_vm1, %v11482_v14  ;;  %v11838_v14 = vld [vmem:[#allocation2 + $0x92] sm:$0xff] }
 0x250   : > { %9315 = vmatmul.mubr.msk.f32.gmra.mxu1 %vm257_vm1, %v11820_v63 }
 0x251   : > { %9365 = vmatmul.mubr.msk.f32.gmra.mxu0 %vm257_vm1, %v11484_v49  ;;  %9317 = vmatprep.mubr.msk.f32.mxu1 %vm257_vm1, %v11826_v31  ;;  %v11844_v49 = vld [vmem:[#allocation2 + $0x9a] sm:$0xff] }
 0x252   : > { %9367 = vmatprep.mubr.msk.f32.mxu0 %vm257_vm1, %v11515_v38  ;;  %v11850_v38 = vld [vmem:[#allocation2 + $0xaa] sm:$0xff] }
 0x254   : > { %9318 = vmatmul.mubr.msk.f32.gmra.mxu1 %vm257_vm1, %v11832_v50 }
 0x255   : > { %9368 = vmatmul.mubr.msk.f32.gmra.mxu0 %vm257_vm1, %v11517_v3  ;;  %9320 = vmatprep.mubr.msk.f32.mxu1 %vm257_vm1, %v11838_v14  ;;  %v11856_v3 = vld [vmem:[#allocation2 + $0xb2] sm:$0xff] }
 0x256   : > { %9370 = vmatprep.mubr.msk.f32.mxu0 %vm257_vm1, %v11548_v11  ;;  %v11862_v11 = vld [vmem:[#allocation2 + $0xc2] sm:$0xff] }
 0x258   : > { %9321 = vmatmul.mubr.msk.f32.gmra.mxu1 %vm257_vm1, %v11844_v49 }
 0x259   : > { %9371 = vmatmul.mubr.msk.f32.gmra.mxu0 %vm257_vm1, %v11550_v24  ;;  %9323 = vmatprep.mubr.msk.f32.mxu1 %vm257_vm1, %v11850_v38  ;;  %v11868_v24 = vld [vmem:[#allocation2 + $0xca] sm:$0xff] }
 0x25a   : > { %9373 = vmatprep.mubr.msk.f32.mxu0 %vm257_vm1, %v11581_v53  ;;  %v11874_v53 = vld [vmem:[#allocation2 + $0xda] sm:$0xff] }
 0x25c   : > { %9324 = vmatmul.mubr.msk.f32.gmra.mxu1 %vm257_vm1, %v11856_v3 }
 0x25d   : > { %9374 = vmatmul.mubr.msk.f32.gmra.mxu0 %vm257_vm1, %v11583_v55  ;;  %9326 = vmatprep.mubr.msk.f32.mxu1 %vm257_vm1, %v11862_v11  ;;  %v11880_v55 = vld [vmem:[#allocation2 + $0xe2] sm:$0xff] }
 0x25e   : > { %9376 = vmatprep.mubr.msk.f32.mxu0 %vm257_vm1, %v11610_v10  ;;  %v11886_v10 = vld [vmem:[#allocation2 + $0xf2] sm:$0xff] }
 0x260   : > { %9327 = vmatmul.mubr.msk.f32.gmra.mxu1 %vm257_vm1, %v11868_v24 }
 0x261   : > { %9377 = vmatmul.mubr.msk.f32.gmra.mxu0 %vm257_vm1, %v11612_v6  ;;  %9329 = vmatprep.mubr.msk.f32.mxu1 %vm257_vm1, %v11874_v53  ;;  %v11892_v6 = vld [vmem:[#allocation2 + $0xfa] sm:$0xff] }
 0x262   : > { %9379 = vmatprep.mubr.msk.f32.mxu0 %vm257_vm1, %v11638_v12  ;;  %v11898_v12 = vld [vmem:[#allocation2 + $0x10a] sm:$0xff] }
 0x264   : > { %9330 = vmatmul.mubr.msk.f32.gmra.mxu1 %vm257_vm1, %v11880_v55 }
 0x265   : > { %9380 = vmatmul.mubr.msk.f32.gmra.mxu0 %vm257_vm1, %v11640_v22  ;;  %9332 = vmatprep.mubr.msk.f32.mxu1 %vm257_vm1, %v11886_v10  ;;  %v11904_v22 = vld [vmem:[#allocation2 + $0x112] sm:$0xff] }
 0x266   : > { %9382 = vmatprep.mubr.msk.f32.mxu0 %vm257_vm1, %v11661_v39  ;;  %v11910_v39 = vld [vmem:[#allocation2 + $0x122] sm:$0xff] }
 0x268   : > { %9333 = vmatmul.mubr.msk.f32.gmra.mxu1 %vm257_vm1, %v11892_v6 }
 0x269   : > { %9383 = vmatmul.mubr.msk.f32.gmra.mxu0 %vm257_vm1, %v11663_v40  ;;  %9335 = vmatprep.mubr.msk.f32.mxu1 %vm257_vm1, %v11898_v12  ;;  %v11916_v40 = vld [vmem:[#allocation2 + $0x12a] sm:$0xff] }
 0x26a   : > { %9385 = vmatprep.mubr.msk.f32.mxu0 %vm257_vm1, %v11682_v17  ;;  %v11922_v17 = vld [vmem:[#allocation2 + $0x13a] sm:$0xff] }
 0x26c   : > { %9336 = vmatmul.mubr.msk.f32.gmra.mxu1 %vm257_vm1, %v11904_v22 }
 0x26d   : > { %9386 = vmatmul.mubr.msk.f32.gmra.mxu0 %vm257_vm1, %v11684_v36  ;;  %9338 = vmatprep.mubr.msk.f32.mxu1 %vm257_vm1, %v11910_v39  ;;  %v11928_v36 = vld [vmem:[#allocation2 + $0x142] sm:$0xff] }
 0x26e   : > { %9388 = vmatprep.mubr.msk.f32.mxu0 %vm257_vm1, %v11702_v42  ;;  %v11934_v42 = vld [vmem:[#allocation2 + $0x152] sm:$0xff] }
 0x270   : > { %9339 = vmatmul.mubr.msk.f32.gmra.mxu1 %vm257_vm1, %v11916_v40 }
 0x271   : > { %9389 = vmatmul.mubr.msk.f32.gmra.mxu0 %vm257_vm1, %v11704_v35  ;;  %9341 = vmatprep.mubr.msk.f32.mxu1 %vm257_vm1, %v11922_v17  ;;  %v11940_v35 = vld [vmem:[#allocation2 + $0x15a] sm:$0xff] }
 0x272   : > { %9391 = vmatprep.mubr.msk.f32.mxu0 %vm257_vm1, %v11721_v45  ;;  %v11946_v45 = vld [vmem:[#allocation2 + $0x16a] sm:$0xff] }
 0x274   : > { %9342 = vmatmul.mubr.msk.f32.gmra.mxu1 %vm257_vm1, %v11928_v36 }
 0x275   : > { %9392 = vmatmul.mubr.msk.f32.gmra.mxu0 %vm257_vm1, %v11723_v9  ;;  %9344 = vmatprep.mubr.msk.f32.mxu1 %vm257_vm1, %v11934_v42  ;;  %v11954_v9 = vld [vmem:[#allocation2 + $0x172] sm:$0xff] }
 0x276   : > { %9394 = vmatprep.mubr.msk.f32.mxu0 %vm257_vm1, %v11738_v21  ;;  %v11956_v21 = vld [vmem:[#allocation2 + $0x188] sm:$0xff] }
 0x278   : > { %9345 = vmatmul.mubr.msk.f32.gmra.mxu1 %vm257_vm1, %v11940_v35 }
 0x279   : > { %9395 = vmatmul.mubr.msk.f32.gmra.mxu0 %vm257_vm1, %v11740_v33  ;;  %9347 = vmatprep.mubr.msk.f32.mxu1 %vm257_vm1, %v11946_v45 }
 0x27a   : > { %9397 = vmatprep.mubr.msk.f32.mxu0 %vm257_vm1, %v11948_v5  ;;  %v11973_v5 = vld [vmem:[%s12970_s3 + $0x20] sm:$0xf] }
 0x27c   : > { %9348 = vmatmul.mubr.msk.f32.gmra.mxu1 %vm257_vm1, %v11954_v9 }
 0x27d   : > { %9398 = vmatmul.mubr.msk.f32.gmra.mxu0 %vm257_vm1, %v11956_v21  ;;  %9402 = vmatprep.mubr.msk.f32.mxu1 %vm257_vm1, %v11347_v29  ;;  %v13389_v29 = vld [vmem:[#allocation28_spill] sm:$0xff] }
 0x27e   : > { %9452 = vmatprep.mubr.msk.f32.mxu0 %vm257_vm1, %v11758_v48  ;;  %v13391_v48 = vld [vmem:[#allocation113_spill] sm:$0xff] }
 0x280   : > { %9403 = vmatmul.mubr.msk.f32.vlgmr.msra.gmra.mxu1 %vm257_vm1, %v11360_v27  ;;  %v13390_v27 = vld [vmem:[#allocation63_spill] sm:$0xff] }
 0x281   : > { %9453 = vmatmul.mubr.msk.f32.vlgmr.msra.gmra.mxu0 %vm257_vm1, %v11780_v16  ;;  %9501 = vmatpush3.msk.msra.mxu1 %vm509_vm0, %v11763_v52  ;;  %v13392_v52 = vld [vmem:[#allocation65_spill] sm:$0xff]  ;;  %v13395_v16 = vld [vmem:[#allocation107_spill] sm:$0xff] }
 0x282   : > { %9405 = vmatprep.mubr.msk.f32.mxu1 %vm257_vm1, %v11381_v47  ;;  %9455 = vmatprep.mubr.msk.f32.mxu0 %vm257_vm1, %v11790_v51 }
 0x283   : > { %9551 = vmatpush3.msk.msra.mxu0 %vm509_vm0, %v11768_v25  ;;  %9600 = vmatprep.subr.msk.mxu1 %vm509_vm0, %v11973_v5 }
 0x284   : > { %9406 = vmatmul.mubr.msk.f32.gmra.mxu1 %vm257_vm1, %v11394_v23 }
 0x285   : > { %9456 = vmatmul.mubr.msk.f32.gmra.mxu0 %vm257_vm1, %v11796_v18  ;;  %9408 = vmatprep.mubr.msk.f32.mxu1 %vm257_vm1, %v11414_v62 }
 0x286   : > { %9458 = vmatprep.mubr.msk.f32.mxu0 %vm257_vm1, %v11802_v19 }
 0x288   : > { %9409 = vmatmul.mubr.msk.f32.gmra.mxu1 %vm257_vm1, %v11427_v13 }
 0x289   : > { %9459 = vmatmul.mubr.msk.f32.gmra.mxu0 %vm257_vm1, %v11808_v59  ;;  %9411 = vmatprep.mubr.msk.f32.mxu1 %vm257_vm1, %v11447_v15 }
 0x28a   : > { %9461 = vmatprep.mubr.msk.f32.mxu0 %vm257_vm1, %v11814_v41 }
 0x28c   : > { %9412 = vmatmul.mubr.msk.f32.gmra.mxu1 %vm257_vm1, %v11460_v4 }
 0x28d   : > { %9462 = vmatmul.mubr.msk.f32.gmra.mxu0 %vm257_vm1, %v11820_v63  ;;  %9414 = vmatprep.mubr.msk.f32.mxu1 %vm257_vm1, %v11480_v60 }
 0x28e   : > { %9464 = vmatprep.mubr.msk.f32.mxu0 %vm257_vm1, %v11826_v31 }
 0x290   : > { %9415 = vmatmul.mubr.msk.f32.gmra.mxu1 %vm257_vm1, %v11493_v34 }
 0x291   : > { %9465 = vmatmul.mubr.msk.f32.gmra.mxu0 %vm257_vm1, %v11832_v50  ;;  %9417 = vmatprep.mubr.msk.f32.mxu1 %vm257_vm1, %v11513_v26 }
 0x292   : > { %9467 = vmatprep.mubr.msk.f32.mxu0 %vm257_vm1, %v11838_v14 }
 0x294   : > { %9418 = vmatmul.mubr.msk.f32.gmra.mxu1 %vm257_vm1, %v13389_v29 }
 0x295   : > { %9468 = vmatmul.mubr.msk.f32.gmra.mxu0 %vm257_vm1, %v11844_v49  ;;  %9420 = vmatprep.mubr.msk.f32.mxu1 %vm257_vm1, %v13390_v27 }
 0x296   : > { %9470 = vmatprep.mubr.msk.f32.mxu0 %vm257_vm1, %v11850_v38 }
 0x298   : > { %9421 = vmatmul.mubr.msk.f32.gmra.mxu1 %vm257_vm1, %v13391_v48 }
 0x299   : > { %9471 = vmatmul.mubr.msk.f32.gmra.mxu0 %vm257_vm1, %v11856_v3  ;;  %9423 = vmatprep.mubr.msk.f32.mxu1 %vm257_vm1, %v11579_v54 }
 0x29a   : > { %9473 = vmatprep.mubr.msk.f32.mxu0 %vm257_vm1, %v11862_v11 }
 0x29c   : > { %9424 = vmatmul.mubr.msk.f32.gmra.mxu1 %vm257_vm1, %v13392_v52 }
 0x29d   : > { %9474 = vmatmul.mubr.msk.f32.gmra.mxu0 %vm257_vm1, %v11868_v24  ;;  %9426 = vmatprep.mubr.msk.f32.mxu1 %vm257_vm1, %v11608_v28 }
 0x29e   : > { %9476 = vmatprep.mubr.msk.f32.mxu0 %vm257_vm1, %v11874_v53 }
 0x2a0   : > { %9427 = vmatmul.mubr.msk.f32.gmra.mxu1 %vm257_vm1, %v11621_v56 }
 0x2a1   : > { %9477 = vmatmul.mubr.msk.f32.gmra.mxu0 %vm257_vm1, %v11880_v55  ;;  %9429 = vmatprep.mubr.msk.f32.mxu1 %vm257_vm1, %v11636_v46 }
 0x2a2   : > { %9479 = vmatprep.mubr.msk.f32.mxu0 %vm257_vm1, %v11886_v10 }
 0x2a4   : > { %9430 = vmatmul.mubr.msk.f32.gmra.mxu1 %vm257_vm1, %v11649_v32 }
 0x2a5   : > { %9480 = vmatmul.mubr.msk.f32.gmra.mxu0 %vm257_vm1, %v11892_v6  ;;  %9432 = vmatprep.mubr.msk.f32.mxu1 %vm257_vm1, %v11659_v30 }
 0x2a6   : > { %9482 = vmatprep.mubr.msk.f32.mxu0 %vm257_vm1, %v11898_v12 }
 0x2a8   : > { %9433 = vmatmul.mubr.msk.f32.gmra.mxu1 %vm257_vm1, %v11672_v20 }
 0x2a9   : > { %9483 = vmatmul.mubr.msk.f32.gmra.mxu0 %vm257_vm1, %v11904_v22  ;;  %9435 = vmatprep.mubr.msk.f32.mxu1 %vm257_vm1, %v11680_v61  ;;  %v12093_v22 = vld [vmem:[#allocation2 + $0x181] sm:$0xff] }
 0x2aa   : > { %9485 = vmatprep.mubr.msk.f32.mxu0 %vm257_vm1, %v11910_v39 }
 0x2ac   : > { %9436 = vmatmul.mubr.msk.f32.gmra.mxu1 %vm257_vm1, %v11692_v1 }
 0x2ad   : > { %9486 = vmatmul.mubr.msk.f32.gmra.mxu0 %vm257_vm1, %v11916_v40  ;;  %9438 = vmatprep.mubr.msk.f32.mxu1 %vm257_vm1, %v11700_v57  ;;  %v12095_v40 = vld [vmem:[#allocation2 + $0x182] sm:$0xff] }
 0x2ae   : > { %9488 = vmatprep.mubr.msk.f32.mxu0 %vm257_vm1, %v11922_v17  ;;  %v12101_v17 = vld [vmem:[#allocation2 + $0x189] sm:$0xff] }
 0x2b0   : > { %9439 = vmatmul.mubr.msk.f32.gmra.mxu1 %vm257_vm1, %v11712_v43 }
 0x2b1   : > { %9489 = vmatmul.mubr.msk.f32.gmra.mxu0 %vm257_vm1, %v11928_v36  ;;  %9441 = vmatprep.mubr.msk.f32.mxu1 %vm257_vm1, %v11719_v2  ;;  %v12103_v36 = vld [vmem:[#allocation2 + $0x18a] sm:$0xff] }
 0x2b2   : > { %9491 = vmatprep.mubr.msk.f32.mxu0 %vm257_vm1, %v11934_v42  ;;  %v12121_v42 = vpop.f32.mrf.mxu1 }
 0x2b4   : > { %9442 = vmatmul.mubr.msk.f32.gmra.mxu1 %vm257_vm1, %v11730_v7 }
 0x2b5   : > { %9492 = vmatmul.mubr.msk.f32.gmra.mxu0 %vm257_vm1, %v11940_v35  ;;  %9444 = vmatprep.mubr.msk.f32.mxu1 %vm257_vm1, %v11736_v44  ;;  %v12123_v35 = vpop.f32.mrf.mxu0 }
 0x2b6   : > { %9494 = vmatprep.mubr.msk.f32.mxu0 %vm257_vm1, %v11946_v45  ;;  %v13393_v45 = vld [vmem:[#allocation61_spill] sm:$0xff] }
 0x2b8   : > { %9445 = vmatmul.mubr.msk.f32.gmra.mxu1 %vm257_vm1, %v11746_v37 }
 0x2b9   : > { %9495 = vmatmul.mubr.msk.f32.gmra.mxu0 %vm257_vm1, %v11954_v9  ;;  %9447 = vmatprep.mubr.msk.f32.mxu1 %vm257_vm1, %v12093_v22 }
 0x2ba   : > { %9497 = vmatprep.mubr.msk.f32.mxu0 %vm257_vm1, %v12095_v40 }
 0x2bc   : > { %9448 = vmatmul.mubr.msk.f32.gmra.mxu1 %vm257_vm1, %v12101_v17 }
 0x2bd   : > { %9498 = vmatmul.mubr.msk.f32.gmra.mxu0 %vm257_vm1, %v12103_v36  ;;  %9502 = vmatprep.mubr.msk.f32.mxu1 %vm257_vm1, %v11383_v58 }
 0x2be   : > { %9552 = vmatprep.mubr.msk.f32.mxu0 %vm257_vm1, %v11381_v47 }
 0x2c0   : > { %9503 = vmatmul.mubr.msk.f32.vlgmr.msra.gmra.mxu1 %vm257_vm1, %v11385_v0  ;;  %v9207_v47 = vpop.f32.mrf.mxu1 }
 0x2c1   : > { %9553 = vmatmul.mubr.msk.f32.vlgmr.msra.gmra.mxu0 %vm257_vm1, %v11394_v23  ;;  %9601 = vmatpush3.msk.msra.mxu1 %vm509_vm0, %v11973_v5  ;;  %v9257_v58 = vpop.f32.mrf.mxu0  ;;  %v13394_v23 = vld [vmem:[#allocation64_spill] sm:$0xff] }
 0x2c2   : > { %9505 = vmatprep.mubr.msk.f32.mxu1 %vm257_vm1, %v11416_v8  ;;  %9555 = vmatprep.mubr.msk.f32.mxu0 %vm257_vm1, %v11414_v62  ;;  %v12131_v0 = vadd.f32 %v9257_v58, %v9207_v47  ;;  %v4138_v8 = vpop.f32.mrf.mxu1  ;;  %v13396_v47 = vld [vmem:[#allocation110_spill] sm:$0xff] }
 0x2c3   : > { %v4462_v5 = vpop.f32.mrf.mxu0 }
 0x2c4   : > { %9506 = vmatmul.mubr.msk.f32.gmra.mxu1 %vm257_vm1, %v13393_v45  ;;  %v12137_v9 = vadd.f32 %v4462_v5, %v4138_v8  ;;  %v9210_v62 = vpop.f32.mrf.mxu1  ;;  %v13397_v5 = vld [vmem:[#allocation62_spill] sm:$0xff] }
 0x2c5   : > { %9556 = vmatmul.mubr.msk.f32.gmra.mxu0 %vm257_vm1, %v11427_v13  ;;  %9508 = vmatprep.mubr.msk.f32.mxu1 %vm257_vm1, %v13394_v23  ;;  %v9260_v25 = vpop.f32.mrf.mxu0 }
 0x2c6   : > { %9558 = vmatprep.mubr.msk.f32.mxu0 %vm257_vm1, %v11447_v15  ;;  %v12143_v13 = vadd.f32 %v9260_v25, %v9210_v62  ;;  %v4148_v15 = vpop.f32.mrf.mxu1  ;;  %v13398_v62 = vld [vmem:[#allocation23_spill] sm:$0xff] }
 0x2c7   : > { %v4472_v58 = vpop.f32.mrf.mxu0 }
 0x2c8   : > { %9509 = vmatmul.mubr.msk.f32.gmra.mxu1 %vm257_vm1, %v13395_v16  ;;  %v12149_v45 = vadd.f32 %v4472_v58, %v4148_v15  ;;  %v9213_v23 = vpop.f32.mrf.mxu1  ;;  %v13399_v58 = vld [vmem:[#allocation29_spill] sm:$0xff] }
 0x2c9   : > { %9559 = vmatmul.mubr.msk.f32.gmra.mxu0 %vm257_vm1, %v11460_v4  ;;  %9511 = vmatprep.mubr.msk.f32.mxu1 %vm257_vm1, %v13396_v47  ;;  %v9263_v8 = vpop.f32.mrf.mxu0 }
 0x2ca   : > { %9561 = vmatprep.mubr.msk.f32.mxu0 %vm257_vm1, %v11480_v60  ;;  %v12155_v4 = vadd.f32 %v9263_v8, %v9213_v23  ;;  %v4158_v60 = vpop.f32.mrf.mxu1  ;;  %v13400_v23 = vld [vmem:[#allocation60_spill] sm:$0xff] }
 0x2cb   : > { %v4482_v25 = vpop.f32.mrf.mxu0 }
 0x2cc   : > { %9512 = vmatmul.mubr.msk.f32.gmra.mxu1 %vm257_vm1, %v13397_v5  ;;  %v12161_v16 = vadd.f32 %v4482_v25, %v4158_v60  ;;  %v9216_v47 = vpop.f32.mrf.mxu1  ;;  %v13401_v25 = vld [vmem:[#allocation108_spill] sm:$0xff] }
 0x2cd   : > { %9562 = vmatmul.mubr.msk.f32.gmra.mxu0 %vm257_vm1, %v11493_v34  ;;  %9514 = vmatprep.mubr.msk.f32.mxu1 %vm257_vm1, %v13398_v62  ;;  %v9266_v15 = vpop.f32.mrf.mxu0 }
 0x2ce   : > { %9564 = vmatprep.mubr.msk.f32.mxu0 %vm257_vm1, %v11513_v26  ;;  %v12167_v34 = vadd.f32 %v9266_v15, %v9216_v47  ;;  %v4168_v26 = vpop.f32.mrf.mxu1  ;;  %v13402_v47 = vld [vmem:[#allocation24_spill] sm:$0xff] }
 0x2cf   : > { %v4492_v8 = vpop.f32.mrf.mxu0 }
 0x2d0   : > { %9515 = vmatmul.mubr.msk.f32.gmra.mxu1 %vm257_vm1, %v13399_v58  ;;  %v12173_v5 = vadd.f32 %v4492_v8, %v4168_v26  ;;  %v13403_v8 = vld [vmem:[#allocation25_spill] sm:$0xff] }
 0x2d1   : > { %9565 = vmatmul.mubr.msk.f32.gmra.mxu0 %vm257_vm1, %v13389_v29  ;;  %9517 = vmatprep.mubr.msk.f32.mxu1 %vm257_vm1, %v13400_v23  ;;  %v9219_v62 = vpop.f32.mrf.mxu1  ;;  %v9269_v60 = vpop.f32.mrf.mxu0 }
 0x2d2   : > { %9567 = vmatprep.mubr.msk.f32.mxu0 %vm257_vm1, %v13390_v27  ;;  %v12179_v29 = vadd.f32 %v9269_v60, %v9219_v62  ;;  %v13404_v62 = vld [vmem:[#allocation68_spill] sm:$0xff] }
 0x2d3   : > { %v4178_v27 = vpop.f32.mrf.mxu1  ;;  %v4502_v15 = vpop.f32.mrf.mxu0 }
 0x2d4   : > { %9518 = vmatmul.mubr.msk.f32.gmra.mxu1 %vm257_vm1, %v13401_v25  ;;  %v12185_v58 = vadd.f32 %v4502_v15, %v4178_v27  ;;  %v13405_v15 = vld [vmem:[#allocation116_spill] sm:$0xff] }
 0x2d5   : > { %9568 = vmatmul.mubr.msk.f32.gmra.mxu0 %vm257_vm1, %v13391_v48  ;;  %9520 = vmatprep.mubr.msk.f32.mxu1 %vm257_vm1, %v13402_v47 }
 0x2d6   : > { %9570 = vmatprep.mubr.msk.f32.mxu0 %vm257_vm1, %v11579_v54  ;;  %v9222_v23 = vpop.f32.mrf.mxu1 }
 0x2d7   : > { %v9272_v26 = vpop.f32.mrf.mxu0 }
 0x2d8   : > { %9521 = vmatmul.mubr.msk.f32.gmra.mxu1 %vm257_vm1, %v13403_v8  ;;  %v12191_v48 = vadd.f32 %v9272_v26, %v9222_v23  ;;  %v4188_v54 = vpop.f32.mrf.mxu1  ;;  %v13406_v23 = vld [vmem:[#allocation109_spill] sm:$0xff] }
 0x2d9   : > { %9571 = vmatmul.mubr.msk.f32.gmra.mxu0 %vm257_vm1, %v13392_v52  ;;  %9523 = vmatprep.mubr.msk.f32.mxu1 %vm257_vm1, %v13404_v62  ;;  %v4512_v60 = vpop.f32.mrf.mxu0 }
 0x2da   : > { %9573 = vmatprep.mubr.msk.f32.mxu0 %vm257_vm1, %v11608_v28  ;;  %v12197_v25 = vadd.f32 %v4512_v60, %v4188_v54  ;;  %v9225_v47 = vpop.f32.mrf.mxu1  ;;  %v13407_v60 = vld [vmem:[#allocation26_spill] sm:$0xff] }
 0x2db   : > { %v9275_v27 = vpop.f32.mrf.mxu0 }
 0x2dc   : > { %9524 = vmatmul.mubr.msk.f32.gmra.mxu1 %vm257_vm1, %v13405_v15  ;;  %v12203_v52 = vadd.f32 %v9275_v27, %v9225_v47  ;;  %v4198_v28 = vpop.f32.mrf.mxu1  ;;  %v13408_v47 = vld [vmem:[#allocation27_spill] sm:$0xff] }
 0x2dd   : > { %9574 = vmatmul.mubr.msk.f32.gmra.mxu0 %vm257_vm1, %v11621_v56  ;;  %9526 = vmatprep.mubr.msk.f32.mxu1 %vm257_vm1, %v13406_v23  ;;  %v4522_v26 = vpop.f32.mrf.mxu0 }
 0x2de   : > { %9576 = vmatprep.mubr.msk.f32.mxu0 %vm257_vm1, %v11636_v46  ;;  %v12209_v8 = vadd.f32 %v4522_v26, %v4198_v28  ;;  %v13409_v26 = vld [vmem:[#allocation39_spill] sm:$0xff] }
 0x2df   : > { %v9228_v62 = vpop.f32.mrf.mxu1  ;;  %v9278_v54 = vpop.f32.mrf.mxu0 }
 0x2e0   : > { %9527 = vmatmul.mubr.msk.f32.gmra.mxu1 %vm257_vm1, %v13407_v60  ;;  %v12215_v56 = vadd.f32 %v9278_v54, %v9228_v62  ;;  %v13410_v62 = vld [vmem:[#allocation30_spill] sm:$0xff] }
 0x2e1   : > { %9577 = vmatmul.mubr.msk.f32.gmra.mxu0 %vm257_vm1, %v11649_v32  ;;  %9529 = vmatprep.mubr.msk.f32.mxu1 %vm257_vm1, %v13408_v47  ;;  %v4208_v46 = vpop.f32.mrf.mxu1  ;;  %v4532_v27 = vpop.f32.mrf.mxu0 }
 0x2e2   : > { %9579 = vmatprep.mubr.msk.f32.mxu0 %vm257_vm1, %v11659_v30  ;;  %v12221_v15 = vadd.f32 %v4532_v27, %v4208_v46  ;;  %v13411_v27 = vld [vmem:[#allocation67_spill] sm:$0xff] }
 0x2e3   : > { %v9231_v23 = vpop.f32.mrf.mxu1  ;;  %v9281_v28 = vpop.f32.mrf.mxu0 }
 0x2e4   : > { %9530 = vmatmul.mubr.msk.f32.gmra.mxu1 %vm257_vm1, %v13409_v26  ;;  %v12227_v32 = vadd.f32 %v9281_v28, %v9231_v23  ;;  %v13412_v23 = vld [vmem:[#allocation66_spill] sm:$0xff] }
 0x2e5   : > { %9580 = vmatmul.mubr.msk.f32.gmra.mxu0 %vm257_vm1, %v11672_v20  ;;  %9532 = vmatprep.mubr.msk.f32.mxu1 %vm257_vm1, %v13410_v62  ;;  %v4218_v30 = vpop.f32.mrf.mxu1  ;;  %v4542_v54 = vpop.f32.mrf.mxu0 }
 0x2e6   : > { %9582 = vmatprep.mubr.msk.f32.mxu0 %vm257_vm1, %v11680_v61  ;;  %v12233_v60 = vadd.f32 %v4542_v54, %v4218_v30  ;;  %v13413_v54 = vld [vmem:[#allocation119_spill] sm:$0xff] }
 0x2e7   : > { %v9234_v47 = vpop.f32.mrf.mxu1  ;;  %v9284_v46 = vpop.f32.mrf.mxu0 }
 0x2e8   : > { %9533 = vmatmul.mubr.msk.f32.gmra.mxu1 %vm257_vm1, %v13411_v27  ;;  %v12239_v20 = vadd.f32 %v9284_v46, %v9234_v47  ;;  %v13414_v47 = vld [vmem:[#allocation111_spill] sm:$0xff] }
 0x2e9   : > { %9583 = vmatmul.mubr.msk.f32.gmra.mxu0 %vm257_vm1, %v11692_v1  ;;  %9535 = vmatprep.mubr.msk.f32.mxu1 %vm257_vm1, %v13412_v23  ;;  %v4228_v61 = vpop.f32.mrf.mxu1  ;;  %v4552_v28 = vpop.f32.mrf.mxu0 }
 0x2ea   : > { %9585 = vmatprep.mubr.msk.f32.mxu0 %vm257_vm1, %v11700_v57  ;;  %v12245_v26 = vadd.f32 %v4552_v28, %v4228_v61  ;;  %v13415_v28 = vld [vmem:[#allocation69_spill] sm:$0xff] }
 0x2eb   : > { %v9237_v62 = vpop.f32.mrf.mxu1  ;;  %v9287_v30 = vpop.f32.mrf.mxu0 }
 0x2ec   : > { %9536 = vmatmul.mubr.msk.f32.gmra.mxu1 %vm257_vm1, %v13413_v54  ;;  %v12251_v1 = vadd.f32 %v9287_v30, %v9237_v62  ;;  %v13416_v62 = vld [vmem:[#allocation72_spill] sm:$0xff] }
 0x2ed   : > { %9586 = vmatmul.mubr.msk.f32.gmra.mxu0 %vm257_vm1, %v11712_v43  ;;  %9538 = vmatprep.mubr.msk.f32.mxu1 %vm257_vm1, %v13414_v47  ;;  %v4238_v57 = vpop.f32.mrf.mxu1  ;;  %v4562_v46 = vpop.f32.mrf.mxu0 }
 0x2ee   : > { %9588 = vmatprep.mubr.msk.f32.mxu0 %vm257_vm1, %v11719_v2  ;;  %v12257_v27 = vadd.f32 %v4562_v46, %v4238_v57  ;;  %v13417_v46 = vld [vmem:[#allocation122_spill] sm:$0xff] }
 0x2f0   : > { %v9240_v23 = vpop.f32.mrf.mxu1  ;;  %9539 = vmatmul.mubr.msk.f32.gmra.mxu1 %vm257_vm1, %v13415_v28  ;;  %v6591_v28 = vld [vmem:[#allocation2 + $0x199] sm:$0xff] }
 0x2f1   : > { %v9290_v61 = vpop.f32.mrf.mxu0  ;;  %9589 = vmatmul.mubr.msk.f32.gmra.mxu0 %vm257_vm1, %v11730_v7  ;;  %9541 = vmatprep.mubr.msk.f32.mxu1 %vm257_vm1, %v13416_v62 }
 0x2f2   : > { %v12263_v43 = vadd.f32 %v9290_v61, %v9240_v23  ;;  %9591 = vmatprep.mubr.msk.f32.mxu0 %vm257_vm1, %v11736_v44  ;;  %v4248_v2 = vpop.f32.mrf.mxu1  ;;  %v6201_v61 = vld [vmem:[#allocation2 + $0x198] sm:$0xff] }
 0x2f3   : > { %v4572_v30 = vpop.f32.mrf.mxu0 }
 0x2f4   : > { %v12269_v54 = vadd.f32 %v4572_v30, %v4248_v2  ;;  %v9243_v47 = vpop.f32.mrf.mxu1  ;;  %9542 = vmatmul.mubr.msk.f32.gmra.mxu1 %vm257_vm1, %v11740_v33 }
 0x2f5   : > { %v9293_v57 = vpop.f32.mrf.mxu0  ;;  %9592 = vmatmul.mubr.msk.f32.gmra.mxu0 %vm257_vm1, %v11746_v37  ;;  %9544 = vmatprep.mubr.msk.f32.mxu1 %vm257_vm1, %v13417_v46  ;;  %v6202_v37 = vld [vmem:[#allocation2 + $0x1a0] sm:$0xff] }
 0x2f6   : > { %v12275_v7 = vadd.f32 %v9293_v57, %v9243_v47  ;;  %9594 = vmatprep.mubr.msk.f32.mxu0 %vm257_vm1, %v12093_v22  ;;  %v4258_v44 = vpop.f32.mrf.mxu1  ;;  %v6592_v22 = vld [vmem:[#allocation2 + $0x1a1] sm:$0xff] }
 0x2f7   : > { %v4582_v23 = vpop.f32.mrf.mxu0 }
 0x2f8   : > { %v12281_v62 = vadd.f32 %v4582_v23, %v4258_v44  ;;  %v9246_v2 = vpop.f32.mrf.mxu1  ;;  %9545 = vmatmul.mubr.msk.f32.gmra.mxu1 %vm257_vm1, %v11956_v21 }
 0x2f9   : > { %v9296_v30 = vpop.f32.mrf.mxu0  ;;  %9595 = vmatmul.mubr.msk.f32.gmra.mxu0 %vm257_vm1, %v12101_v17  ;;  %9547 = vmatprep.mubr.msk.f32.mxu1 %vm257_vm1, %v6201_v61 }
 0x2fa   : > { %v12287_v33 = vadd.f32 %v9296_v30, %v9246_v2  ;;  %9597 = vmatprep.mubr.msk.f32.mxu0 %vm257_vm1, %v6591_v28  ;;  %v4268_v47 = vpop.f32.mrf.mxu1 }
 0x2fb   : > { %v4592_v57 = vpop.f32.mrf.mxu0 }
 0x2fc   : > { %v12291_v46 = vadd.f32 %v4592_v57, %v4268_v47  ;;  %v9249_v44 = vpop.f32.mrf.mxu1  ;;  %9548 = vmatmul.mubr.msk.f32.gmra.mxu1 %vm257_vm1, %v6202_v37  ;;  %v4453_v47 = vadd.f32 %v12123_v35, %v12121_v42  ;;  %v13419_v37 = vld [vmem:[#allocation112_spill] sm:$0xff] }
 0x2fd   : > { %v9299_v23 = vpop.f32.mrf.mxu0  ;;  %9598 = vmatmul.mubr.msk.f32.gmra.mxu0 %vm257_vm1, %v6592_v22  ;;  %9602 = vmatprep.mubr.msk.f32.mxu1 %vm257_vm1, %v11790_v51 }
 0x2fe   : > { %v12295_v21 = vadd.f32 %v9299_v23, %v9249_v44  ;;  %v4278_v17 = vpop.f32.mrf.mxu1 }
 0x2ff   : > { %v4602_v61 = vpop.f32.mrf.mxu0 }
 0x300   : > { %v12299_v2 = vadd.f32 %v4602_v61, %v4278_v17  ;;  %v9304_v28 = vpop.f32.mrf.mxu1  ;;  %9603 = vmatmul.mubr.msk.f32.vlgmr.msra.gmra.mxu1 %vm257_vm1, %v11796_v18 }
 0x301   : > { %v9354_v30 = vpop.f32.mrf.mxu0  ;;  %v4970_v57 = vadd.f32 %v9304_v28, %v13419_v37  ;;  %9605 = vmatprep.mubr.msk.f32.mxu1 %vm257_vm1, %v11802_v19 }
 0x302   : > { %13418 = vst [vmem:[#allocation43_spill] sm:$0xff] %v12299_v2  ;;  %v4810_v22 = vpop.f32.mrf.mxu1 }
 0x303   : > { %v5200_v44 = vpop.f32.mrf.mxu0  ;;  %v12308_v51 = vadd.f32 %v9354_v30, %v4970_v57  ;;  %v4969_v23 = vadd.f32 %v4810_v22, %v4453_v47 }
 0x304   : > { %v9307_v17 = vpop.f32.mrf.mxu1  ;;  %9606 = vmatmul.mubr.msk.f32.gmra.mxu1 %vm257_vm1, %v11808_v59 }
 0x305   : > { %v9357_v61 = vpop.f32.mrf.mxu0  ;;  %v12312_v2 = vadd.f32 %v5200_v44, %v4969_v23  ;;  %v4972_v18 = vadd.f32 %v9307_v17, %v12131_v0  ;;  %9608 = vmatprep.mubr.msk.f32.mxu1 %vm257_vm1, %v11814_v41 }
 0x306   : > { %v4820_v42 = vpop.f32.mrf.mxu1 }
 0x307   : > { %v5210_v35 = vpop.f32.mrf.mxu0  ;;  %v12317_v19 = vadd.f32 %v9357_v61, %v4972_v18  ;;  %v4971_v28 = vadd.f32 %v4820_v42, %v12137_v9 }
 0x308   : > { %v9310_v30 = vpop.f32.mrf.mxu1  ;;  %9609 = vmatmul.mubr.msk.f32.gmra.mxu1 %vm257_vm1, %v11820_v63 }
 0x309   : > { %v9360_v47 = vpop.f32.mrf.mxu0  ;;  %v12322_v37 = vadd.f32 %v5210_v35, %v4971_v28  ;;  %v4974_v59 = vadd.f32 %v9310_v30, %v12143_v13  ;;  %9611 = vmatprep.mubr.msk.f32.mxu1 %vm257_vm1, %v11826_v31 }
 0x30a   : > { %v4830_v0 = vpop.f32.mrf.mxu1 }
 0x30b   : > { %v5220_v41 = vpop.f32.mrf.mxu0  ;;  %v12327_v57 = vadd.f32 %v9360_v47, %v4974_v59  ;;  %v4973_v22 = vadd.f32 %v4830_v0, %v12149_v45 }
 0x30c   : > { %v9313_v44 = vpop.f32.mrf.mxu1  ;;  %9612 = vmatmul.mubr.msk.f32.gmra.mxu1 %vm257_vm1, %v11832_v50 }
 0x30d   : > { %v9363_v9 = vpop.f32.mrf.mxu0  ;;  %v12332_v23 = vadd.f32 %v5220_v41, %v4973_v22  ;;  %v4976_v63 = vadd.f32 %v9313_v44, %v12155_v4  ;;  %9614 = vmatprep.mubr.msk.f32.mxu1 %vm257_vm1, %v11838_v14 }
 0x30e   : > { %v4840_v13 = vpop.f32.mrf.mxu1 }
 0x30f   : > { %v5230_v31 = vpop.f32.mrf.mxu0  ;;  %v12337_v17 = vadd.f32 %v9363_v9, %v4976_v63  ;;  %v4975_v61 = vadd.f32 %v4840_v13, %v12161_v16 }
 0x310   : > { %v9316_v18 = vpop.f32.mrf.mxu1  ;;  %9615 = vmatmul.mubr.msk.f32.gmra.mxu1 %vm257_vm1, %v11844_v49 }
 0x311   : > { %v9366_v45 = vpop.f32.mrf.mxu0  ;;  %v12342_v42 = vadd.f32 %v5230_v31, %v4975_v61  ;;  %v4978_v50 = vadd.f32 %v9316_v18, %v12167_v34  ;;  %9617 = vmatprep.mubr.msk.f32.mxu1 %vm257_vm1, %v11850_v38 }
 0x312   : > { %v4850_v4 = vpop.f32.mrf.mxu1 }
 0x313   : > { %v5240_v14 = vpop.f32.mrf.mxu0  ;;  %v12347_v35 = vadd.f32 %v9366_v45, %v4978_v50  ;;  %v4977_v28 = vadd.f32 %v4850_v4, %v12173_v5 }
 0x314   : > { %v9319_v30 = vpop.f32.mrf.mxu1  ;;  %9618 = vmatmul.mubr.msk.f32.gmra.mxu1 %vm257_vm1, %v11856_v3 }
 0x315   : > { %v9369_v16 = vpop.f32.mrf.mxu0  ;;  %v12352_v47 = vadd.f32 %v5240_v14, %v4977_v28  ;;  %v4980_v49 = vadd.f32 %v9319_v30, %v12179_v29  ;;  %9620 = vmatprep.mubr.msk.f32.mxu1 %vm257_vm1, %v11862_v11  ;;  %v6970_v14 = vld [vmem:[#allocation2 + $0x112] sm:$0xff] }
 0x316   : > { %v4860_v34 = vpop.f32.mrf.mxu1 }
 0x317   : > { %v5250_v38 = vpop.f32.mrf.mxu0  ;;  %v12357_v59 = vadd.f32 %v9369_v16, %v4980_v49  ;;  %v4979_v0 = vadd.f32 %v4860_v34, %v12185_v58  ;;  %v6972_v34 = vld [vmem:[#allocation2 + $0x12a] sm:$0xff] }
 0x318   : > { %v9322_v41 = vpop.f32.mrf.mxu1  ;;  %9621 = vmatmul.mubr.msk.f32.gmra.mxu1 %vm257_vm1, %v11868_v24 }
 0x319   : > { %v9372_v5 = vpop.f32.mrf.mxu0  ;;  %v12362_v22 = vadd.f32 %v5250_v38, %v4979_v0  ;;  %v4982_v3 = vadd.f32 %v9322_v41, %v12191_v48  ;;  %9623 = vmatprep.mubr.msk.f32.mxu1 %vm257_vm1, %v11874_v53  ;;  %v6973_v0 = vld [vmem:[#allocation2 + $0x13a] sm:$0xff] }
 0x31a   : > { %v4870_v29 = vpop.f32.mrf.mxu1 }
 0x31b   : > { %v5260_v11 = vpop.f32.mrf.mxu0  ;;  %v12367_v44 = vadd.f32 %v9372_v5, %v4982_v3  ;;  %v4981_v9 = vadd.f32 %v4870_v29, %v12197_v25 }
 0x31c   : > { %v9325_v63 = vpop.f32.mrf.mxu1  ;;  %9624 = vmatmul.mubr.msk.f32.gmra.mxu1 %vm257_vm1, %v11880_v55 }
 0x31d   : > { %v9375_v58 = vpop.f32.mrf.mxu0  ;;  %v12372_v13 = vadd.f32 %v5260_v11, %v4981_v9  ;;  %v4984_v24 = vadd.f32 %v9325_v63, %v12203_v52  ;;  %9626 = vmatprep.mubr.msk.f32.mxu1 %vm257_vm1, %v11886_v10  ;;  %v6974_v11 = vld [vmem:[#allocation2 + $0x142] sm:$0xff]  ;;  %v6975_v63 = vld [vmem:[#allocation2 + $0x152] sm:$0xff] }
 0x31e   : > { %v4880_v48 = vpop.f32.mrf.mxu1 }
 0x31f   : > { %v5270_v53 = vpop.f32.mrf.mxu0  ;;  %v12377_v31 = vadd.f32 %v9375_v58, %v4984_v24  ;;  %v4983_v61 = vadd.f32 %v4880_v48, %v12209_v8 }
 0x320   : > { %v9328_v18 = vpop.f32.mrf.mxu1  ;;  %9627 = vmatmul.mubr.msk.f32.gmra.mxu1 %vm257_vm1, %v11892_v6 }
 0x321   : > { %v9378_v25 = vpop.f32.mrf.mxu0  ;;  %v12382_v45 = vadd.f32 %v5270_v53, %v4983_v61  ;;  %v4986_v55 = vadd.f32 %v9328_v18, %v12215_v56  ;;  %9629 = vmatprep.mubr.msk.f32.mxu1 %vm257_vm1, %v11898_v12  ;;  %v6976_v18 = vld [vmem:[#allocation2 + $0x15a] sm:$0xff] }
 0x322   : > { %v4890_v52 = vpop.f32.mrf.mxu1 }
 0x323   : > { %v5280_v10 = vpop.f32.mrf.mxu0  ;;  %v12387_v50 = vadd.f32 %v9378_v25, %v4986_v55  ;;  %v4985_v4 = vadd.f32 %v4890_v52, %v12221_v15  ;;  %v6977_v55 = vld [vmem:[#allocation2 + $0x16a] sm:$0xff] }
 0x324   : > { %v9331_v8 = vpop.f32.mrf.mxu1  ;;  %9630 = vmatmul.mubr.msk.f32.gmra.mxu1 %vm257_vm1, %v6970_v14 }
 0x325   : > { %v9381_v28 = vpop.f32.mrf.mxu0  ;;  %v12391_v30 = vadd.f32 %v5280_v10, %v4985_v4  ;;  %v4988_v6 = vadd.f32 %v9331_v8, %v12227_v32  ;;  %9632 = vmatprep.mubr.msk.f32.mxu1 %vm257_vm1, %v11910_v39 }
 0x326   : > { %v4900_v56 = vpop.f32.mrf.mxu1 }
 0x327   : > { %v5290_v12 = vpop.f32.mrf.mxu0  ;;  %v12396_v16 = vadd.f32 %v9381_v28, %v4988_v6  ;;  %v4987_v49 = vadd.f32 %v4900_v56, %v12233_v60  ;;  %v6978_v28 = vld [vmem:[#allocation2 + $0x172] sm:$0xff] }
 0x328   : > { %v9334_v15 = vpop.f32.mrf.mxu1  ;;  %9633 = vmatmul.mubr.msk.f32.gmra.mxu1 %vm257_vm1, %v6972_v34  ;;  %v6981_v34 = vld [vmem:[#allocation2 + $0x19a] sm:$0xff] }
 0x329   : > { %v9384_v38 = vpop.f32.mrf.mxu0  ;;  %v12400_v41 = vadd.f32 %v5290_v12, %v4987_v49  ;;  %v4990_v5 = vadd.f32 %v9334_v15, %v12239_v20  ;;  %9635 = vmatprep.mubr.msk.f32.mxu1 %vm257_vm1, %v6973_v0 }
 0x32a   : > { %v4910_v32 = vpop.f32.mrf.mxu1 }
 0x32b   : > { %v5300_v39 = vpop.f32.mrf.mxu0  ;;  %v12404_v3 = vadd.f32 %v9384_v38, %v4990_v5  ;;  %v4989_v29 = vadd.f32 %v4910_v32, %v12245_v26 }
 0x32c   : > { %v9337_v60 = vpop.f32.mrf.mxu1  ;;  %9636 = vmatmul.mubr.msk.f32.gmra.mxu1 %vm257_vm1, %v6974_v11 }
 0x32d   : > { %v9387_v9 = vpop.f32.mrf.mxu0  ;;  %v12408_v58 = vadd.f32 %v5300_v39, %v4989_v29  ;;  %v4992_v24 = vadd.f32 %v9337_v60, %v12251_v1  ;;  %9638 = vmatprep.mubr.msk.f32.mxu1 %vm257_vm1, %v6975_v63 }
 0x32e   : > { %v4920_v20 = vpop.f32.mrf.mxu1 }
 0x32f   : > { %v5310_v48 = vpop.f32.mrf.mxu0  ;;  %v12412_v53 = vadd.f32 %v9387_v9, %v4992_v24  ;;  %v4991_v61 = vadd.f32 %v4920_v20, %v12257_v27  ;;  %v13420_v20 = vld [vmem:[#allocation43_spill] sm:$0xff] }
 0x330   : > { %v9340_v26 = vpop.f32.mrf.mxu1  ;;  %9639 = vmatmul.mubr.msk.f32.gmra.mxu1 %vm257_vm1, %v6976_v18 }
 0x331   : > { %v9390_v25 = vpop.f32.mrf.mxu0  ;;  %v12416_v52 = vadd.f32 %v5310_v48, %v4991_v61  ;;  %v4994_v10 = vadd.f32 %v9340_v26, %v12263_v43  ;;  %9641 = vmatprep.mubr.msk.f32.mxu1 %vm257_vm1, %v6977_v55 }
 0x332   : > { %v4930_v1 = vpop.f32.mrf.mxu1 }
 0x333   : > { %v5320_v4 = vpop.f32.mrf.mxu0  ;;  %v12420_v14 = vadd.f32 %v9390_v25, %v4994_v10  ;;  %v4993_v8 = vadd.f32 %v4930_v1, %v12269_v54 }
 0x334   : > { %v9343_v27 = vpop.f32.mrf.mxu1  ;;  %9642 = vmatmul.mubr.msk.f32.gmra.mxu1 %vm257_vm1, %v6978_v28 }
 0x335   : > { %v9393_v6 = vpop.f32.mrf.mxu0  ;;  %v12424_v56 = vadd.f32 %v5320_v4, %v4993_v8  ;;  %v4996_v12 = vadd.f32 %v9343_v27, %v12275_v7  ;;  %9644 = vmatprep.mubr.msk.f32.mxu1 %vm257_vm1, %v12095_v40  ;;  %v6982_v7 = vld [vmem:[#allocation2 + $0x1a2] sm:$0xff] }
 0x336   : > { %v4940_v43 = vpop.f32.mrf.mxu1 }
 0x337   : > { %v5330_v49 = vpop.f32.mrf.mxu0  ;;  %v12429_v15 = vadd.f32 %v9393_v6, %v4996_v12  ;;  %v4995_v38 = vadd.f32 %v4940_v43, %v12281_v62 }
 0x338   : > { %v9346_v54 = vpop.f32.mrf.mxu1  ;;  %9645 = vmatmul.mubr.msk.f32.gmra.mxu1 %vm257_vm1, %v12103_v36 }
 0x339   : > { %v9396_v0 = vpop.f32.mrf.mxu0  ;;  %v12434_v5 = vadd.f32 %v5330_v49, %v4995_v38  ;;  %v4998_v32 = vadd.f32 %v9346_v54, %v12287_v33  ;;  %9647 = vmatprep.mubr.msk.f32.mxu1 %vm257_vm1, %v6981_v34 }
 0x33a   : > { %v4950_v40 = vpop.f32.mrf.mxu1 }
 0x33b   : > { %v5340_v39 = vpop.f32.mrf.mxu0  ;;  %v12438_v29 = vadd.f32 %v9396_v0, %v4998_v32  ;;  %v4997_v11 = vadd.f32 %v4950_v40, %v12291_v46 }
 0x33c   : > { %v9349_v60 = vpop.f32.mrf.mxu1  ;;  %9648 = vmatmul.mubr.msk.f32.gmra.mxu1 %vm257_vm1, %v6982_v7 }
 0x33d   : > { %v9399_v62 = vpop.f32.mrf.mxu0  ;;  %v12442_v9 = vadd.f32 %v5340_v39, %v4997_v11  ;;  %v5000_v36 = vadd.f32 %v9349_v60, %v12295_v21 }
 0x33e   : > { %v4960_v63 = vpop.f32.mrf.mxu1 }
 0x33f   : > { %v5350_v24 = vpop.f32.mrf.mxu0  ;;  %v12445_v33 = vadd.f32 %v9399_v62, %v5000_v36  ;;  %v4999_v48 = vadd.f32 %v4960_v63, %v13420_v20 }
 0x340   : > { %v9404_v61 = vpop.f32.mrf.mxu1 }
 0x341   : > { %v12448_v18 = vpop.f32.mrf.mxu0  ;;  %v12450_v26 = vadd.f32 %v5350_v24, %v4999_v48  ;;  %v12453_v46 = vadd.f32 %v9404_v61, %v12308_v51 }
 0x342   : > { %v5590_v25 = vpop.f32.mrf.mxu1 }
 0x343   : > { %v12455_v55 = vpop.f32.mrf.mxu0  ;;  %v12458_v10 = vadd.f32 %v5590_v25, %v12312_v2 }
 0x344   : > { %v9407_v21 = vpop.f32.mrf.mxu1 }
 0x345   : > { %v12460_v1 = vpop.f32.mrf.mxu0  ;;  %v12463_v4 = vadd.f32 %v9407_v21, %v12317_v19 }
 0x346   : > { %v5600_v8 = vpop.f32.mrf.mxu1 }
 0x347   : > { %v12465_v28 = vpop.f32.mrf.mxu0  ;;  %v12468_v27 = vadd.f32 %v5600_v8, %v12322_v37 }
 0x348   : > { %v9410_v51 = vpop.f32.mrf.mxu1 }
 0x349   : > { %v12470_v6 = vpop.f32.mrf.mxu0  ;;  %v12473_v12 = vadd.f32 %v9410_v51, %v12327_v57 }
 0x34a   : > { %v5610_v2 = vpop.f32.mrf.mxu1 }
 0x34b   : > { %v12475_v43 = vpop.f32.mrf.mxu0  ;;  %v12478_v49 = vadd.f32 %v5610_v2, %v12332_v23 }
 0x34c   : > { %v9413_v19 = vpop.f32.mrf.mxu1 }
 0x34d   : > { %v12480_v34 = vpop.f32.mrf.mxu0  ;;  %v12483_v38 = vadd.f32 %v9413_v19, %v12337_v17 }
 0x34e   : > { %v5620_v37 = vpop.f32.mrf.mxu1 }
 0x34f   : > { %v12485_v54 = vpop.f32.mrf.mxu0  ;;  %v12488_v0 = vadd.f32 %v5620_v37, %v12342_v42 }
 0x350   : > { %v9416_v57 = vpop.f32.mrf.mxu1 }
 0x351   : > { %v12490_v32 = vpop.f32.mrf.mxu0  ;;  %v12493_v7 = vadd.f32 %v9416_v57, %v12347_v35 }
 0x352   : > { %v5630_v23 = vpop.f32.mrf.mxu1 }
 0x353   : > { %v12495_v40 = vpop.f32.mrf.mxu0  ;;  %v12498_v39 = vadd.f32 %v5630_v23, %v12352_v47 }
 0x354   : > { %v9419_v17 = vpop.f32.mrf.mxu1 }
 0x355   : > { %v12500_v11 = vpop.f32.mrf.mxu0  ;;  %v12503_v60 = vadd.f32 %v9419_v17, %v12357_v59 }
 0x356   : > { %v5640_v42 = vpop.f32.mrf.mxu1 }
 0x357   : > { %v12505_v62 = vpop.f32.mrf.mxu0  ;;  %v12508_v36 = vadd.f32 %v5640_v42, %v12362_v22 }
 0x358   : > { %v9422_v35 = vpop.f32.mrf.mxu1 }
 0x359   : > { %v12510_v63 = vpop.f32.mrf.mxu0  ;;  %v12513_v24 = vadd.f32 %v9422_v35, %v12367_v44 }
 0x35a   : > { %v5650_v47 = vpop.f32.mrf.mxu1 }
 0x35b   : > { %v12515_v20 = vpop.f32.mrf.mxu0  ;;  %v12518_v48 = vadd.f32 %v5650_v47, %v12372_v13 }
 0x35c   : > { %v9425_v59 = vpop.f32.mrf.mxu1 }
 0x35d   : > { %v12520_v61 = vpop.f32.mrf.mxu0  ;;  %v12523_v25 = vadd.f32 %v9425_v59, %v12377_v31 }
 0x35e   : > { %13421 = vst [vmem:[#allocation42_spill] sm:$0xff] %v12520_v61  ;;  %v5660_v22 = vpop.f32.mrf.mxu1 }
 0x35f   : > { %v12525_v21 = vpop.f32.mrf.mxu0  ;;  %v12528_v8 = vadd.f32 %v5660_v22, %v12382_v45 }
 0x360   : > { %13422 = vst [vmem:[#allocation44_spill] sm:$0xff] %v12525_v21  ;;  %v9428_v44 = vpop.f32.mrf.mxu1 }
 0x361   : > { %13423 = vst [vmem:[#allocation71_spill] sm:$0xff] %v12528_v8  ;;  %v12530_v51 = vpop.f32.mrf.mxu0  ;;  %v12533_v2 = vadd.f32 %v9428_v44, %v12387_v50 }
 0x362   : > { %13424 = vst [vmem:[#allocation70_spill] sm:$0xff] %v12530_v51  ;;  %v5670_v13 = vpop.f32.mrf.mxu1 }
 0x363   : > { %13425 = vst [vmem:[#allocation114_spill] sm:$0xff] %v12533_v2  ;;  %v12535_v19 = vpop.f32.mrf.mxu0  ;;  %v12538_v37 = vadd.f32 %v5670_v13, %v12391_v30 }
 0x364   : > { %13426 = vst [vmem:[#allocation73_spill] sm:$0xff] %v12535_v19  ;;  %v9431_v31 = vpop.f32.mrf.mxu1 }
 0x365   : > { %13427 = vst [vmem:[#allocation76_spill] sm:$0xff] %v12538_v37  ;;  %v12540_v57 = vpop.f32.mrf.mxu0  ;;  %v12543_v23 = vadd.f32 %v9431_v31, %v12396_v16 }
 0x366   : > { %13428 = vst [vmem:[#allocation127_spill] sm:$0xff] %v12540_v57  ;;  %v5680_v45 = vpop.f32.mrf.mxu1 }
 0x367   : > { %13429 = vst [vmem:[#allocation115_spill] sm:$0xff] %v12543_v23  ;;  %v12545_v17 = vpop.f32.mrf.mxu0  ;;  %v12548_v42 = vadd.f32 %v5680_v45, %v12400_v41 }
 0x368   : > { %13430 = vst [vmem:[#allocation45_spill] sm:$0xff] %v12545_v17  ;;  %v9434_v50 = vpop.f32.mrf.mxu1 }
 0x369   : > { %13431 = vst [vmem:[#allocation46_spill] sm:$0xff] %v12548_v42  ;;  %v12550_v35 = vpop.f32.mrf.mxu0  ;;  %v12553_v47 = vadd.f32 %v9434_v50, %v12404_v3 }
 0x36a   : > { %13432 = vst [vmem:[#allocation75_spill] sm:$0xff] %v12550_v35  ;;  %v5690_v30 = vpop.f32.mrf.mxu1 }
 0x36b   : > { %13433 = vst [vmem:[#allocation74_spill] sm:$0xff] %v12553_v47  ;;  %v12555_v59 = vpop.f32.mrf.mxu0  ;;  %v12558_v22 = vadd.f32 %v5690_v30, %v12408_v58 }
 0x36c   : > { %13434 = vst [vmem:[#allocation117_spill] sm:$0xff] %v12555_v59  ;;  %v9437_v16 = vpop.f32.mrf.mxu1 }
 0x36d   : > { %13435 = vst [vmem:[#allocation77_spill] sm:$0xff] %v12558_v22  ;;  %v12560_v44 = vpop.f32.mrf.mxu0  ;;  %v12563_v13 = vadd.f32 %v9437_v16, %v12412_v53 }
 0x36e   : > { %13436 = vst [vmem:[#allocation80_spill] sm:$0xff] %v12560_v44  ;;  %v5700_v41 = vpop.f32.mrf.mxu1 }
 0x36f   : > { %13437 = vst [vmem:[#allocation118_spill] sm:$0xff] %v12563_v13  ;;  %v12565_v31 = vpop.f32.mrf.mxu0  ;;  %v12568_v45 = vadd.f32 %v5700_v41, %v12416_v52 }
 0x370   : > { %13438 = vst [vmem:[#allocation132_spill] sm:$0xff] %v12565_v31  ;;  %v9440_v3 = vpop.f32.mrf.mxu1 }
 0x371   : > { %13439 = vst [vmem:[#allocation47_spill] sm:$0xff] %v12568_v45  ;;  %v12570_v50 = vpop.f32.mrf.mxu0  ;;  %v12573_v59 = vadd.f32 %v9440_v3, %v12420_v14 }
 0x372   : > { %13440 = vst [vmem:[#allocation48_spill] sm:$0xff] %v12570_v50  ;;  %v5710_v58 = vpop.f32.mrf.mxu1 }
 0x373   : > { %13441 = vst [vmem:[#allocation79_spill] sm:$0xff] %v12573_v59  ;;  %v12575_v30 = vpop.f32.mrf.mxu0  ;;  %v12578_v44 = vadd.f32 %v5710_v58, %v12424_v56 }
 0x374   : > { %13442 = vst [vmem:[#allocation78_spill] sm:$0xff] %v12575_v30  ;;  %v9443_v53 = vpop.f32.mrf.mxu1 }
 0x375   : > { %13443 = vst [vmem:[#allocation120_spill] sm:$0xff] %v12578_v44  ;;  %v12580_v16 = vpop.f32.mrf.mxu0  ;;  %v12583_v31 = vadd.f32 %v9443_v53, %v12429_v15 }
 0x376   : > { %13444 = vst [vmem:[#allocation81_spill] sm:$0xff] %v12580_v16  ;;  %v5720_v52 = vpop.f32.mrf.mxu1 }
 0x377   : > { %13445 = vst [vmem:[#allocation84_spill] sm:$0xff] %v12583_v31  ;;  %v12585_v41 = vpop.f32.mrf.mxu0  ;;  %v12588_v50 = vadd.f32 %v5720_v52, %v12434_v5 }
 0x378   : > { %13446 = vst [vmem:[#allocation121_spill] sm:$0xff] %v12585_v41  ;;  %v9446_v14 = vpop.f32.mrf.mxu1 }
 0x379   : > { %13447 = vst [vmem:[#allocation49_spill] sm:$0xff] %v12588_v50  ;;  %v12590_v3 = vpop.f32.mrf.mxu0  ;;  %v12593_v30 = vadd.f32 %v9446_v14, %v12438_v29 }
 0x37a   : > { %13448 = vst [vmem:[#allocation52_spill] sm:$0xff] %v12590_v3  ;;  %v5730_v56 = vpop.f32.mrf.mxu1 }
 0x37b   : > { %13449 = vst [vmem:[#allocation83_spill] sm:$0xff] %v12593_v30  ;;  %v12595_v58 = vpop.f32.mrf.mxu0  ;;  %v12598_v16 = vadd.f32 %v5730_v56, %v12442_v9 }
 0x37c   : > { %13450 = vst [vmem:[#allocation82_spill] sm:$0xff] %v12595_v58  ;;  %v9449_v15 = vpop.f32.mrf.mxu1 }
 0x37d   : > { %13451 = vst [vmem:[#allocation123_spill] sm:$0xff] %v12598_v16  ;;  %v12600_v53 = vpop.f32.mrf.mxu0  ;;  %v12603_v41 = vadd.f32 %v9449_v15, %v12445_v33 }
 0x37e   : > { %13452 = vst [vmem:[#allocation85_spill] sm:$0xff] %v12600_v53  ;;  %v5740_v5 = vpop.f32.mrf.mxu1 }
 0x37f   : > { %13453 = vst [vmem:[#allocation88_spill] sm:$0xff] %v12603_v41  ;;  %v12605_v52 = vpop.f32.mrf.mxu0  ;;  %v12608_v3 = vadd.f32 %v5740_v5, %v12450_v26 }
 0x380   : > { %13454 = vst [vmem:[#allocation124_spill] sm:$0xff] %v12605_v52  ;;  %v9504_v29 = vpop.f32.mrf.mxu1 }
 0x381   : > { %13455 = vst [vmem:[#allocation53_spill] sm:$0xff] %v12608_v3  ;;  %v9554_v14 = vpop.f32.mrf.mxu0 }
 0x382   : > { %v6370_v30 = vpop.f32.mrf.mxu1 }
 0x383   : > { %v6760_v50 = vpop.f32.mrf.mxu0 }
 0x384   : > { %v9507_v58 = vpop.f32.mrf.mxu1 }
 0x385   : > { %v9557_v9 = vpop.f32.mrf.mxu0 }
 0x386   : > { %v6380_v31 = vpop.f32.mrf.mxu1 }
 0x387   : > { %v12612_v53 = vpop.f32.mrf.mxu0 }
 0x388   : > { %v9510_v56 = vpop.f32.mrf.mxu1 }
 0x389   : > { %v12618_v52 = vpop.f32.mrf.mxu0 }
 0x38a   : > { %v12610_v16 = vpop.f32.mrf.mxu1 }
 0x38b   : > { %v12624_v3 = vpop.f32.mrf.mxu0 }
 0x38c   : > { %v12614_v33 = vpop.f32.mrf.mxu1 }
 0x38d   : > { %v12630_v59 = vpop.f32.mrf.mxu0 }
 0x38e   : > { %v12616_v15 = vpop.f32.mrf.mxu1 }
 0x38f   : > { %v12636_v22 = vpop.f32.mrf.mxu0 }
 0x390   : > { %v12620_v26 = vpop.f32.mrf.mxu1 }
 0x391   : > { %v12642_v17 = vpop.f32.mrf.mxu0 }
 0x392   : > { %v12622_v5 = vpop.f32.mrf.mxu1 }
 0x393   : > { %v12648_v23 = vpop.f32.mrf.mxu0 }
 0x394   : > { %v12626_v41 = vpop.f32.mrf.mxu1 }
 0x395   : > { %v12654_v51 = vpop.f32.mrf.mxu0 }
 0x396   : > { %v12628_v44 = vpop.f32.mrf.mxu1 }
 0x398   : > { %v12632_v45 = vpop.f32.mrf.mxu1 }
 0x39a   : > { %v12634_v13 = vpop.f32.mrf.mxu1 }
 0x39b   : > { %13456 = vst [vmem:[#allocation54_spill] sm:$0xff] %v12634_v13 }
 0x39c   : > { %v12638_v35 = vpop.f32.mrf.mxu1 }
 0x39d   : > { %13457 = vst [vmem:[#allocation87_spill] sm:$0xff] %v12638_v35  ;;  %v12660_v35 = vpop.f32.mrf.mxu0 }
 0x39e   : > { %v12640_v47 = vpop.f32.mrf.mxu1 }
 0x39f   : > { %13458 = vst [vmem:[#allocation86_spill] sm:$0xff] %v12640_v47 }
 0x3a0   : > { %v12644_v42 = vpop.f32.mrf.mxu1 }
 0x3a1   : > { %13459 = vst [vmem:[#allocation125_spill] sm:$0xff] %v12644_v42  ;;  %v12666_v42 = vpop.f32.mrf.mxu0 }
 0x3a2   : > { %v12646_v57 = vpop.f32.mrf.mxu1  ;;  %13467 = vst [vmem:[#allocation128_spill] sm:$0xff] %v12666_v42 }
 0x3a3   : > { %13460 = vst [vmem:[#allocation89_spill] sm:$0xff] %v12646_v57 }
 0x3a4   : > { %v12650_v19 = vpop.f32.mrf.mxu1 }
 0x3a5   : > { %13461 = vst [vmem:[#allocation92_spill] sm:$0xff] %v12650_v19  ;;  %v12672_v19 = vpop.f32.mrf.mxu0 }
 0x3a6   : > { %v12652_v37 = vpop.f32.mrf.mxu1  ;;  %13470 = vst [vmem:[#allocation129_spill] sm:$0xff] %v12672_v19 }
 0x3a7   : > { %13462 = vst [vmem:[#allocation126_spill] sm:$0xff] %v12652_v37 }
 0x3a8   : > { %v12656_v2 = vpop.f32.mrf.mxu1 }
 0x3a9   : > { %13463 = vst [vmem:[#allocation55_spill] sm:$0xff] %v12656_v2  ;;  %v12678_v2 = vpop.f32.mrf.mxu0 }
 0x3aa   : > { %v12658_v21 = vpop.f32.mrf.mxu1  ;;  %13473 = vst [vmem:[#allocation95_spill] sm:$0xff] %v12678_v2 }
 0x3ab   : > { %13464 = vst [vmem:[#allocation56_spill] sm:$0xff] %v12658_v21 }
 0x3ac   : > { %v12662_v47 = vpop.f32.mrf.mxu1 }
 0x3ad   : > { %13465 = vst [vmem:[#allocation91_spill] sm:$0xff] %v12662_v47  ;;  %v6140_v47 = vadd.f32 %v12448_v18, %v12453_v46 }
 0x3ae   : > { %v12664_v8 = vpop.f32.mrf.mxu1 }
 0x3af   : > { %13466 = vst [vmem:[#allocation90_spill] sm:$0xff] %v12664_v8  ;;  %v6530_v42 = vadd.f32 %v9504_v29, %v6140_v47  ;;  %v12705_v47 = vld [vmem:[%s12971_s4] ss:$0 sm:$0xff] }
 0x3b0   : > { %v12668_v57 = vpop.f32.mrf.mxu1 }
 0x3b1   : > { %13468 = vst [vmem:[#allocation93_spill] sm:$0xff] %v12668_v57  ;;  %v6139_v57 = vadd.f32 %v12455_v55, %v12458_v10  ;;  %v6920_v18 = vadd.f32 %v9554_v14, %v6530_v42  ;;  %v6144_v55 = vadd.f32 %v12470_v6, %v12473_v12  ;;  %v6145_v14 = vadd.f32 %v12485_v54, %v12488_v0 }
 0x3b2   : > { %v12670_v13 = vpop.f32.mrf.mxu1  ;;  %v6148_v0 = vadd.f32 %v12490_v32, %v12493_v7 }
 0x3b3   : > { %13469 = vst [vmem:[#allocation96_spill] sm:$0xff] %v12670_v13  ;;  %v12688_v13 = vpop.f32.mrf.mxu0 }
 0x3b4   : > { %v12674_v37 = vpop.f32.mrf.mxu1  ;;  %v6538_v32 = vadd.f32 %v12620_v26, %v6148_v0  ;;  %v6151_v0 = vadd.f32 %v12515_v20, %v12518_v48  ;;  %v13485_v48 = vld [vmem:[#allocation54_spill] sm:$0xff] }
 0x3b5   : > { %13471 = vst [vmem:[#allocation57_spill] sm:$0xff] %v12674_v37  ;;  %v6529_v37 = vadd.f32 %v6370_v30, %v6139_v57  ;;  %v6143_v30 = vadd.f32 %v12475_v43, %v12478_v49 }
 0x3b6   : > { %v12676_v61 = vpop.f32.mrf.mxu1 }
 0x3b7   : > { %13472 = vst [vmem:[#allocation58_spill] sm:$0xff] %v12676_v61  ;;  %v6142_v61 = vadd.f32 %v12460_v1, %v12463_v4  ;;  %v6919_v1 = vadd.f32 %v6760_v50, %v6529_v37  ;;  %v6533_v29 = vadd.f32 %v12610_v16, %v6143_v30 }
 0x3b8   : > { %v12680_v21 = vpop.f32.mrf.mxu1 }
 0x3b9   : > { %13474 = vst [vmem:[#allocation94_spill] sm:$0xff] %v12680_v21  ;;  %v6141_v21 = vadd.f32 %v12465_v28, %v12468_v27  ;;  %v6532_v46 = vadd.f32 %v9507_v58, %v6142_v61  ;;  %v6534_v28 = vadd.f32 %v9510_v56, %v6144_v55  ;;  %v6146_v58 = vadd.f32 %v12480_v34, %v12483_v38 }
 0x3ba   : > { %v12684_v8 = vpop.f32.mrf.mxu1 }
 0x3bb   : > { %13475 = vst [vmem:[#allocation130_spill] sm:$0xff] %v12684_v8  ;;  %v12698_v8 = vpop.f32.mrf.mxu0  ;;  %v6531_v4 = vadd.f32 %v6380_v31, %v6141_v21  ;;  %v6922_v61 = vadd.f32 %v9557_v9, %v6532_v46  ;;  %v13476_v31 = vld [vmem:[#allocation4_spill] sm:$0xff]  ;;  %v6924_v9 = vadd.f32 %v12618_v52, %v6534_v28  ;;  %v6536_v56 = vadd.f32 %v12614_v33, %v6146_v58 }
 0x3bc   : > { %v12690_v19 = vpop.f32.mrf.mxu1  ;;  %v6923_v52 = vadd.f32 %v12624_v3, %v6533_v29  ;;  %v6535_v33 = vadd.f32 %v12616_v15, %v6145_v14  ;;  %v6147_v28 = vadd.f32 %v12495_v40, %v12498_v39  ;;  %v6150_v29 = vadd.f32 %v12500_v11, %v12503_v60  ;;  %v13481_v14 = vld [vmem:[#allocation7_spill] sm:$0xff] }
 0x3bd   : > { %v12709_v42 = vpop.f32.mrf.mxu0  ;;  %v6921_v21 = vadd.f32 %v12612_v53, %v6531_v4  ;;  %v13477_v53 = vld [vmem:[#allocation3_spill] sm:$0xff] }
 0x3be   : > { %v12694_v2 = vpop.f32.mrf.mxu1  ;;  %v6925_v40 = vadd.f32 %v12636_v22, %v6535_v33  ;;  %v6537_v39 = vadd.f32 %v12622_v5, %v6147_v28  ;;  %v6540_v11 = vadd.f32 %v12626_v41, %v6150_v29  ;;  %v13483_v33 = vld [vmem:[#allocation9_spill] sm:$0xff]  ;;  %v13486_v28 = vld [vmem:[#allocation12_spill] sm:$0xff] }
 0x3bf   : > { %v12729_v38 = vpop.f32.mrf.mxu0 }
 0x3c0   : > { %v9604_v10 = vpop.f32.mrf.mxu1 }
 0x3c1   : > { %v7310_v57 = vadd.f32 %v9604_v10, %v6920_v18  ;;  %v12745_v3 = vpop.f32.mrf.mxu0 }
 0x3c2   : > { %v7150_v27 = vpop.f32.mrf.mxu1 }
 0x3c3   : > { %v7349_v6 = vadd.f32 %v12705_v47, %v7310_v57  ;;  %v7309_v12 = vadd.f32 %v7150_v27, %v6919_v1  ;;  %v13478_v1 = vld [vmem:[#allocation6_spill] sm:$0xff]  ;;  %v6926_v27 = vadd.f32 %v12630_v59, %v6536_v56  ;;  %v12763_v22 = vpop.f32.mrf.mxu0 }
 0x3c4   : > { %v9607_v37 = vpop.f32.mrf.mxu1 }
 0x3c5   : > { %v7381_v50 = vadd.f32 %v7349_v6, %v13476_v31  ;;  %v7348_v43 = vadd.f32 %v12705_v47, %v7309_v12  ;;  %v7312_v49 = vadd.f32 %v9607_v37, %v6922_v61  ;;  %v13479_v61 = vld [vmem:[#allocation5_spill] sm:$0xff]  ;;  %v13480_v37 = vld [vmem:[#allocation8_spill] sm:$0xff] }
 0x3c6   : > { %v7160_v34 = vpop.f32.mrf.mxu1 }
 0x3c7   : > { %v7413_v16 = vmax.f32 %v7381_v50, 0.0  ;;  %v7380_v18 = vadd.f32 %v7348_v43, %v13477_v53  ;;  %v7351_v46 = vadd.f32 %v12705_v47, %v7312_v49  ;;  %v7311_v54 = vadd.f32 %v7160_v34, %v6921_v21  ;;  %v13482_v53 = vld [vmem:[#allocation10_spill] sm:$0xff] }
 0x3c8   : > { %v9610_v55 = vpop.f32.mrf.mxu1  ;;  %v6149_v43 = vadd.f32 %v12505_v62, %v12508_v36  ;;  %v6928_v49 = vadd.f32 %v12642_v17, %v6538_v32  ;;  %v6927_v62 = vadd.f32 %v12648_v23, %v6537_v39  ;;  %v12781_v23 = vpop.f32.mrf.mxu0 }
 0x3c9   : > { %7445 = vst.msk [vmem:[%s12727_s22 + $0x8] sm:$0xff] %vm257_vm1, %v7413_v16  ;;  %v7412_v10 = vmax.f32 %v7380_v18, 0.0  ;;  %v7383_v4 = vadd.f32 %v7351_v46, %v13478_v1  ;;  %v7350_v57 = vadd.f32 %v12705_v47, %v7311_v54  ;;  %v7314_v30 = vadd.f32 %v9610_v55, %v6924_v9 }
 0x3ca   : > { %v7170_v7 = vpop.f32.mrf.mxu1  ;;  %v6152_v16 = vadd.f32 %v12510_v63, %v12513_v24  ;;  %v6539_v36 = vadd.f32 %v12628_v44, %v6149_v43 }
 0x3cb   : > { %7444 = vst.msk [vmem:[%s12727_s22] sm:$0xff] %vm257_vm1, %v7412_v10  ;;  %v7415_v15 = vmax.f32 %v7383_v4, 0.0  ;;  %v7382_v6 = vadd.f32 %v7350_v57, %v13479_v61  ;;  %v7353_v12 = vadd.f32 %v12705_v47, %v7314_v30  ;;  %v7313_v58 = vadd.f32 %v7170_v7, %v6923_v52  ;;  %v13484_v4 = vld [vmem:[#allocation42_spill] sm:$0xff]  ;;  %v13488_v61 = vld [vmem:[#allocation44_spill] sm:$0xff] }
 0x3cc   : > { %v9613_v59 = vpop.f32.mrf.mxu1  ;;  %v6930_v52 = vadd.f32 %v12654_v51, %v6540_v11  ;;  %v6542_v63 = vadd.f32 %v12632_v45, %v6152_v16  ;;  %v6154_v57 = vadd.f32 %v13484_v4, %v12523_v25  ;;  %v6929_v20 = vadd.f32 %v12660_v35, %v6539_v36  ;;  %v13490_v25 = vld [vmem:[#allocation87_spill] sm:$0xff]  ;;  %v13497_v36 = vld [vmem:[#allocation76_spill] sm:$0xff] }
 0x3cd   : > { %7447 = vst.msk [vmem:[%s12727_s22 + $0x18] sm:$0xff] %vm257_vm1, %v7415_v15  ;;  %v7414_v26 = vmax.f32 %v7382_v6, 0.0  ;;  %v7385_v21 = vadd.f32 %v7353_v12, %v13480_v37  ;;  %v7352_v31 = vadd.f32 %v12705_v47, %v7313_v58  ;;  %v7316_v50 = vadd.f32 %v9613_v59, %v6926_v27  ;;  %v13487_v15 = vld [vmem:[#allocation71_spill] sm:$0xff]  ;;  %v13489_v12 = vld [vmem:[#allocation128_spill] sm:$0xff] }
 0x3ce   : > { %v7180_v60 = vpop.f32.mrf.mxu1  ;;  %v6541_v51 = vadd.f32 %v13485_v48, %v6151_v0  ;;  %v6153_v6 = vadd.f32 %v13488_v61, %v13487_v15  ;;  %v6932_v58 = vadd.f32 %v13489_v12, %v6542_v63  ;;  %v6544_v29 = vadd.f32 %v13490_v25, %v6154_v57  ;;  %v13491_v59 = vld [vmem:[#allocation11_spill] sm:$0xff]  ;;  %v13507_v15 = vld [vmem:[#allocation45_spill] sm:$0xff]  ;;  %v13508_v12 = vld [vmem:[#allocation92_spill] sm:$0xff] }
 0x3cf   : > { %7446 = vst.msk [vmem:[%s12727_s22 + $0x10] sm:$0xff] %vm257_vm1, %v7414_v26  ;;  %v7417_v5 = vmax.f32 %v7385_v21, 0.0  ;;  %v7384_v9 = vadd.f32 %v7352_v31, %v13481_v14  ;;  %v7355_v56 = vadd.f32 %v12705_v47, %v7316_v50  ;;  %v7315_v34 = vadd.f32 %v7180_v60, %v6925_v40  ;;  %v12799_v40 = vpop.f32.mrf.mxu0  ;;  %v13492_v31 = vld [vmem:[#allocation114_spill] sm:$0xff] }
 0x3d0   : > { %v9616_v17 = vpop.f32.mrf.mxu1  ;;  %v13493_v50 = vld [vmem:[#allocation70_spill] sm:$0xff] }
 0x3d1   : > { %7449 = vst.msk [vmem:[%s12727_s22 + $0x28] sm:$0xff] %vm257_vm1, %v7417_v5  ;;  %v7416_v41 = vmax.f32 %v7384_v9, 0.0  ;;  %v7387_v18 = vadd.f32 %v7355_v56, %v13482_v53  ;;  %v7354_v46 = vadd.f32 %v12705_v47, %v7315_v34  ;;  %v7318_v54 = vadd.f32 %v9616_v17, %v6928_v49  ;;  %v13494_v49 = vld [vmem:[#allocation129_spill] sm:$0xff]  ;;  %v13495_v60 = vld [vmem:[#allocation86_spill] sm:$0xff]  ;;  %v13499_v53 = vld [vmem:[#allocation95_spill] sm:$0xff] }
 0x3d2   : > { %v7190_v24 = vpop.f32.mrf.mxu1  ;;  %v6156_v43 = vadd.f32 %v13493_v50, %v13492_v31  ;;  %v6931_v11 = vadd.f32 %v13494_v49, %v6541_v51  ;;  %v6543_v5 = vadd.f32 %v13495_v60, %v6153_v6  ;;  %v13496_v56 = vld [vmem:[#allocation14_spill] sm:$0xff]  ;;  %v13498_v17 = vld [vmem:[#allocation73_spill] sm:$0xff] }
 0x3d3   : > { %7448 = vst.msk [vmem:[%s12727_s22 + $0x20] sm:$0xff] %vm257_vm1, %v7416_v41  ;;  %v7419_v44 = vmax.f32 %v7387_v18, 0.0  ;;  %v7386_v55 = vadd.f32 %v7354_v46, %v13483_v33  ;;  %v7357_v10 = vadd.f32 %v12705_v47, %v7318_v54  ;;  %v7317_v1 = vadd.f32 %v7190_v24, %v6927_v62  ;;  %v13500_v46 = vld [vmem:[#allocation125_spill] sm:$0xff]  ;;  %v13513_v60 = vld [vmem:[#allocation18_spill] sm:$0xff] }
 0x3d4   : > { %v9619_v45 = vpop.f32.mrf.mxu1  ;;  %v6155_v41 = vadd.f32 %v13498_v17, %v13497_v36  ;;  %v6934_v18 = vadd.f32 %v13499_v53, %v6544_v29  ;;  %v6546_v54 = vadd.f32 %v13500_v46, %v6156_v43  ;;  %v13501_v24 = vld [vmem:[#allocation13_spill] sm:$0xff]  ;;  %v6933_v57 = vadd.f32 %v12688_v13, %v6543_v5  ;;  %v13516_v36 = vld [vmem:[#allocation55_spill] sm:$0xff] }
 0x3d5   : > { %7451 = vst.msk [vmem:[%s12727_s22 + $0x38] sm:$0xff] %vm257_vm1, %v7419_v44  ;;  %v7418_v30 = vmax.f32 %v7386_v55, 0.0  ;;  %v7389_v27 = vadd.f32 %v7357_v10, %v13486_v28  ;;  %v7356_v32 = vadd.f32 %v12705_v47, %v7317_v1  ;;  %v7320_v7 = vadd.f32 %v9619_v45, %v6930_v52  ;;  %v12817_v52 = vpop.f32.mrf.mxu0  ;;  %v13502_v10 = vld [vmem:[#allocation115_spill] sm:$0xff] }
 0x3d6   : > { %v7200_v35 = vpop.f32.mrf.mxu1  ;;  %v13503_v1 = vld [vmem:[#allocation127_spill] sm:$0xff]  ;;  %v6936_v6 = vadd.f32 %v12698_v8, %v6546_v54  ;;  %v13512_v8 = vld [vmem:[#allocation126_spill] sm:$0xff] }
 0x3d7   : > { %7450 = vst.msk [vmem:[%s12727_s22 + $0x30] sm:$0xff] %vm257_vm1, %v7418_v30  ;;  %v7421_v39 = vmax.f32 %v7389_v27, 0.0  ;;  %v7388_v26 = vadd.f32 %v7356_v32, %v13491_v59  ;;  %v7359_v37 = vadd.f32 %v12705_v47, %v7320_v7  ;;  %v7319_v21 = vadd.f32 %v7200_v35, %v6929_v20  ;;  %v13504_v20 = vld [vmem:[#allocation89_spill] sm:$0xff]  ;;  %v13505_v30 = vld [vmem:[#allocation16_spill] sm:$0xff]  ;;  %v13506_v7 = vld [vmem:[#allocation46_spill] sm:$0xff]  ;;  %v12835_v25 = vpop.f32.mrf.mxu0 }
 0x3d8   : > { %v9622_v14 = vpop.f32.mrf.mxu1  ;;  %v6158_v4 = vadd.f32 %v13503_v1, %v13502_v10  ;;  %v6545_v48 = vadd.f32 %v13504_v20, %v6155_v41  ;;  %v6157_v61 = vadd.f32 %v13507_v15, %v13506_v7  ;;  %v13509_v35 = vld [vmem:[#allocation15_spill] sm:$0xff] }
 0x3d9   : > { %7453 = vst.msk [vmem:[%s12727_s22 + $0x48] sm:$0xff] %vm257_vm1, %v7421_v39  ;;  %v7420_v9 = vmax.f32 %v7388_v26, 0.0  ;;  %v7391_v34 = vadd.f32 %v7359_v37, %v13496_v56  ;;  %v7358_v16 = vadd.f32 %v12705_v47, %v7319_v21  ;;  %v7322_v62 = vadd.f32 %v9622_v14, %v6932_v58  ;;  %v13510_v37 = vld [vmem:[#allocation74_spill] sm:$0xff]  ;;  %v13511_v21 = vld [vmem:[#allocation75_spill] sm:$0xff]  ;;  %v13514_v56 = vld [vmem:[#allocation77_spill] sm:$0xff]  ;;  %v12853_v41 = vpop.f32.mrf.mxu0 }
 0x3da   : > { %v7210_v0 = vpop.f32.mrf.mxu1  ;;  %v6548_v58 = vadd.f32 %v13508_v12, %v6158_v4  ;;  %v6160_v31 = vadd.f32 %v13511_v21, %v13510_v37  ;;  %v6935_v50 = vadd.f32 %v12709_v42, %v6545_v48  ;;  %v6547_v43 = vadd.f32 %v13512_v8, %v6157_v61  ;;  %v13521_v4 = vld [vmem:[#allocation20_spill] sm:$0xff]  ;;  %v13525_v61 = vld [vmem:[#allocation19_spill] sm:$0xff]  ;;  %v13529_v21 = vld [vmem:[#allocation22_spill] sm:$0xff] }
 0x3db   : > { %7452 = vst.msk [vmem:[%s12727_s22 + $0x40] sm:$0xff] %vm257_vm1, %v7420_v9  ;;  %v7423_v63 = vmax.f32 %v7391_v34, 0.0  ;;  %v7390_v44 = vadd.f32 %v7358_v16, %v13501_v24  ;;  %v7361_v33 = vadd.f32 %v12705_v47, %v7322_v62  ;;  %v7321_v55 = vadd.f32 %v7210_v0, %v6931_v11  ;;  %v13515_v34 = vld [vmem:[#allocation117_spill] sm:$0xff]  ;;  %v13519_v24 = vld [vmem:[#allocation80_spill] sm:$0xff]  ;;  %v9593_v7 = vpop.f32.mrf.mxu0 }
 0x3dc   : > { %v9625_v51 = vpop.f32.mrf.mxu1  ;;  %v6159_v16 = vadd.f32 %v13515_v34, %v13514_v56  ;;  %v6938_v62 = vadd.f32 %v12729_v38, %v6548_v58  ;;  %v6550_v17 = vadd.f32 %v13516_v36, %v6160_v31  ;;  %v13520_v38 = vld [vmem:[#allocation56_spill] sm:$0xff]  ;;  %v13533_v34 = vld [vmem:[#allocation21_spill] sm:$0xff] }
 0x3dd   : > { %7455 = vst.msk [vmem:[%s12727_s22 + $0x58] sm:$0xff] %vm257_vm1, %v7423_v63  ;;  %v7422_v45 = vmax.f32 %v7390_v44, 0.0  ;;  %v7393_v28 = vadd.f32 %v7361_v33, %v13505_v30  ;;  %v7360_v27 = vadd.f32 %v12705_v47, %v7321_v55  ;;  %v7324_v32 = vadd.f32 %v9625_v51, %v6934_v18  ;;  %v13517_v18 = vld [vmem:[#allocation17_spill] sm:$0xff]  ;;  %v13518_v63 = vld [vmem:[#allocation118_spill] sm:$0xff]  ;;  %v13522_v51 = vld [vmem:[#allocation47_spill] sm:$0xff] }
 0x3de   : > { %v7220_v13 = vpop.f32.mrf.mxu1  ;;  %v6162_v44 = vadd.f32 %v13519_v24, %v13518_v63  ;;  %v6937_v33 = vadd.f32 %v12745_v3, %v6547_v43  ;;  %v6549_v55 = vadd.f32 %v13520_v38, %v6159_v16  ;;  %v13530_v43 = vld [vmem:[#allocation120_spill] sm:$0xff]  ;;  %v13538_v38 = vld [vmem:[#allocation49_spill] sm:$0xff] }
 0x3df   : > { %7454 = vst.msk [vmem:[%s12727_s22 + $0x50] sm:$0xff] %vm257_vm1, %v7422_v45  ;;  %v7425_v29 = vmax.f32 %v7393_v28, 0.0  ;;  %v7392_v39 = vadd.f32 %v7360_v27, %v13509_v35  ;;  %v7363_v59 = vadd.f32 %v12705_v47, %v7324_v32  ;;  %v7323_v26 = vadd.f32 %v7220_v13, %v6933_v57  ;;  %v13523_v45 = vld [vmem:[#allocation132_spill] sm:$0xff]  ;;  %v13524_v27 = vld [vmem:[#allocation91_spill] sm:$0xff] }
 0x3e0   : > { %v9628_v49 = vpop.f32.mrf.mxu1  ;;  %v6161_v30 = vadd.f32 %v13523_v45, %v13522_v51  ;;  %v6940_v28 = vadd.f32 %v12763_v22, %v6550_v17  ;;  %v6552_v32 = vadd.f32 %v13524_v27, %v6162_v44  ;;  %v13526_v13 = vld [vmem:[#allocation79_spill] sm:$0xff]  ;;  %v13534_v17 = vld [vmem:[#allocation84_spill] sm:$0xff] }
 0x3e1   : > { %7457 = vst.msk [vmem:[%s12727_s22 + $0x68] sm:$0xff] %vm257_vm1, %v7425_v29  ;;  %v7424_v11 = vmax.f32 %v7392_v39, 0.0  ;;  %v7395_v5 = vadd.f32 %v7363_v59, %v13513_v60  ;;  %v7362_v14 = vadd.f32 %v12705_v47, %v7323_v26  ;;  %v7326_v9 = vadd.f32 %v9628_v49, %v6936_v6  ;;  %v13527_v29 = vld [vmem:[#allocation48_spill] sm:$0xff]  ;;  %v13528_v59 = vld [vmem:[#allocation90_spill] sm:$0xff]  ;;  %v13541_v51 = vld [vmem:[#allocation31_spill] sm:$0xff] }
 0x3e2   : > { %v7230_v42 = vpop.f32.mrf.mxu1  ;;  %v6164_v35 = vadd.f32 %v13527_v29, %v13526_v13  ;;  %v6939_v39 = vadd.f32 %v12781_v23, %v6549_v55  ;;  %v6551_v22 = vadd.f32 %v13528_v59, %v6161_v30  ;;  %v13531_v49 = vld [vmem:[#allocation78_spill] sm:$0xff]  ;;  %v6942_v60 = vadd.f32 %v12799_v40, %v6552_v32  ;;  %v13537_v63 = vld [vmem:[#allocation32_spill] sm:$0xff]  ;;  %v13539_v55 = vld [vmem:[#allocation121_spill] sm:$0xff] }
 0x3e3   : > { %7456 = vst.msk [vmem:[%s12727_s22 + $0x60] sm:$0xff] %vm257_vm1, %v7424_v11  ;;  %v7427_v53 = vmax.f32 %v7395_v5, 0.0  ;;  %v7394_v46 = vadd.f32 %v7362_v14, %v13517_v18  ;;  %v7365_v54 = vadd.f32 %v12705_v47, %v7326_v9  ;;  %v7325_v0 = vadd.f32 %v7230_v42, %v6935_v50  ;;  %v13532_v5 = vld [vmem:[#allocation93_spill] sm:$0xff]  ;;  %v6890_v9 = vpop.f32.mrf.mxu0  ;;  %v13542_v27 = vld [vmem:[#allocation83_spill] sm:$0xff]  ;;  %v13543_v32 = vld [vmem:[#allocation52_spill] sm:$0xff] }
 0x3e4   : > { %v9631_v10 = vpop.f32.mrf.mxu1  ;;  %v6163_v11 = vadd.f32 %v13531_v49, %v13530_v43  ;;  %v6554_v14 = vadd.f32 %v13532_v5, %v6164_v35  ;;  %v13535_v42 = vld [vmem:[#allocation81_spill] sm:$0xff]  ;;  %v6941_v18 = vadd.f32 %v12817_v52, %v6551_v22  ;;  %v13547_v59 = vld [vmem:[#allocation82_spill] sm:$0xff] }
 0x3e5   : > { %7459 = vst.msk [vmem:[%s12727_s22 + $0x78] sm:$0xff] %vm257_vm1, %v7427_v53  ;;  %v7426_v1 = vmax.f32 %v7394_v46, 0.0  ;;  %v7397_v57 = vadd.f32 %v7365_v54, %v13521_v4  ;;  %v7364_v20 = vadd.f32 %v12705_v47, %v7325_v0  ;;  %v7328_v48 = vadd.f32 %v9631_v10, %v6938_v62  ;;  %v13536_v46 = vld [vmem:[#allocation96_spill] sm:$0xff]  ;;  %v13540_v4 = vld [vmem:[#allocation57_spill] sm:$0xff] }
 0x3e6   : > { %v7240_v3 = vpop.f32.mrf.mxu1  ;;  %v6166_v53 = vadd.f32 %v13535_v42, %v13534_v17  ;;  %v6553_v40 = vadd.f32 %v13536_v46, %v6163_v11  ;;  %v6165_v10 = vadd.f32 %v13539_v55, %v13538_v38  ;;  %v13551_v5 = vld [vmem:[#allocation85_spill] sm:$0xff]  ;;  %v13555_v46 = vld [vmem:[#allocation124_spill] sm:$0xff] }
 0x3e7   : > { %7458 = vst.msk [vmem:[%s12727_s22 + $0x70] sm:$0xff] %vm257_vm1, %v7426_v1  ;;  %v7429_v15 = vmax.f32 %v7397_v57, 0.0  ;;  %v7396_v6 = vadd.f32 %v7364_v20, %v13525_v61  ;;  %v7367_v12 = vadd.f32 %v12705_v47, %v7328_v48  ;;  %v7327_v58 = vadd.f32 %v7240_v3, %v6937_v33  ;;  %v9596_v20 = vpop.f32.mrf.mxu0  ;;  %v13544_v61 = vld [vmem:[#allocation58_spill] sm:$0xff] }
 0x3e8   : > { %v9634_v26 = vpop.f32.mrf.mxu1  ;;  %v6944_v1 = vadd.f32 %v12835_v25, %v6554_v14  ;;  %v6556_v57 = vadd.f32 %v13540_v4, %v6166_v53  ;;  %v6168_v3 = vadd.f32 %v13543_v32, %v13542_v27  ;;  %v6555_v25 = vadd.f32 %v13544_v61, %v6165_v10 }
 0x3e9   : > { %7461 = vst.msk [vmem:[%s12727_s22 + $0x88] sm:$0xff] %vm257_vm1, %v7429_v15  ;;  %v7428_v37 = vmax.f32 %v7396_v6, 0.0  ;;  %v7399_v31 = vadd.f32 %v7367_v12, %v13529_v21  ;;  %v7366_v50 = vadd.f32 %v12705_v47, %v7327_v58  ;;  %v7330_v8 = vadd.f32 %v9634_v26, %v6940_v28  ;;  %v13545_v58 = vld [vmem:[#allocation34_spill] sm:$0xff] }
 0x3ea   : > { %v7250_v23 = vpop.f32.mrf.mxu1  ;;  %v6943_v15 = vadd.f32 %v12853_v41, %v6553_v40  ;;  %v6946_v26 = vadd.f32 %v9593_v7, %v6556_v57  ;;  %v6900_v41 = vpop.f32.mrf.mxu0 }
 0x3eb   : > { %7460 = vst.msk [vmem:[%s12727_s22 + $0x80] sm:$0xff] %vm257_vm1, %v7428_v37  ;;  %v7431_v56 = vmax.f32 %v7399_v31, 0.0  ;;  %v7398_v16 = vadd.f32 %v7366_v50, %v13533_v34  ;;  %v7369_v62 = vadd.f32 %v12705_v47, %v7330_v8  ;;  %v7329_v36 = vadd.f32 %v7250_v23, %v6939_v39  ;;  %v13546_v39 = vld [vmem:[#allocation123_spill] sm:$0xff]  ;;  %v13548_v37 = vld [vmem:[#allocation94_spill] sm:$0xff]  ;;  %v13549_v8 = vld [vmem:[#allocation33_spill] sm:$0xff] }
 0x3ec   : > { %v9637_v54 = vpop.f32.mrf.mxu1  ;;  %v6167_v22 = vadd.f32 %v13547_v59, %v13546_v39  ;;  %v6558_v21 = vadd.f32 %v13548_v37, %v6168_v3  ;;  %v6945_v23 = vadd.f32 %v6890_v9, %v6555_v25  ;;  %v13559_v25 = vld [vmem:[#allocation41_spill] sm:$0xff]  ;;  %v13561_v37 = vld [vmem:[#allocation51_spill] sm:$0xff] }
 0x3ed   : > { %7463 = vst.msk [vmem:[%s12727_s22 + $0x98] sm:$0xff] %vm257_vm1, %v7431_v56  ;;  %v7430_v0 = vmax.f32 %v7398_v16, 0.0  ;;  %v7401_v24 = vadd.f32 %v7369_v62, %v13537_v63  ;;  %v7368_v44 = vadd.f32 %v12705_v47, %v7329_v36  ;;  %v7332_v33 = vadd.f32 %v9637_v54, %v6942_v60  ;;  %v13550_v60 = vld [vmem:[#allocation88_spill] sm:$0xff]  ;;  %v13552_v56 = vld [vmem:[#allocation130_spill] sm:$0xff]  ;;  %v9599_v16 = vpop.f32.mrf.mxu0 }
 0x3ee   : > { %v7260_v52 = vpop.f32.mrf.mxu1  ;;  %v6170_v14 = vadd.f32 %v13551_v5, %v13550_v60  ;;  %v6557_v34 = vadd.f32 %v13552_v56, %v6167_v22  ;;  %v13553_v36 = vld [vmem:[#allocation36_spill] sm:$0xff]  ;;  %v6948_v54 = vadd.f32 %v9596_v20, %v6558_v21 }
 0x3ef   : > { %7462 = vst.msk [vmem:[%s12727_s22 + $0x90] sm:$0xff] %vm257_vm1, %v7430_v0  ;;  %v7433_v48 = vmax.f32 %v7401_v24, 0.0  ;;  %v7400_v45 = vadd.f32 %v7368_v44, %v13541_v51  ;;  %v7371_v30 = vadd.f32 %v12705_v47, %v7332_v33  ;;  %v7331_v28 = vadd.f32 %v7260_v52, %v6941_v18  ;;  %v13554_v18 = vld [vmem:[#allocation53_spill] sm:$0xff]  ;;  %v13556_v24 = vld [vmem:[#allocation35_spill] sm:$0xff]  ;;  %v6910_v4 = vpop.f32.mrf.mxu0 }
 0x3f0   : > { %v9640_v6 = vpop.f32.mrf.mxu1  ;;  %v6169_v40 = vadd.f32 %v13555_v46, %v13554_v18  ;;  %v6560_v0 = vadd.f32 %v12690_v19, %v6170_v14  ;;  %v6947_v55 = vadd.f32 %v6900_v41, %v6557_v34  ;;  %v13557_v19 = vld [vmem:[#allocation38_spill] sm:$0xff] }
 0x3f1   : > { %7465 = vst.msk [vmem:[%s12727_s22 + $0xa8] sm:$0xff] %vm257_vm1, %v7433_v48  ;;  %v7432_v12 = vmax.f32 %v7400_v45, 0.0  ;;  %v7403_v13 = vadd.f32 %v7371_v30, %v13545_v58  ;;  %v7370_v29 = vadd.f32 %v12705_v47, %v7331_v28  ;;  %v7334_v35 = vadd.f32 %v9640_v6, %v6944_v1  ;;  %v13558_v28 = vld [vmem:[#allocation37_spill] sm:$0xff] }
 0x3f2   : > { %v7270_v31 = vpop.f32.mrf.mxu1  ;;  %v6559_v10 = vadd.f32 %v12694_v2, %v6169_v40  ;;  %v6950_v51 = vadd.f32 %v9599_v16, %v6560_v0 }
 0x3f3   : > { %7464 = vst.msk [vmem:[%s12727_s22 + $0xa0] sm:$0xff] %vm257_vm1, %v7432_v12  ;;  %v7435_v50 = vmax.f32 %v7403_v13, 0.0  ;;  %v7402_v43 = vadd.f32 %v7370_v29, %v13549_v8  ;;  %v7373_v49 = vadd.f32 %v12705_v47, %v7334_v35  ;;  %v7333_v11 = vadd.f32 %v7270_v31, %v6943_v15  ;;  %v13560_v35 = vld [vmem:[#allocation40_spill] sm:$0xff] }
 0x3f4   : > { %v9643_v7 = vpop.f32.mrf.mxu1  ;;  %v6949_v3 = vadd.f32 %v6910_v4, %v6559_v10 }
 0x3f5   : > { %7467 = vst.msk [vmem:[%s12727_s22 + $0xb8] sm:$0xff] %vm257_vm1, %v7435_v50  ;;  %v7434_v62 = vmax.f32 %v7402_v43, 0.0  ;;  %v7405_v17 = vadd.f32 %v7373_v49, %v13553_v36  ;;  %v7372_v42 = vadd.f32 %v12705_v47, %v7333_v11  ;;  %v7336_v53 = vadd.f32 %v9643_v7, %v6946_v26  ;;  %v13562_v50 = vld [vmem:[#allocation50_spill] sm:$0xff] }
 0x3f6   : > { %v7280_v9 = vpop.f32.mrf.mxu1 }
 0x3f7   : > { %7466 = vst.msk [vmem:[%s12727_s22 + $0xb0] sm:$0xff] %vm257_vm1, %v7434_v62  ;;  %v7437_v63 = vmax.f32 %v7405_v17, 0.0  ;;  %v7404_v44 = vadd.f32 %v7372_v42, %v13556_v24  ;;  %v7375_v33 = vadd.f32 %v12705_v47, %v7336_v53  ;;  %v7335_v38 = vadd.f32 %v7280_v9, %v6945_v23 }
 0x3f8   : > { %v9646_v1 = vpop.f32.mrf.mxu1 }
 0x3f9   : > { %7469 = vst.msk [vmem:[%s12727_s22 + $0xc8] sm:$0xff] %vm257_vm1, %v7437_v63  ;;  %v7436_v57 = vmax.f32 %v7404_v44, 0.0  ;;  %v7407_v52 = vadd.f32 %v7375_v33, %v13557_v19  ;;  %v7374_v20 = vadd.f32 %v12705_v47, %v7335_v38  ;;  %v7338_v48 = vadd.f32 %v9646_v1, %v6948_v54 }
 0x3fa   : > { %v7290_v45 = vpop.f32.mrf.mxu1 }
 0x3fb   : > { %7468 = vst.msk [vmem:[%s12727_s22 + $0xc0] sm:$0xff] %vm257_vm1, %v7436_v57  ;;  %v7439_v30 = vmax.f32 %v7407_v52, 0.0  ;;  %v7406_v27 = vadd.f32 %v7374_v20, %v13558_v28  ;;  %v7377_v2 = vadd.f32 %v12705_v47, %v7338_v48  ;;  %v7337_v32 = vadd.f32 %v7290_v45, %v6947_v55 }
 0x3fc   : > { %v9649_v15 = vpop.f32.mrf.mxu1 }
 0x3fd   : > { %7471 = vst.msk [vmem:[%s12727_s22 + $0xd8] sm:$0xff] %vm257_vm1, %v7439_v30  ;;  %v7438_v61 = vmax.f32 %v7406_v27, 0.0  ;;  %v7409_v6 = vadd.f32 %v7377_v2, %v13559_v25  ;;  %v7376_v12 = vadd.f32 %v12705_v47, %v7337_v32  ;;  %v7340_v58 = vadd.f32 %v9649_v15, %v6950_v51 }
 0x3fe   : > { %v7300_v13 = vpop.f32.mrf.mxu1 }
 0x3ff   : > { %7470 = vst.msk [vmem:[%s12727_s22 + $0xd0] sm:$0xff] %vm257_vm1, %v7438_v61  ;;  %v7441_v29 = vmax.f32 %v7409_v6, 0.0  ;;  %v7408_v39 = vadd.f32 %v7376_v12, %v13560_v35  ;;  %v7379_v59 = vadd.f32 %v12705_v47, %v7340_v58  ;;  %v7339_v22 = vadd.f32 %v7300_v13, %v6949_v3 }
 0x401   : > { %7473 = vst.msk [vmem:[%s12727_s22 + $0xe8] sm:$0xff] %vm257_vm1, %v7441_v29  ;;  %v7440_v26 = vmax.f32 %v7408_v39, 0.0  ;;  %v7411_v21 = vadd.f32 %v7379_v59, %v13561_v37  ;;  %v7378_v31 = vadd.f32 %v12705_v47, %v7339_v22 }
 0x403   : > { %7472 = vst.msk [vmem:[%s12727_s22 + $0xe0] sm:$0xff] %vm257_vm1, %v7440_v26  ;;  %v7443_v41 = vmax.f32 %v7411_v21, 0.0  ;;  %v7410_v8 = vadd.f32 %v7378_v31, %v13562_v50 }
 0x405   : > { %7475 = vst.msk [vmem:[%s12727_s22 + $0xf8] sm:$0xff] %vm257_vm1, %v7443_v41  ;;  %v7442_v43 = vmax.f32 %v7410_v8, 0.0 }
 0x407   : > { %7474 = vst.msk [vmem:[%s12727_s22 + $0xf0] sm:$0xff] %vm257_vm1, %v7442_v43 }
 0x408 PF: > { %s15_s18 = sadd.s32 1, %s9665_s18  }
 0x409   : > { %p12_p4 = scmp.ge.s32.totalorder %s15_s18, 4  }
 0x40b   :  { %14 = sbr.rel (!%p12_p4) target bundleno = 1 (0x1), region = 88 }

</bundles_post_ra>
